<compile_context>
chip_gen: v5e
topology: v5e:2x2
jax: 0.10.0
libtpu: 0.0.40
codegen_flags: <defaults>
</compile_context>

<pallas_src>
import jax
import jax.numpy as jnp
from jax.experimental import pallas as pl
from jax.experimental.pallas import tpu as pltpu

KSIZE = 7
PAD = 3             # conv padding
HALO = 2 * PAD      # x halo rows needed per side (conv1 o conv2)
HB = 16             # halo input-block rows (sublane aligned for f32 & bf16)
XOFF = 16           # offset of the current block inside the xwin scratch
BN_EPS = 1e-5
LANES = 128


def _round_up(x, m):
    return (x + m - 1) // m * m


def _make_kernel(l_true, compute_dtype):
    """Per-(batch, L-tile) kernel; true sequence length baked in statically."""

    def kernel(xl_ref, xc_ref, xr_ref, w1_ref, b1_ref, w2_ref, b2_ref,
               o_ref, xwin_ref, h_ref):
        # xl/xr    : (HB, C)        16-row x blocks just left / right of tile
        # xc       : (TL, C)        current x block
        # w1/w2    : (7, C, C)      per-tap weights, BN scale pre-folded
        # b1/b2    : (1, C)  f32    folded BatchNorm biases
        # o_ref    : (TL, C)        output tile
        # xwin_ref : (TL+2*XOFF, C) scratch — haloed x window
        # h_ref    : (TL+2*PAD, C)  scratch — haloed hidden activation
        i = pl.program_id(1)
        n_lt = pl.num_programs(1)
        tl, c = o_ref.shape
        m1 = tl + 2 * PAD          # hidden rows needed by conv2

        # ---- assemble haloed x window (row r <-> position i*TL + r - XOFF) -
        xwin_ref[XOFF - HALO:XOFF, :] = xl_ref[HB - HALO:, :]
        xwin_ref[XOFF:XOFF + tl, :] = xc_ref[...]
        xwin_ref[XOFF + tl:XOFF + tl + HALO, :] = xr_ref[:HALO, :]

        @pl.when(i == 0)                       # positions < 0: conv zero pad
        def _():
            xwin_ref[XOFF - HALO:XOFF, :] = jnp.zeros((HALO, c), compute_dtype)

        @pl.when(i == n_lt - 1)                # clamped block: pos >= L_pad
        def _():
            xwin_ref[XOFF + tl:XOFF + tl + HALO, :] = jnp.zeros(
                (HALO, c), compute_dtype)

        # ---- conv1 (BN1 scale folded): 7 accumulating MXU matmuls ----------
        # h row r <-> global position i*TL - PAD + r,  r in [0, TL + 2*PAD)
        base = XOFF - 2 * PAD
        h = jnp.dot(xwin_ref[base:base + m1, :], w1_ref[0],
                    preferred_element_type=jnp.float32)
        for k in range(1, KSIZE):
            h = h + jnp.dot(xwin_ref[base + k:base + k + m1, :], w1_ref[k],
                            preferred_element_type=jnp.float32)

        # bn1 bias + relu  (dropout p=0.2 is identity in eval mode)
        h_ref[...] = jnp.maximum(h + b1_ref[...], 0.0).astype(compute_dtype)

        # zero hidden rows outside [0, L): realizes conv2's zero padding.
        # Interior tiles skip both branches.
        @pl.when(i == 0)
        def _():
            h_ref[:PAD, :] = jnp.zeros((PAD, c), compute_dtype)

        @pl.when(i * tl + tl + PAD > l_true)
        def _():
            g = i * tl - PAD + jax.lax.broadcasted_iota(jnp.int32, (m1, 1), 0)
            h_ref[...] = jnp.where(g < l_true, h_ref[...],
                                   jnp.zeros((m1, c), compute_dtype))

        # ---- conv2 (BN2 scale folded): 7 accumulating MXU matmuls ----------
        out = jnp.dot(h_ref[0:tl, :], w2_ref[0],
                      preferred_element_type=jnp.float32)
        for k in range(1, KSIZE):
            out = out + jnp.dot(h_ref[k:k + tl, :], w2_ref[k],
                                preferred_element_type=jnp.float32)

        # bn2 bias + residual (interior of current x block) + relu
        out = out + b2_ref[...] + xc_ref[...].astype(jnp.float32)
        o_ref[...] = jnp.maximum(out, 0.0).astype(o_ref.dtype)

    return kernel


def _fold_bn(gamma, beta, mean, var):
    scale = (gamma / jnp.sqrt(var + BN_EPS)).astype(jnp.float32)
    bias = (beta - mean * scale).astype(jnp.float32)
    return scale, bias


def basic_block_1d(x_ncl, w1, bn1, w2, bn2, *,
                   compute_dtype=jnp.bfloat16, l_tile=None):
    """x_ncl: (N, Cin, L) as in PyTorch. w1: (Cout, Cin, 7), w2: (Cout, Cout, 7).
    bn*: (gamma, beta, running_mean, running_var), each (Cout,). Eval mode."""
    N, cin, L = x_ncl.shape
    cout = w1.shape[0]
    assert cin == cout, "downsample is None => inplanes must equal planes (stride=1)"

    C = _round_up(cout, LANES)                    # lane-dense channel count
    if l_tile is None:
        l_tile = min(1024, _round_up(L, HB))      # amortize grid-step overhead
    TL = l_tile
    assert TL % HB == 0 and TL >= HB
    L_pad = _round_up(L, TL)
    n_lt = L_pad // TL
    nhb = TL // HB                                # halo blocks per L tile
    n_hblk = L_pad // HB

    # NLC layout; channels padded to a lane multiple, L padded to a tile multiple.
    x_nlc = jnp.transpose(x_ncl, (0, 2, 1)).astype(compute_dtype)
    x_nlc = jnp.pad(x_nlc, ((0, 0), (0, L_pad - L), (0, C - cin)))

    s1, b1 = _fold_bn(*bn1)
    s2, b2 = _fold_bn(*bn2)

    def fold_w(w, scale):        # (Cout, Cin, 7), (Cout,) -> (7, C, C)
        wk = jnp.transpose(w, (2, 1, 0)).astype(jnp.float32)   # (7, Cin, Cout)
        wk = wk * scale[None, None, :]             # fold BN scale in f32
        wk = jnp.pad(wk, ((0, 0), (0, C - w.shape[1]), (0, C - cout)))
        return wk.astype(compute_dtype)

    w1f, w2f = fold_w(w1, s1), fold_w(w2, s2)
    b1p = jnp.pad(b1, (0, C - cout)).reshape(1, C)
    b2p = jnp.pad(b2, (0, C - cout)).reshape(1, C)

    kernel = _make_kernel(L, compute_dtype)

    def call(single_buffer_consts):
        ck = {"pipeline_mode": pl.Buffered(1)} if single_buffer_consts else {}
        in_specs = [
            pl.BlockSpec((None, HB, C),                        # left halo blk
                         lambda n, i: (n, jnp.maximum(i * nhb - 1, 0), 0)),
            pl.BlockSpec((None, TL, C), lambda n, i: (n, i, 0)),   # current blk
            pl.BlockSpec((None, HB, C),                        # right halo blk
                         lambda n, i: (n, jnp.minimum((i + 1) * nhb, n_hblk - 1), 0)),
            pl.BlockSpec((KSIZE, C, C), lambda n, i: (0, 0, 0), **ck),  # w1
            pl.BlockSpec((1, C), lambda n, i: (0, 0), **ck),            # b1
            pl.BlockSpec((KSIZE, C, C), lambda n, i: (0, 0, 0), **ck),  # w2
            pl.BlockSpec((1, C), lambda n, i: (0, 0), **ck),            # b2
        ]
        return pl.pallas_call(
            kernel,
            out_shape=jax.ShapeDtypeStruct((N, L_pad, C), compute_dtype),
            grid=(N, n_lt),
            in_specs=in_specs,
            out_specs=pl.BlockSpec((None, TL, C), lambda n, i: (n, i, 0)),
            scratch_shapes=[
                pltpu.VMEM((TL + 2 * XOFF, C), compute_dtype),  # haloed x win
                pltpu.VMEM((TL + 2 * PAD, C), compute_dtype),   # haloed hidden
            ],
            compiler_params=pltpu.CompilerParams(
                dimension_semantics=("parallel", "parallel"),
                vmem_limit_bytes=48 * 1024 * 1024,
            ),
        )(x_nlc, x_nlc, x_nlc, w1f, b1p, w2f, b2p)

    try:
        out_nlc = call(True)      # single-buffer the constant-index operands
    except Exception:
        out_nlc = call(False)     # fallback if pipeline_mode is unsupported

    return jnp.transpose(out_nlc[:, :L, :cout], (0, 2, 1))   # back to NCL


# ---------------- pure-JAX reference (for correctness check) ----------------
def _ref_forward(x, w1, bn1, w2, bn2):
    def conv(x, w):
        return jax.lax.conv_general_dilated(
            x, w, window_strides=(1,), padding=((PAD, PAD),),
            dimension_numbers=('NCH', 'OIH', 'NCH'))

    def bn(y, p):
        g, b, m, v = p
        return ((y - m[None, :, None]) / jnp.sqrt(v[None, :, None] + BN_EPS)
                * g[None, :, None] + b[None, :, None])

    out = jax.nn.relu(bn(conv(x, w1), bn1))
    out = bn(conv(out, w2), bn2)
    return jax.nn.relu(out + x)


if __name__ == "__main__":
    key = jax.random.PRNGKey(0)
    kx, kw1, kw2, kx2 = jax.random.split(key, 4)

    # ---- small shape matching the module defaults: N=2, C=4, L=16 ----------
    N, C, L = 2, 4, 16
    x = jax.random.normal(kx, (N, C, L), dtype=jnp.float32)
    w1 = 0.1 * jax.random.normal(kw1, (C, C, KSIZE), dtype=jnp.float32)
    w2 = 0.1 * jax.random.normal(kw2, (C, C, KSIZE), dtype=jnp.float32)

    idx = jnp.arange(C, dtype=jnp.float32)
    bn1 = (1.0 + 0.1 * idx, 0.05 * idx, 0.02 * idx, 1.0 + 0.2 * idx)
    bn2 = (1.0 - 0.05 * idx, -0.03 * idx, -0.01 * idx, 0.5 + 0.1 * idx)

    ref = _ref_forward(x, w1, bn1, w2, bn2)

    # f32 path: tight check against reference
    out_f32 = basic_block_1d(x, w1, bn1, w2, bn2, compute_dtype=jnp.float32)
    out_f32 = jax.block_until_ready(out_f32)
    assert out_f32.shape == (N, C, L)
    assert jnp.allclose(out_f32, ref, atol=1e-4, rtol=1e-4), \
        f"f32 max abs err {jnp.max(jnp.abs(out_f32 - ref))}"

    # default (bf16) path: loose check (x / weights / h / output stored bf16)
    out_bf = basic_block_1d(x, w1, bn1, w2, bn2)
    out_bf = jax.block_until_ready(out_bf)
    assert jnp.allclose(out_bf.astype(jnp.float32), ref, atol=1e-1, rtol=1e-1), \
        f"bf16 max abs err {jnp.max(jnp.abs(out_bf.astype(jnp.float32) - ref))}"

    # ---- multi-tile case to exercise halo blocks + boundary masking --------
    L2 = 70
    x2 = jax.random.normal(kx2, (N, C, L2), dtype=jnp.float32)
    ref2 = _ref_forward(x2, w1, bn1, w2, bn2)
    out2 = basic_block_1d(x2, w1, bn1, w2, bn2,
                          compute_dtype=jnp.float32, l_tile=32)
    out2 = jax.block_until_ready(out2)
    assert out2.shape == (N, C, L2)
    assert jnp.allclose(out2, ref2, atol=1e-4, rtol=1e-4), \
        f"multi-tile f32 max abs err {jnp.max(jnp.abs(out2 - ref2))}"

    print("KERNEL_OK")
</pallas_src>

<mosaic_0001>
module attributes {stable_mosaic.version = 11 : i64} {
  func.func @kernel(%arg0: i32, %arg1: i32, %arg2: memref<1x16x128xf32, #tpu.memory_space<vmem>>, %arg3: memref<1x16x128xf32, #tpu.memory_space<vmem>>, %arg4: memref<1x16x128xf32, #tpu.memory_space<vmem>>, %arg5: memref<7x128x128xf32, #tpu.memory_space<vmem>>, %arg6: memref<1x128xf32, #tpu.memory_space<vmem>>, %arg7: memref<7x128x128xf32, #tpu.memory_space<vmem>>, %arg8: memref<1x128xf32, #tpu.memory_space<vmem>>, %arg9: memref<1x16x128xf32, #tpu.memory_space<vmem>>, %arg10: memref<48x128xf32, #tpu.memory_space<vmem>>, %arg11: memref<22x128xf32, #tpu.memory_space<vmem>>) attributes {dimension_semantics = [#tpu.dimension_semantics<parallel>, #tpu.dimension_semantics<parallel>], iteration_bounds = array<i64: 2, 1>, scalar_prefetch = 0 : i64, scratch_operands = 2 : i64, tpu.core_type = #tpu.core_type<tc>, window_params = [{transform_indices = @transform_0, window_bounds = array<i64: 1, 16, 128>}, {transform_indices = @transform_1, window_bounds = array<i64: 1, 16, 128>}, {transform_indices = @transform_2, window_bounds = array<i64: 1, 16, 128>}, {pipeline_mode = #tpu.pipeline_mode<synchronous>, transform_indices = @transform_3, window_bounds = array<i64: 7, 128, 128>}, {pipeline_mode = #tpu.pipeline_mode<synchronous>, transform_indices = @transform_4, window_bounds = array<i64: 1, 128>}, {pipeline_mode = #tpu.pipeline_mode<synchronous>, transform_indices = @transform_5, window_bounds = array<i64: 7, 128, 128>}, {pipeline_mode = #tpu.pipeline_mode<synchronous>, transform_indices = @transform_6, window_bounds = array<i64: 1, 128>}, {transform_indices = @transform_7, window_bounds = array<i64: 1, 16, 128>}]} {
    %c0 = arith.constant 0 : index
    %c10 = arith.constant 10 : index
    %c0_0 = arith.constant 0 : index
    %0 = vector.load %arg2[%c0, %c10, %c0_0] : memref<1x16x128xf32, #tpu.memory_space<vmem>>, vector<1x6x128xf32>
    %1 = vector.shape_cast %0 : vector<1x6x128xf32> to vector<6x128xf32>
    %c10_1 = arith.constant 10 : index
    %c0_2 = arith.constant 0 : index
    %2 = vector.load %arg10[%c10_1, %c0_2] : memref<48x128xf32, #tpu.memory_space<vmem>>, vector<6x128xf32>
    tpu.vector_store %arg10[%c10_1, %c0_2], %1 {strides = array<i32>} : memref<48x128xf32, #tpu.memory_space<vmem>>, vector<6x128xf32>,
    %c0_3 = arith.constant 0 : index
    %c0_4 = arith.constant 0 : index
    %c0_5 = arith.constant 0 : index
    %3 = vector.load %arg3[%c0_3, %c0_4, %c0_5] : memref<1x16x128xf32, #tpu.memory_space<vmem>>, vector<1x16x128xf32>
    %4 = vector.shape_cast %3 : vector<1x16x128xf32> to vector<16x128xf32>
    %c16 = arith.constant 16 : index
    %c0_6 = arith.constant 0 : index
    %5 = vector.load %arg10[%c16, %c0_6] : memref<48x128xf32, #tpu.memory_space<vmem>>, vector<16x128xf32>
    tpu.vector_store %arg10[%c16, %c0_6], %4 {strides = array<i32>} : memref<48x128xf32, #tpu.memory_space<vmem>>, vector<16x128xf32>,
    %c0_7 = arith.constant 0 : index
    %c0_8 = arith.constant 0 : index
    %c0_9 = arith.constant 0 : index
    %6 = vector.load %arg4[%c0_7, %c0_8, %c0_9] : memref<1x16x128xf32, #tpu.memory_space<vmem>>, vector<1x6x128xf32>
    %7 = vector.shape_cast %6 : vector<1x6x128xf32> to vector<6x128xf32>
    %c32 = arith.constant 32 : index
    %c0_10 = arith.constant 0 : index
    %8 = vector.load %arg10[%c32, %c0_10] : memref<48x128xf32, #tpu.memory_space<vmem>>, vector<6x128xf32>
    tpu.vector_store %arg10[%c32, %c0_10], %7 {strides = array<i32>} : memref<48x128xf32, #tpu.memory_space<vmem>>, vector<6x128xf32>,
    %c0_i32 = arith.constant 0 : i32
    %9 = arith.cmpi eq, %arg1, %c0_i32 : i32
    %10 = arith.extui %9 : i1 to i32
    %c0_i32_11 = arith.constant 0 : i32
    %11 = arith.cmpi ne, %10, %c0_i32_11 : i32
    scf.if %11 {
      %cst_105 = arith.constant 0.000000e+00 : f32
      %109 = vector.broadcast %cst_105 : f32 to vector<6x128xf32>
      %c10_106 = arith.constant 10 : index
      %c0_107 = arith.constant 0 : index
      %110 = vector.load %arg10[%c10_106, %c0_107] : memref<48x128xf32, #tpu.memory_space<vmem>>, vector<6x128xf32>
      tpu.vector_store %arg10[%c10_106, %c0_107], %109 {strides = array<i32>} : memref<48x128xf32, #tpu.memory_space<vmem>>, vector<6x128xf32>,
    } else {
    }
    %c0_i32_12 = arith.constant 0 : i32
    %12 = arith.cmpi eq, %arg1, %c0_i32_12 : i32
    %13 = arith.extui %12 : i1 to i32
    %c0_i32_13 = arith.constant 0 : i32
    %14 = arith.cmpi ne, %13, %c0_i32_13 : i32
    scf.if %14 {
      %cst_105 = arith.constant 0.000000e+00 : f32
      %109 = vector.broadcast %cst_105 : f32 to vector<6x128xf32>
      %c32_106 = arith.constant 32 : index
      %c0_107 = arith.constant 0 : index
      %110 = vector.load %arg10[%c32_106, %c0_107] : memref<48x128xf32, #tpu.memory_space<vmem>>, vector<6x128xf32>
      tpu.vector_store %arg10[%c32_106, %c0_107], %109 {strides = array<i32>} : memref<48x128xf32, #tpu.memory_space<vmem>>, vector<6x128xf32>,
    } else {
    }
    %c10_14 = arith.constant 10 : index
    %c0_15 = arith.constant 0 : index
    %15 = vector.load %arg10[%c10_14, %c0_15] : memref<48x128xf32, #tpu.memory_space<vmem>>, vector<22x128xf32>
    %c0_16 = arith.constant 0 : index
    %c0_17 = arith.constant 0 : index
    %c0_18 = arith.constant 0 : index
    %16 = vector.load %arg5[%c0_16, %c0_17, %c0_18] : memref<7x128x128xf32, #tpu.memory_space<vmem>>, vector<1x128x128xf32>
    %17 = vector.shape_cast %16 : vector<1x128x128xf32> to vector<128x128xf32>
    %cst = arith.constant dense<0.000000e+00> : vector<22x128xf32>
    %18 = tpu.matmul %15, %17, %cst {dimension_numbers = #tpu.dot_dimension_numbers<[1], [0], [0], [1], [0, 0, 1, 1], [], []>} : vector<22x128xf32>, vector<128x128xf32>, vector<22x128xf32> -> vector<22x128xf32>
    %c11 = arith.constant 11 : index
    %c0_19 = arith.constant 0 : index
    %19 = vector.load %arg10[%c11, %c0_19] : memref<48x128xf32, #tpu.memory_space<vmem>>, vector<22x128xf32>
    %c1 = arith.constant 1 : index
    %c0_20 = arith.constant 0 : index
    %c0_21 = arith.constant 0 : index
    %20 = vector.load %arg5[%c1, %c0_20, %c0_21] : memref<7x128x128xf32, #tpu.memory_space<vmem>>, vector<1x128x128xf32>
    %21 = vector.shape_cast %20 : vector<1x128x128xf32> to vector<128x128xf32>
    %cst_22 = arith.constant dense<0.000000e+00> : vector<22x128xf32>
    %22 = tpu.matmul %19, %21, %cst_22 {dimension_numbers = #tpu.dot_dimension_numbers<[1], [0], [0], [1], [0, 0, 1, 1], [], []>} : vector<22x128xf32>, vector<128x128xf32>, vector<22x128xf32> -> vector<22x128xf32>
    %23 = arith.addf %18, %22 : vector<22x128xf32>
    %c12 = arith.constant 12 : index
    %c0_23 = arith.constant 0 : index
    %24 = vector.load %arg10[%c12, %c0_23] : memref<48x128xf32, #tpu.memory_space<vmem>>, vector<22x128xf32>
    %c2 = arith.constant 2 : index
    %c0_24 = arith.constant 0 : index
    %c0_25 = arith.constant 0 : index
    %25 = vector.load %arg5[%c2, %c0_24, %c0_25] : memref<7x128x128xf32, #tpu.memory_space<vmem>>, vector<1x128x128xf32>
    %26 = vector.shape_cast %25 : vector<1x128x128xf32> to vector<128x128xf32>
    %cst_26 = arith.constant dense<0.000000e+00> : vector<22x128xf32>
    %27 = tpu.matmul %24, %26, %cst_26 {dimension_numbers = #tpu.dot_dimension_numbers<[1], [0], [0], [1], [0, 0, 1, 1], [], []>} : vector<22x128xf32>, vector<128x128xf32>, vector<22x128xf32> -> vector<22x128xf32>
    %28 = arith.addf %23, %27 : vector<22x128xf32>
    %c13 = arith.constant 13 : index
    %c0_27 = arith.constant 0 : index
    %29 = vector.load %arg10[%c13, %c0_27] : memref<48x128xf32, #tpu.memory_space<vmem>>, vector<22x128xf32>
    %c3 = arith.constant 3 : index
    %c0_28 = arith.constant 0 : index
    %c0_29 = arith.constant 0 : index
    %30 = vector.load %arg5[%c3, %c0_28, %c0_29] : memref<7x128x128xf32, #tpu.memory_space<vmem>>, vector<1x128x128xf32>
    %31 = vector.shape_cast %30 : vector<1x128x128xf32> to vector<128x128xf32>
    %cst_30 = arith.constant dense<0.000000e+00> : vector<22x128xf32>
    %32 = tpu.matmul %29, %31, %cst_30 {dimension_numbers = #tpu.dot_dimension_numbers<[1], [0], [0], [1], [0, 0, 1, 1], [], []>} : vector<22x128xf32>, vector<128x128xf32>, vector<22x128xf32> -> vector<22x128xf32>
    %33 = arith.addf %28, %32 : vector<22x128xf32>
    %c14 = arith.constant 14 : index
    %c0_31 = arith.constant 0 : index
    %34 = vector.load %arg10[%c14, %c0_31] : memref<48x128xf32, #tpu.memory_space<vmem>>, vector<22x128xf32>
    %c4 = arith.constant 4 : index
    %c0_32 = arith.constant 0 : index
    %c0_33 = arith.constant 0 : index
    %35 = vector.load %arg5[%c4, %c0_32, %c0_33] : memref<7x128x128xf32, #tpu.memory_space<vmem>>, vector<1x128x128xf32>
    %36 = vector.shape_cast %35 : vector<1x128x128xf32> to vector<128x128xf32>
    %cst_34 = arith.constant dense<0.000000e+00> : vector<22x128xf32>
    %37 = tpu.matmul %34, %36, %cst_34 {dimension_numbers = #tpu.dot_dimension_numbers<[1], [0], [0], [1], [0, 0, 1, 1], [], []>} : vector<22x128xf32>, vector<128x128xf32>, vector<22x128xf32> -> vector<22x128xf32>
    %38 = arith.addf %33, %37 : vector<22x128xf32>
    %c15 = arith.constant 15 : index
    %c0_35 = arith.constant 0 : index
    %39 = vector.load %arg10[%c15, %c0_35] : memref<48x128xf32, #tpu.memory_space<vmem>>, vector<22x128xf32>
    %c5 = arith.constant 5 : index
    %c0_36 = arith.constant 0 : index
    %c0_37 = arith.constant 0 : index
    %40 = vector.load %arg5[%c5, %c0_36, %c0_37] : memref<7x128x128xf32, #tpu.memory_space<vmem>>, vector<1x128x128xf32>
    %41 = vector.shape_cast %40 : vector<1x128x128xf32> to vector<128x128xf32>
    %cst_38 = arith.constant dense<0.000000e+00> : vector<22x128xf32>
    %42 = tpu.matmul %39, %41, %cst_38 {dimension_numbers = #tpu.dot_dimension_numbers<[1], [0], [0], [1], [0, 0, 1, 1], [], []>} : vector<22x128xf32>, vector<128x128xf32>, vector<22x128xf32> -> vector<22x128xf32>
    %43 = arith.addf %38, %42 : vector<22x128xf32>
    %c16_39 = arith.constant 16 : index
    %c0_40 = arith.constant 0 : index
    %44 = vector.load %arg10[%c16_39, %c0_40] : memref<48x128xf32, #tpu.memory_space<vmem>>, vector<22x128xf32>
    %c6 = arith.constant 6 : index
    %c0_41 = arith.constant 0 : index
    %c0_42 = arith.constant 0 : index
    %45 = vector.load %arg5[%c6, %c0_41, %c0_42] : memref<7x128x128xf32, #tpu.memory_space<vmem>>, vector<1x128x128xf32>
    %46 = vector.shape_cast %45 : vector<1x128x128xf32> to vector<128x128xf32>
    %cst_43 = arith.constant dense<0.000000e+00> : vector<22x128xf32>
    %47 = tpu.matmul %44, %46, %cst_43 {dimension_numbers = #tpu.dot_dimension_numbers<[1], [0], [0], [1], [0, 0, 1, 1], [], []>} : vector<22x128xf32>, vector<128x128xf32>, vector<22x128xf32> -> vector<22x128xf32>
    %48 = arith.addf %43, %47 : vector<22x128xf32>
    %c0_44 = arith.constant 0 : index
    %c0_45 = arith.constant 0 : index
    %49 = vector.load %arg6[%c0_44, %c0_45] : memref<1x128xf32, #tpu.memory_space<vmem>>, vector<1x128xf32>
    %50 = vector.broadcast %49 : vector<1x128xf32> to vector<22x128xf32>
    %51 = arith.addf %48, %50 : vector<22x128xf32>
    %cst_46 = arith.constant 0.000000e+00 : f32
    %52 = vector.broadcast %cst_46 : f32 to vector<22x128xf32>
    %53 = arith.maximumf %51, %52 : vector<22x128xf32>
    %c0_47 = arith.constant 0 : index
    %c0_48 = arith.constant 0 : index
    %54 = vector.load %arg11[%c0_47, %c0_48] : memref<22x128xf32, #tpu.memory_space<vmem>>, vector<22x128xf32>
    tpu.vector_store %arg11[%c0_47, %c0_48], %53 {strides = array<i32>} : memref<22x128xf32, #tpu.memory_space<vmem>>, vector<22x128xf32>,
    %c0_i32_49 = arith.constant 0 : i32
    %55 = arith.cmpi eq, %arg1, %c0_i32_49 : i32
    %56 = arith.extui %55 : i1 to i32
    %c0_i32_50 = arith.constant 0 : i32
    %57 = arith.cmpi ne, %56, %c0_i32_50 : i32
    scf.if %57 {
      %cst_105 = arith.constant 0.000000e+00 : f32
      %109 = vector.broadcast %cst_105 : f32 to vector<3x128xf32>
      %c0_106 = arith.constant 0 : index
      %c0_107 = arith.constant 0 : index
      %110 = vector.load %arg11[%c0_106, %c0_107] : memref<22x128xf32, #tpu.memory_space<vmem>>, vector<3x128xf32>
      tpu.vector_store %arg11[%c0_106, %c0_107], %109 {strides = array<i32>} : memref<22x128xf32, #tpu.memory_space<vmem>>, vector<3x128xf32>,
    } else {
    }
    %c16_i32 = arith.constant 16 : i32
    %58 = arith.muli %arg1, %c16_i32 : i32
    %c16_i32_51 = arith.constant 16 : i32
    %59 = arith.addi %58, %c16_i32_51 : i32
    %c3_i32 = arith.constant 3 : i32
    %60 = arith.addi %59, %c3_i32 : i32
    %c16_i32_52 = arith.constant 16 : i32
    %61 = arith.cmpi sgt, %60, %c16_i32_52 : i32
    %62 = arith.extui %61 : i1 to i32
    %c0_i32_53 = arith.constant 0 : i32
    %63 = arith.cmpi ne, %62, %c0_i32_53 : i32
    scf.if %63 {
      %c16_i32_105 = arith.constant 16 : i32
      %109 = arith.muli %arg1, %c16_i32_105 : i32
      %c3_i32_106 = arith.constant 3 : i32
      %110 = arith.subi %109, %c3_i32_106 : i32
      %111 = tpu.iota {dimensions = array<i32: 0>} : vector<22x1xi32>
      %112 = vector.broadcast %110 : i32 to vector<22x1xi32>
      %113 = arith.addi %112, %111 : vector<22x1xi32>
      %c16_i32_107 = arith.constant 16 : i32
      %114 = vector.broadcast %c16_i32_107 : i32 to vector<22x1xi32>
      %115 = arith.cmpi slt, %113, %114 : vector<22x1xi32>
      %c0_108 = arith.constant 0 : index
      %c0_109 = arith.constant 0 : index
      %116 = vector.load %arg11[%c0_108, %c0_109] : memref<22x128xf32, #tpu.memory_space<vmem>>, vector<22x128xf32>
      %cst_110 = arith.constant 0.000000e+00 : f32
      %117 = vector.broadcast %cst_110 : f32 to vector<22x128xf32>
      %118 = vector.shape_cast %115 : vector<22x1xi1> to vector<22x1xi1>
      %119 = vector.broadcast %118 : vector<22x1xi1> to vector<22x128xi1>
      %120 = arith.select %119, %116, %117 : vector<22x128xi1>, vector<22x128xf32>
      %c0_111 = arith.constant 0 : index
      %c0_112 = arith.constant 0 : index
      %121 = vector.load %arg11[%c0_111, %c0_112] : memref<22x128xf32, #tpu.memory_space<vmem>>, vector<22x128xf32>
      tpu.vector_store %arg11[%c0_111, %c0_112], %120 {strides = array<i32>} : memref<22x128xf32, #tpu.memory_space<vmem>>, vector<22x128xf32>,
    } else {
    }
    %c0_54 = arith.constant 0 : index
    %c0_55 = arith.constant 0 : index
    %64 = vector.load %arg11[%c0_54, %c0_55] : memref<22x128xf32, #tpu.memory_space<vmem>>, vector<16x128xf32>
    %c0_56 = arith.constant 0 : index
    %c0_57 = arith.constant 0 : index
    %c0_58 = arith.constant 0 : index
    %65 = vector.load %arg7[%c0_56, %c0_57, %c0_58] : memref<7x128x128xf32, #tpu.memory_space<vmem>>, vector<1x128x128xf32>
    %66 = vector.shape_cast %65 : vector<1x128x128xf32> to vector<128x128xf32>
    %cst_59 = arith.constant dense<0.000000e+00> : vector<16x128xf32>
    %67 = tpu.matmul %64, %66, %cst_59 {dimension_numbers = #tpu.dot_dimension_numbers<[1], [0], [0], [1], [0, 0, 1, 1], [], []>} : vector<16x128xf32>, vector<128x128xf32>, vector<16x128xf32> -> vector<16x128xf32>
    %c1_60 = arith.constant 1 : index
    %c0_61 = arith.constant 0 : index
    %68 = vector.load %arg11[%c1_60, %c0_61] : memref<22x128xf32, #tpu.memory_space<vmem>>, vector<16x128xf32>
    %c1_62 = arith.constant 1 : index
    %c0_63 = arith.constant 0 : index
    %c0_64 = arith.constant 0 : index
    %69 = vector.load %arg7[%c1_62, %c0_63, %c0_64] : memref<7x128x128xf32, #tpu.memory_space<vmem>>, vector<1x128x128xf32>
    %70 = vector.shape_cast %69 : vector<1x128x128xf32> to vector<128x128xf32>
    %cst_65 = arith.constant dense<0.000000e+00> : vector<16x128xf32>
    %71 = tpu.matmul %68, %70, %cst_65 {dimension_numbers = #tpu.dot_dimension_numbers<[1], [0], [0], [1], [0, 0, 1, 1], [], []>} : vector<16x128xf32>, vector<128x128xf32>, vector<16x128xf32> -> vector<16x128xf32>
    %72 = arith.addf %67, %71 : vector<16x128xf32>
    %c2_66 = arith.constant 2 : index
    %c0_67 = arith.constant 0 : index
    %73 = vector.load %arg11[%c2_66, %c0_67] : memref<22x128xf32, #tpu.memory_space<vmem>>, vector<16x128xf32>
    %c2_68 = arith.constant 2 : index
    %c0_69 = arith.constant 0 : index
    %c0_70 = arith.constant 0 : index
    %74 = vector.load %arg7[%c2_68, %c0_69, %c0_70] : memref<7x128x128xf32, #tpu.memory_space<vmem>>, vector<1x128x128xf32>
    %75 = vector.shape_cast %74 : vector<1x128x128xf32> to vector<128x128xf32>
    %cst_71 = arith.constant dense<0.000000e+00> : vector<16x128xf32>
    %76 = tpu.matmul %73, %75, %cst_71 {dimension_numbers = #tpu.dot_dimension_numbers<[1], [0], [0], [1], [0, 0, 1, 1], [], []>} : vector<16x128xf32>, vector<128x128xf32>, vector<16x128xf32> -> vector<16x128xf32>
    %77 = arith.addf %72, %76 : vector<16x128xf32>
    %c3_72 = arith.constant 3 : index
    %c0_73 = arith.constant 0 : index
    %78 = vector.load %arg11[%c3_72, %c0_73] : memref<22x128xf32, #tpu.memory_space<vmem>>, vector<16x128xf32>
    %c3_74 = arith.constant 3 : index
    %c0_75 = arith.constant 0 : index
    %c0_76 = arith.constant 0 : index
    %79 = vector.load %arg7[%c3_74, %c0_75, %c0_76] : memref<7x128x128xf32, #tpu.memory_space<vmem>>, vector<1x128x128xf32>
    %80 = vector.shape_cast %79 : vector<1x128x128xf32> to vector<128x128xf32>
    %cst_77 = arith.constant dense<0.000000e+00> : vector<16x128xf32>
    %81 = tpu.matmul %78, %80, %cst_77 {dimension_numbers = #tpu.dot_dimension_numbers<[1], [0], [0], [1], [0, 0, 1, 1], [], []>} : vector<16x128xf32>, vector<128x128xf32>, vector<16x128xf32> -> vector<16x128xf32>
    %82 = arith.addf %77, %81 : vector<16x128xf32>
    %c4_78 = arith.constant 4 : index
    %c0_79 = arith.constant 0 : index
    %83 = vector.load %arg11[%c4_78, %c0_79] : memref<22x128xf32, #tpu.memory_space<vmem>>, vector<16x128xf32>
    %c4_80 = arith.constant 4 : index
    %c0_81 = arith.constant 0 : index
    %c0_82 = arith.constant 0 : index
    %84 = vector.load %arg7[%c4_80, %c0_81, %c0_82] : memref<7x128x128xf32, #tpu.memory_space<vmem>>, vector<1x128x128xf32>
    %85 = vector.shape_cast %84 : vector<1x128x128xf32> to vector<128x128xf32>
    %cst_83 = arith.constant dense<0.000000e+00> : vector<16x128xf32>
    %86 = tpu.matmul %83, %85, %cst_83 {dimension_numbers = #tpu.dot_dimension_numbers<[1], [0], [0], [1], [0, 0, 1, 1], [], []>} : vector<16x128xf32>, vector<128x128xf32>, vector<16x128xf32> -> vector<16x128xf32>
    %87 = arith.addf %82, %86 : vector<16x128xf32>
    %c5_84 = arith.constant 5 : index
    %c0_85 = arith.constant 0 : index
    %88 = vector.load %arg11[%c5_84, %c0_85] : memref<22x128xf32, #tpu.memory_space<vmem>>, vector<16x128xf32>
    %c5_86 = arith.constant 5 : index
    %c0_87 = arith.constant 0 : index
    %c0_88 = arith.constant 0 : index
    %89 = vector.load %arg7[%c5_86, %c0_87, %c0_88] : memref<7x128x128xf32, #tpu.memory_space<vmem>>, vector<1x128x128xf32>
    %90 = vector.shape_cast %89 : vector<1x128x128xf32> to vector<128x128xf32>
    %cst_89 = arith.constant dense<0.000000e+00> : vector<16x128xf32>
    %91 = tpu.matmul %88, %90, %cst_89 {dimension_numbers = #tpu.dot_dimension_numbers<[1], [0], [0], [1], [0, 0, 1, 1], [], []>} : vector<16x128xf32>, vector<128x128xf32>, vector<16x128xf32> -> vector<16x128xf32>
    %92 = arith.addf %87, %91 : vector<16x128xf32>
    %c6_90 = arith.constant 6 : index
    %c0_91 = arith.constant 0 : index
    %93 = vector.load %arg11[%c6_90, %c0_91] : memref<22x128xf32, #tpu.memory_space<vmem>>, vector<16x128xf32>
    %c6_92 = arith.constant 6 : index
    %c0_93 = arith.constant 0 : index
    %c0_94 = arith.constant 0 : index
    %94 = vector.load %arg7[%c6_92, %c0_93, %c0_94] : memref<7x128x128xf32, #tpu.memory_space<vmem>>, vector<1x128x128xf32>
    %95 = vector.shape_cast %94 : vector<1x128x128xf32> to vector<128x128xf32>
    %cst_95 = arith.constant dense<0.000000e+00> : vector<16x128xf32>
    %96 = tpu.matmul %93, %95, %cst_95 {dimension_numbers = #tpu.dot_dimension_numbers<[1], [0], [0], [1], [0, 0, 1, 1], [], []>} : vector<16x128xf32>, vector<128x128xf32>, vector<16x128xf32> -> vector<16x128xf32>
    %97 = arith.addf %92, %96 : vector<16x128xf32>
    %c0_96 = arith.constant 0 : index
    %c0_97 = arith.constant 0 : index
    %98 = vector.load %arg8[%c0_96, %c0_97] : memref<1x128xf32, #tpu.memory_space<vmem>>, vector<1x128xf32>
    %99 = vector.broadcast %98 : vector<1x128xf32> to vector<16x128xf32>
    %100 = arith.addf %97, %99 : vector<16x128xf32>
    %c0_98 = arith.constant 0 : index
    %c0_99 = arith.constant 0 : index
    %c0_100 = arith.constant 0 : index
    %101 = vector.load %arg3[%c0_98, %c0_99, %c0_100] : memref<1x16x128xf32, #tpu.memory_space<vmem>>, vector<1x16x128xf32>
    %102 = vector.shape_cast %101 : vector<1x16x128xf32> to vector<16x128xf32>
    %103 = arith.addf %100, %102 : vector<16x128xf32>
    %cst_101 = arith.constant 0.000000e+00 : f32
    %104 = vector.broadcast %cst_101 : f32 to vector<16x128xf32>
    %105 = arith.maximumf %103, %104 : vector<16x128xf32>
    %c0_102 = arith.constant 0 : index
    %c0_103 = arith.constant 0 : index
    %c0_104 = arith.constant 0 : index
    %106 = vector.load %arg9[%c0_102, %c0_103, %c0_104] : memref<1x16x128xf32, #tpu.memory_space<vmem>>, vector<1x16x128xf32>
    %107 = vector.shape_cast %106 : vector<1x16x128xf32> to vector<16x128xf32>
    %108 = vector.shape_cast %105 : vector<16x128xf32> to vector<1x16x128xf32>
    tpu.vector_store %arg9[%c0_102, %c0_103, %c0_104], %108 {strides = array<i32>} : memref<1x16x128xf32, #tpu.memory_space<vmem>>, vector<1x16x128xf32>,
    return
  }
  func.func @transform_0(%arg0: i32, %arg1: i32) -> (i32, i32, i32) {
    %c1_i32 = arith.constant 1 : i32
    %0 = arith.muli %arg1, %c1_i32 : i32
    %c1_i32_0 = arith.constant 1 : i32
    %1 = arith.subi %0, %c1_i32_0 : i32
    %c0_i32 = arith.constant 0 : i32
    %2 = arith.maxsi %1, %c0_i32 : i32
    %c0_i32_1 = arith.constant 0 : i32
    %c0_i32_2 = arith.constant 0 : i32
    return %arg0, %2, %c0_i32_1 : i32, i32, i32
  }
  func.func @transform_1(%arg0: i32, %arg1: i32) -> (i32, i32, i32) {
    %c0_i32 = arith.constant 0 : i32
    %c0_i32_0 = arith.constant 0 : i32
    return %arg0, %arg1, %c0_i32 : i32, i32, i32
  }
  func.func @transform_2(%arg0: i32, %arg1: i32) -> (i32, i32, i32) {
    %c1_i32 = arith.constant 1 : i32
    %0 = arith.addi %arg1, %c1_i32 : i32
    %c1_i32_0 = arith.constant 1 : i32
    %1 = arith.muli %0, %c1_i32_0 : i32
    %c0_i32 = arith.constant 0 : i32
    %2 = arith.minsi %1, %c0_i32 : i32
    %c0_i32_1 = arith.constant 0 : i32
    %c0_i32_2 = arith.constant 0 : i32
    return %arg0, %2, %c0_i32_1 : i32, i32, i32
  }
  func.func @transform_3(%arg0: i32, %arg1: i32) -> (i32, i32, i32) {
    %c0_i32 = arith.constant 0 : i32
    %c0_i32_0 = arith.constant 0 : i32
    %c0_i32_1 = arith.constant 0 : i32
    %c0_i32_2 = arith.constant 0 : i32
    return %c0_i32, %c0_i32_0, %c0_i32_1 : i32, i32, i32
  }
  func.func @transform_4(%arg0: i32, %arg1: i32) -> (i32, i32) {
    %c0_i32 = arith.constant 0 : i32
    %c0_i32_0 = arith.constant 0 : i32
    %c0_i32_1 = arith.constant 0 : i32
    return %c0_i32, %c0_i32_0 : i32, i32
  }
  func.func @transform_5(%arg0: i32, %arg1: i32) -> (i32, i32, i32) {
    %c0_i32 = arith.constant 0 : i32
    %c0_i32_0 = arith.constant 0 : i32
    %c0_i32_1 = arith.constant 0 : i32
    %c0_i32_2 = arith.constant 0 : i32
    return %c0_i32, %c0_i32_0, %c0_i32_1 : i32, i32, i32
  }
  func.func @transform_6(%arg0: i32, %arg1: i32) -> (i32, i32) {
    %c0_i32 = arith.constant 0 : i32
    %c0_i32_0 = arith.constant 0 : i32
    %c0_i32_1 = arith.constant 0 : i32
    return %c0_i32, %c0_i32_0 : i32, i32
  }
  func.func @transform_7(%arg0: i32, %arg1: i32) -> (i32, i32, i32) {
    %c0_i32 = arith.constant 0 : i32
    %c0_i32_0 = arith.constant 0 : i32
    return %arg0, %arg1, %c0_i32 : i32, i32, i32
  }
}

module attributes {stable_mosaic.version = 11 : i64} {
  func.func @kernel(%arg0: i32, %arg1: i32, %arg2: memref<1x16x128xf32, #tpu.memory_space<vmem>>, %arg3: memref<1x16x128xf32, #tpu.memory_space<vmem>>, %arg4: memref<1x16x128xf32, #tpu.memory_space<vmem>>, %arg5: memref<7x128x128xf32, #tpu.memory_space<vmem>>, %arg6: memref<1x128xf32, #tpu.memory_space<vmem>>, %arg7: memref<7x128x128xf32, #tpu.memory_space<vmem>>, %arg8: memref<1x128xf32, #tpu.memory_space<vmem>>, %arg9: memref<1x16x128xf32, #tpu.memory_space<vmem>>, %arg10: memref<48x128xf32, #tpu.memory_space<vmem>>, %arg11: memref<22x128xf32, #tpu.memory_space<vmem>>) attributes {dimension_semantics = [#tpu.dimension_semantics<parallel>, #tpu.dimension_semantics<parallel>], iteration_bounds = array<i64: 2, 1>, scalar_prefetch = 0 : i64, scratch_operands = 2 : i64, tpu.core_type = #tpu.core_type<tc>, window_params = [{transform_indices = @transform_0, window_bounds = array<i64: 1, 16, 128>}, {transform_indices = @transform_1, window_bounds = array<i64: 1, 16, 128>}, {transform_indices = @transform_2, window_bounds = array<i64: 1, 16, 128>}, {pipeline_mode = #tpu.pipeline_mode<synchronous>, transform_indices = @transform_3, window_bounds = array<i64: 7, 128, 128>}, {pipeline_mode = #tpu.pipeline_mode<synchronous>, transform_indices = @transform_4, window_bounds = array<i64: 1, 128>}, {pipeline_mode = #tpu.pipeline_mode<synchronous>, transform_indices = @transform_5, window_bounds = array<i64: 7, 128, 128>}, {pipeline_mode = #tpu.pipeline_mode<synchronous>, transform_indices = @transform_6, window_bounds = array<i64: 1, 128>}, {transform_indices = @transform_7, window_bounds = array<i64: 1, 16, 128>}]} {
    %c0 = arith.constant 0 : index
    %c10 = arith.constant 10 : index
    %c0_0 = arith.constant 0 : index
    %0 = vector.load %arg2[%c0, %c10, %c0_0] : memref<1x16x128xf32, #tpu.memory_space<vmem>>, vector<1x6x128xf32>
    %1 = vector.shape_cast %0 : vector<1x6x128xf32> to vector<6x128xf32>
    %c10_1 = arith.constant 10 : index
    %c0_2 = arith.constant 0 : index
    %2 = vector.load %arg10[%c10_1, %c0_2] : memref<48x128xf32, #tpu.memory_space<vmem>>, vector<6x128xf32>
    tpu.vector_store %arg10[%c10_1, %c0_2], %1 {strides = array<i32>} : memref<48x128xf32, #tpu.memory_space<vmem>>, vector<6x128xf32>,
    %c0_3 = arith.constant 0 : index
    %c0_4 = arith.constant 0 : index
    %c0_5 = arith.constant 0 : index
    %3 = vector.load %arg3[%c0_3, %c0_4, %c0_5] : memref<1x16x128xf32, #tpu.memory_space<vmem>>, vector<1x16x128xf32>
    %4 = vector.shape_cast %3 : vector<1x16x128xf32> to vector<16x128xf32>
    %c16 = arith.constant 16 : index
    %c0_6 = arith.constant 0 : index
    %5 = vector.load %arg10[%c16, %c0_6] : memref<48x128xf32, #tpu.memory_space<vmem>>, vector<16x128xf32>
    tpu.vector_store %arg10[%c16, %c0_6], %4 {strides = array<i32>} : memref<48x128xf32, #tpu.memory_space<vmem>>, vector<16x128xf32>,
    %c0_7 = arith.constant 0 : index
    %c0_8 = arith.constant 0 : index
    %c0_9 = arith.constant 0 : index
    %6 = vector.load %arg4[%c0_7, %c0_8, %c0_9] : memref<1x16x128xf32, #tpu.memory_space<vmem>>, vector<1x6x128xf32>
    %7 = vector.shape_cast %6 : vector<1x6x128xf32> to vector<6x128xf32>
    %c32 = arith.constant 32 : index
    %c0_10 = arith.constant 0 : index
    %8 = vector.load %arg10[%c32, %c0_10] : memref<48x128xf32, #tpu.memory_space<vmem>>, vector<6x128xf32>
    tpu.vector_store %arg10[%c32, %c0_10], %7 {strides = array<i32>} : memref<48x128xf32, #tpu.memory_space<vmem>>, vector<6x128xf32>,
    %c0_i32 = arith.constant 0 : i32
    %9 = arith.cmpi eq, %arg1, %c0_i32 : i32
    %10 = arith.extui %9 : i1 to i32
    %c0_i32_11 = arith.constant 0 : i32
    %11 = arith.cmpi ne, %10, %c0_i32_11 : i32
    scf.if %11 {
      %cst_105 = arith.constant 0.000000e+00 : f32
      %109 = vector.broadcast %cst_105 : f32 to vector<6x128xf32>
      %c10_106 = arith.constant 10 : index
      %c0_107 = arith.constant 0 : index
      %110 = vector.load %arg10[%c10_106, %c0_107] : memref<48x128xf32, #tpu.memory_space<vmem>>, vector<6x128xf32>
      tpu.vector_store %arg10[%c10_106, %c0_107], %109 {strides = array<i32>} : memref<48x128xf32, #tpu.memory_space<vmem>>, vector<6x128xf32>,
    } else {
    }
    %c0_i32_12 = arith.constant 0 : i32
    %12 = arith.cmpi eq, %arg1, %c0_i32_12 : i32
    %13 = arith.extui %12 : i1 to i32
    %c0_i32_13 = arith.constant 0 : i32
    %14 = arith.cmpi ne, %13, %c0_i32_13 : i32
    scf.if %14 {
      %cst_105 = arith.constant 0.000000e+00 : f32
      %109 = vector.broadcast %cst_105 : f32 to vector<6x128xf32>
      %c32_106 = arith.constant 32 : index
      %c0_107 = arith.constant 0 : index
      %110 = vector.load %arg10[%c32_106, %c0_107] : memref<48x128xf32, #tpu.memory_space<vmem>>, vector<6x128xf32>
      tpu.vector_store %arg10[%c32_106, %c0_107], %109 {strides = array<i32>} : memref<48x128xf32, #tpu.memory_space<vmem>>, vector<6x128xf32>,
    } else {
    }
    %c10_14 = arith.constant 10 : index
    %c0_15 = arith.constant 0 : index
    %15 = vector.load %arg10[%c10_14, %c0_15] : memref<48x128xf32, #tpu.memory_space<vmem>>, vector<22x128xf32>
    %c0_16 = arith.constant 0 : index
    %c0_17 = arith.constant 0 : index
    %c0_18 = arith.constant 0 : index
    %16 = vector.load %arg5[%c0_16, %c0_17, %c0_18] : memref<7x128x128xf32, #tpu.memory_space<vmem>>, vector<1x128x128xf32>
    %17 = vector.shape_cast %16 : vector<1x128x128xf32> to vector<128x128xf32>
    %cst = arith.constant dense<0.000000e+00> : vector<22x128xf32>
    %18 = tpu.matmul %15, %17, %cst {dimension_numbers = #tpu.dot_dimension_numbers<[1], [0], [0], [1], [0, 0, 1, 1], [], []>} : vector<22x128xf32>, vector<128x128xf32>, vector<22x128xf32> -> vector<22x128xf32>
    %c11 = arith.constant 11 : index
    %c0_19 = arith.constant 0 : index
    %19 = vector.load %arg10[%c11, %c0_19] : memref<48x128xf32, #tpu.memory_space<vmem>>, vector<22x128xf32>
    %c1 = arith.constant 1 : index
    %c0_20 = arith.constant 0 : index
    %c0_21 = arith.constant 0 : index
    %20 = vector.load %arg5[%c1, %c0_20, %c0_21] : memref<7x128x128xf32, #tpu.memory_space<vmem>>, vector<1x128x128xf32>
    %21 = vector.shape_cast %20 : vector<1x128x128xf32> to vector<128x128xf32>
    %cst_22 = arith.constant dense<0.000000e+00> : vector<22x128xf32>
    %22 = tpu.matmul %19, %21, %cst_22 {dimension_numbers = #tpu.dot_dimension_numbers<[1], [0], [0], [1], [0, 0, 1, 1], [], []>} : vector<22x128xf32>, vector<128x128xf32>, vector<22x128xf32> -> vector<22x128xf32>
    %23 = arith.addf %18, %22 : vector<22x128xf32>
    %c12 = arith.constant 12 : index
    %c0_23 = arith.constant 0 : index
    %24 = vector.load %arg10[%c12, %c0_23] : memref<48x128xf32, #tpu.memory_space<vmem>>, vector<22x128xf32>
    %c2 = arith.constant 2 : index
    %c0_24 = arith.constant 0 : index
    %c0_25 = arith.constant 0 : index
    %25 = vector.load %arg5[%c2, %c0_24, %c0_25] : memref<7x128x128xf32, #tpu.memory_space<vmem>>, vector<1x128x128xf32>
    %26 = vector.shape_cast %25 : vector<1x128x128xf32> to vector<128x128xf32>
    %cst_26 = arith.constant dense<0.000000e+00> : vector<22x128xf32>
    %27 = tpu.matmul %24, %26, %cst_26 {dimension_numbers = #tpu.dot_dimension_numbers<[1], [0], [0], [1], [0, 0, 1, 1], [], []>} : vector<22x128xf32>, vector<128x128xf32>, vector<22x128xf32> -> vector<22x128xf32>
    %28 = arith.addf %23, %27 : vector<22x128xf32>
    %c13 = arith.constant 13 : index
    %c0_27 = arith.constant 0 : index
    %29 = vector.load %arg10[%c13, %c0_27] : memref<48x128xf32, #tpu.memory_space<vmem>>, vector<22x128xf32>
    %c3 = arith.constant 3 : index
    %c0_28 = arith.constant 0 : index
    %c0_29 = arith.constant 0 : index
    %30 = vector.load %arg5[%c3, %c0_28, %c0_29] : memref<7x128x128xf32, #tpu.memory_space<vmem>>, vector<1x128x128xf32>
    %31 = vector.shape_cast %30 : vector<1x128x128xf32> to vector<128x128xf32>
    %cst_30 = arith.constant dense<0.000000e+00> : vector<22x128xf32>
    %32 = tpu.matmul %29, %31, %cst_30 {dimension_numbers = #tpu.dot_dimension_numbers<[1], [0], [0], [1], [0, 0, 1, 1], [], []>} : vector<22x128xf32>, vector<128x128xf32>, vector<22x128xf32> -> vector<22x128xf32>
    %33 = arith.addf %28, %32 : vector<22x128xf32>
    %c14 = arith.constant 14 : index
    %c0_31 = arith.constant 0 : index
    %34 = vector.load %arg10[%c14, %c0_31] : memref<48x128xf32, #tpu.memory_space<vmem>>, vector<22x128xf32>
    %c4 = arith.constant 4 : index
    %c0_32 = arith.constant 0 : index
    %c0_33 = arith.constant 0 : index
    %35 = vector.load %arg5[%c4, %c0_32, %c0_33] : memref<7x128x128xf32, #tpu.memory_space<vmem>>, vector<1x128x128xf32>
    %36 = vector.shape_cast %35 : vector<1x128x128xf32> to vector<128x128xf32>
    %cst_34 = arith.constant dense<0.000000e+00> : vector<22x128xf32>
    %37 = tpu.matmul %34, %36, %cst_34 {dimension_numbers = #tpu.dot_dimension_numbers<[1], [0], [0], [1], [0, 0, 1, 1], [], []>} : vector<22x128xf32>, vector<128x128xf32>, vector<22x128xf32> -> vector<22x128xf32>
    %38 = arith.addf %33, %37 : vector<22x128xf32>
    %c15 = arith.constant 15 : index
    %c0_35 = arith.constant 0 : index
    %39 = vector.load %arg10[%c15, %c0_35] : memref<48x128xf32, #tpu.memory_space<vmem>>, vector<22x128xf32>
    %c5 = arith.constant 5 : index
    %c0_36 = arith.constant 0 : index
    %c0_37 = arith.constant 0 : index
    %40 = vector.load %arg5[%c5, %c0_36, %c0_37] : memref<7x128x128xf32, #tpu.memory_space<vmem>>, vector<1x128x128xf32>
    %41 = vector.shape_cast %40 : vector<1x128x128xf32> to vector<128x128xf32>
    %cst_38 = arith.constant dense<0.000000e+00> : vector<22x128xf32>
    %42 = tpu.matmul %39, %41, %cst_38 {dimension_numbers = #tpu.dot_dimension_numbers<[1], [0], [0], [1], [0, 0, 1, 1], [], []>} : vector<22x128xf32>, vector<128x128xf32>, vector<22x128xf32> -> vector<22x128xf32>
    %43 = arith.addf %38, %42 : vector<22x128xf32>
    %c16_39 = arith.constant 16 : index
    %c0_40 = arith.constant 0 : index
    %44 = vector.load %arg10[%c16_39, %c0_40] : memref<48x128xf32, #tpu.memory_space<vmem>>, vector<22x128xf32>
    %c6 = arith.constant 6 : index
    %c0_41 = arith.constant 0 : index
    %c0_42 = arith.constant 0 : index
    %45 = vector.load %arg5[%c6, %c0_41, %c0_42] : memref<7x128x128xf32, #tpu.memory_space<vmem>>, vector<1x128x128xf32>
    %46 = vector.shape_cast %45 : vector<1x128x128xf32> to vector<128x128xf32>
    %cst_43 = arith.constant dense<0.000000e+00> : vector<22x128xf32>
    %47 = tpu.matmul %44, %46, %cst_43 {dimension_numbers = #tpu.dot_dimension_numbers<[1], [0], [0], [1], [0, 0, 1, 1], [], []>} : vector<22x128xf32>, vector<128x128xf32>, vector<22x128xf32> -> vector<22x128xf32>
    %48 = arith.addf %43, %47 : vector<22x128xf32>
    %c0_44 = arith.constant 0 : index
    %c0_45 = arith.constant 0 : index
    %49 = vector.load %arg6[%c0_44, %c0_45] : memref<1x128xf32, #tpu.memory_space<vmem>>, vector<1x128xf32>
    %50 = vector.broadcast %49 : vector<1x128xf32> to vector<22x128xf32>
    %51 = arith.addf %48, %50 : vector<22x128xf32>
    %cst_46 = arith.constant 0.000000e+00 : f32
    %52 = vector.broadcast %cst_46 : f32 to vector<22x128xf32>
    %53 = arith.maximumf %51, %52 : vector<22x128xf32>
    %c0_47 = arith.constant 0 : index
    %c0_48 = arith.constant 0 : index
    %54 = vector.load %arg11[%c0_47, %c0_48] : memref<22x128xf32, #tpu.memory_space<vmem>>, vector<22x128xf32>
    tpu.vector_store %arg11[%c0_47, %c0_48], %53 {strides = array<i32>} : memref<22x128xf32, #tpu.memory_space<vmem>>, vector<22x128xf32>,
    %c0_i32_49 = arith.constant 0 : i32
    %55 = arith.cmpi eq, %arg1, %c0_i32_49 : i32
    %56 = arith.extui %55 : i1 to i32
    %c0_i32_50 = arith.constant 0 : i32
    %57 = arith.cmpi ne, %56, %c0_i32_50 : i32
    scf.if %57 {
      %cst_105 = arith.constant 0.000000e+00 : f32
      %109 = vector.broadcast %cst_105 : f32 to vector<3x128xf32>
      %c0_106 = arith.constant 0 : index
      %c0_107 = arith.constant 0 : index
      %110 = vector.load %arg11[%c0_106, %c0_107] : memref<22x128xf32, #tpu.memory_space<vmem>>, vector<3x128xf32>
      tpu.vector_store %arg11[%c0_106, %c0_107], %109 {strides = array<i32>} : memref<22x128xf32, #tpu.memory_space<vmem>>, vector<3x128xf32>,
    } else {
    }
    %c16_i32 = arith.constant 16 : i32
    %58 = arith.muli %arg1, %c16_i32 : i32
    %c16_i32_51 = arith.constant 16 : i32
    %59 = arith.addi %58, %c16_i32_51 : i32
    %c3_i32 = arith.constant 3 : i32
    %60 = arith.addi %59, %c3_i32 : i32
    %c16_i32_52 = arith.constant 16 : i32
    %61 = arith.cmpi sgt, %60, %c16_i32_52 : i32
    %62 = arith.extui %61 : i1 to i32
    %c0_i32_53 = arith.constant 0 : i32
    %63 = arith.cmpi ne, %62, %c0_i32_53 : i32
    scf.if %63 {
      %c16_i32_105 = arith.constant 16 : i32
      %109 = arith.muli %arg1, %c16_i32_105 : i32
      %c3_i32_106 = arith.constant 3 : i32
      %110 = arith.subi %109, %c3_i32_106 : i32
      %111 = tpu.iota {dimensions = array<i32: 0>} : vector<22x1xi32>
      %112 = vector.broadcast %110 : i32 to vector<22x1xi32>
      %113 = arith.addi %112, %111 : vector<22x1xi32>
      %c16_i32_107 = arith.constant 16 : i32
      %114 = vector.broadcast %c16_i32_107 : i32 to vector<22x1xi32>
      %115 = arith.cmpi slt, %113, %114 : vector<22x1xi32>
      %c0_108 = arith.constant 0 : index
      %c0_109 = arith.constant 0 : index
      %116 = vector.load %arg11[%c0_108, %c0_109] : memref<22x128xf32, #tpu.memory_space<vmem>>, vector<22x128xf32>
      %cst_110 = arith.constant 0.000000e+00 : f32
      %117 = vector.broadcast %cst_110 : f32 to vector<22x128xf32>
      %118 = vector.shape_cast %115 : vector<22x1xi1> to vector<22x1xi1>
      %119 = vector.broadcast %118 : vector<22x1xi1> to vector<22x128xi1>
      %120 = arith.select %119, %116, %117 : vector<22x128xi1>, vector<22x128xf32>
      %c0_111 = arith.constant 0 : index
      %c0_112 = arith.constant 0 : index
      %121 = vector.load %arg11[%c0_111, %c0_112] : memref<22x128xf32, #tpu.memory_space<vmem>>, vector<22x128xf32>
      tpu.vector_store %arg11[%c0_111, %c0_112], %120 {strides = array<i32>} : memref<22x128xf32, #tpu.memory_space<vmem>>, vector<22x128xf32>,
    } else {
    }
    %c0_54 = arith.constant 0 : index
    %c0_55 = arith.constant 0 : index
    %64 = vector.load %arg11[%c0_54, %c0_55] : memref<22x128xf32, #tpu.memory_space<vmem>>, vector<16x128xf32>
    %c0_56 = arith.constant 0 : index
    %c0_57 = arith.constant 0 : index
    %c0_58 = arith.constant 0 : index
    %65 = vector.load %arg7[%c0_56, %c0_57, %c0_58] : memref<7x128x128xf32, #tpu.memory_space<vmem>>, vector<1x128x128xf32>
    %66 = vector.shape_cast %65 : vector<1x128x128xf32> to vector<128x128xf32>
    %cst_59 = arith.constant dense<0.000000e+00> : vector<16x128xf32>
    %67 = tpu.matmul %64, %66, %cst_59 {dimension_numbers = #tpu.dot_dimension_numbers<[1], [0], [0], [1], [0, 0, 1, 1], [], []>} : vector<16x128xf32>, vector<128x128xf32>, vector<16x128xf32> -> vector<16x128xf32>
    %c1_60 = arith.constant 1 : index
    %c0_61 = arith.constant 0 : index
    %68 = vector.load %arg11[%c1_60, %c0_61] : memref<22x128xf32, #tpu.memory_space<vmem>>, vector<16x128xf32>
    %c1_62 = arith.constant 1 : index
    %c0_63 = arith.constant 0 : index
    %c0_64 = arith.constant 0 : index
    %69 = vector.load %arg7[%c1_62, %c0_63, %c0_64] : memref<7x128x128xf32, #tpu.memory_space<vmem>>, vector<1x128x128xf32>
    %70 = vector.shape_cast %69 : vector<1x128x128xf32> to vector<128x128xf32>
    %cst_65 = arith.constant dense<0.000000e+00> : vector<16x128xf32>
    %71 = tpu.matmul %68, %70, %cst_65 {dimension_numbers = #tpu.dot_dimension_numbers<[1], [0], [0], [1], [0, 0, 1, 1], [], []>} : vector<16x128xf32>, vector<128x128xf32>, vector<16x128xf32> -> vector<16x128xf32>
    %72 = arith.addf %67, %71 : vector<16x128xf32>
    %c2_66 = arith.constant 2 : index
    %c0_67 = arith.constant 0 : index
    %73 = vector.load %arg11[%c2_66, %c0_67] : memref<22x128xf32, #tpu.memory_space<vmem>>, vector<16x128xf32>
    %c2_68 = arith.constant 2 : index
    %c0_69 = arith.constant 0 : index
    %c0_70 = arith.constant 0 : index
    %74 = vector.load %arg7[%c2_68, %c0_69, %c0_70] : memref<7x128x128xf32, #tpu.memory_space<vmem>>, vector<1x128x128xf32>
    %75 = vector.shape_cast %74 : vector<1x128x128xf32> to vector<128x128xf32>
    %cst_71 = arith.constant dense<0.000000e+00> : vector<16x128xf32>
    %76 = tpu.matmul %73, %75, %cst_71 {dimension_numbers = #tpu.dot_dimension_numbers<[1], [0], [0], [1], [0, 0, 1, 1], [], []>} : vector<16x128xf32>, vector<128x128xf32>, vector<16x128xf32> -> vector<16x128xf32>
    %77 = arith.addf %72, %76 : vector<16x128xf32>
    %c3_72 = arith.constant 3 : index
    %c0_73 = arith.constant 0 : index
    %78 = vector.load %arg11[%c3_72, %c0_73] : memref<22x128xf32, #tpu.memory_space<vmem>>, vector<16x128xf32>
    %c3_74 = arith.constant 3 : index
    %c0_75 = arith.constant 0 : index
    %c0_76 = arith.constant 0 : index
    %79 = vector.load %arg7[%c3_74, %c0_75, %c0_76] : memref<7x128x128xf32, #tpu.memory_space<vmem>>, vector<1x128x128xf32>
    %80 = vector.shape_cast %79 : vector<1x128x128xf32> to vector<128x128xf32>
    %cst_77 = arith.constant dense<0.000000e+00> : vector<16x128xf32>
    %81 = tpu.matmul %78, %80, %cst_77 {dimension_numbers = #tpu.dot_dimension_numbers<[1], [0], [0], [1], [0, 0, 1, 1], [], []>} : vector<16x128xf32>, vector<128x128xf32>, vector<16x128xf32> -> vector<16x128xf32>
    %82 = arith.addf %77, %81 : vector<16x128xf32>
    %c4_78 = arith.constant 4 : index
    %c0_79 = arith.constant 0 : index
    %83 = vector.load %arg11[%c4_78, %c0_79] : memref<22x128xf32, #tpu.memory_space<vmem>>, vector<16x128xf32>
    %c4_80 = arith.constant 4 : index
    %c0_81 = arith.constant 0 : index
    %c0_82 = arith.constant 0 : index
    %84 = vector.load %arg7[%c4_80, %c0_81, %c0_82] : memref<7x128x128xf32, #tpu.memory_space<vmem>>, vector<1x128x128xf32>
    %85 = vector.shape_cast %84 : vector<1x128x128xf32> to vector<128x128xf32>
    %cst_83 = arith.constant dense<0.000000e+00> : vector<16x128xf32>
    %86 = tpu.matmul %83, %85, %cst_83 {dimension_numbers = #tpu.dot_dimension_numbers<[1], [0], [0], [1], [0, 0, 1, 1], [], []>} : vector<16x128xf32>, vector<128x128xf32>, vector<16x128xf32> -> vector<16x128xf32>
    %87 = arith.addf %82, %86 : vector<16x128xf32>
    %c5_84 = arith.constant 5 : index
    %c0_85 = arith.constant 0 : index
    %88 = vector.load %arg11[%c5_84, %c0_85] : memref<22x128xf32, #tpu.memory_space<vmem>>, vector<16x128xf32>
    %c5_86 = arith.constant 5 : index
    %c0_87 = arith.constant 0 : index
    %c0_88 = arith.constant 0 : index
    %89 = vector.load %arg7[%c5_86, %c0_87, %c0_88] : memref<7x128x128xf32, #tpu.memory_space<vmem>>, vector<1x128x128xf32>
    %90 = vector.shape_cast %89 : vector<1x128x128xf32> to vector<128x128xf32>
    %cst_89 = arith.constant dense<0.000000e+00> : vector<16x128xf32>
    %91 = tpu.matmul %88, %90, %cst_89 {dimension_numbers = #tpu.dot_dimension_numbers<[1], [0], [0], [1], [0, 0, 1, 1], [], []>} : vector<16x128xf32>, vector<128x128xf32>, vector<16x128xf32> -> vector<16x128xf32>
    %92 = arith.addf %87, %91 : vector<16x128xf32>
    %c6_90 = arith.constant 6 : index
    %c0_91 = arith.constant 0 : index
    %93 = vector.load %arg11[%c6_90, %c0_91] : memref<22x128xf32, #tpu.memory_space<vmem>>, vector<16x128xf32>
    %c6_92 = arith.constant 6 : index
    %c0_93 = arith.constant 0 : index
    %c0_94 = arith.constant 0 : index
    %94 = vector.load %arg7[%c6_92, %c0_93, %c0_94] : memref<7x128x128xf32, #tpu.memory_space<vmem>>, vector<1x128x128xf32>
    %95 = vector.shape_cast %94 : vector<1x128x128xf32> to vector<128x128xf32>
    %cst_95 = arith.constant dense<0.000000e+00> : vector<16x128xf32>
    %96 = tpu.matmul %93, %95, %cst_95 {dimension_numbers = #tpu.dot_dimension_numbers<[1], [0], [0], [1], [0, 0, 1, 1], [], []>} : vector<16x128xf32>, vector<128x128xf32>, vector<16x128xf32> -> vector<16x128xf32>
    %97 = arith.addf %92, %96 : vector<16x128xf32>
    %c0_96 = arith.constant 0 : index
    %c0_97 = arith.constant 0 : index
    %98 = vector.load %arg8[%c0_96, %c0_97] : memref<1x128xf32, #tpu.memory_space<vmem>>, vector<1x128xf32>
    %99 = vector.broadcast %98 : vector<1x128xf32> to vector<16x128xf32>
    %100 = arith.addf %97, %99 : vector<16x128xf32>
    %c0_98 = arith.constant 0 : index
    %c0_99 = arith.constant 0 : index
    %c0_100 = arith.constant 0 : index
    %101 = vector.load %arg3[%c0_98, %c0_99, %c0_100] : memref<1x16x128xf32, #tpu.memory_space<vmem>>, vector<1x16x128xf32>
    %102 = vector.shape_cast %101 : vector<1x16x128xf32> to vector<16x128xf32>
    %103 = arith.addf %100, %102 : vector<16x128xf32>
    %cst_101 = arith.constant 0.000000e+00 : f32
    %104 = vector.broadcast %cst_101 : f32 to vector<16x128xf32>
    %105 = arith.maximumf %103, %104 : vector<16x128xf32>
    %c0_102 = arith.constant 0 : index
    %c0_103 = arith.constant 0 : index
    %c0_104 = arith.constant 0 : index
    %106 = vector.load %arg9[%c0_102, %c0_103, %c0_104] : memref<1x16x128xf32, #tpu.memory_space<vmem>>, vector<1x16x128xf32>
    %107 = vector.shape_cast %106 : vector<1x16x128xf32> to vector<16x128xf32>
    %108 = vector.shape_cast %105 : vector<16x128xf32> to vector<1x16x128xf32>
    tpu.vector_store %arg9[%c0_102, %c0_103, %c0_104], %108 {strides = array<i32>} : memref<1x16x128xf32, #tpu.memory_space<vmem>>, vector<1x16x128xf32>,
    return
  }
  func.func @transform_0(%arg0: i32, %arg1: i32) -> (i32, i32, i32) {
    %c1_i32 = arith.constant 1 : i32
    %0 = arith.muli %arg1, %c1_i32 : i32
    %c1_i32_0 = arith.constant 1 : i32
    %1 = arith.subi %0, %c1_i32_0 : i32
    %c0_i32 = arith.constant 0 : i32
    %2 = arith.maxsi %1, %c0_i32 : i32
    %c0_i32_1 = arith.constant 0 : i32
    %c0_i32_2 = arith.constant 0 : i32
    return %arg0, %2, %c0_i32_1 : i32, i32, i32
  }
  func.func @transform_1(%arg0: i32, %arg1: i32) -> (i32, i32, i32) {
    %c0_i32 = arith.constant 0 : i32
    %c0_i32_0 = arith.constant 0 : i32
    return %arg0, %arg1, %c0_i32 : i32, i32, i32
  }
  func.func @transform_2(%arg0: i32, %arg1: i32) -> (i32, i32, i32) {
    %c1_i32 = arith.constant 1 : i32
    %0 = arith.addi %arg1, %c1_i32 : i32
    %c1_i32_0 = arith.constant 1 : i32
    %1 = arith.muli %0, %c1_i32_0 : i32
    %c0_i32 = arith.constant 0 : i32
    %2 = arith.minsi %1, %c0_i32 : i32
    %c0_i32_1 = arith.constant 0 : i32
    %c0_i32_2 = arith.constant 0 : i32
    return %arg0, %2, %c0_i32_1 : i32, i32, i32
  }
  func.func @transform_3(%arg0: i32, %arg1: i32) -> (i32, i32, i32) {
    %c0_i32 = arith.constant 0 : i32
    %c0_i32_0 = arith.constant 0 : i32
    %c0_i32_1 = arith.constant 0 : i32
    %c0_i32_2 = arith.constant 0 : i32
    return %c0_i32, %c0_i32_0, %c0_i32_1 : i32, i32, i32
  }
  func.func @transform_4(%arg0: i32, %arg1: i32) -> (i32, i32) {
    %c0_i32 = arith.constant 0 : i32
    %c0_i32_0 = arith.constant 0 : i32
    %c0_i32_1 = arith.constant 0 : i32
    return %c0_i32, %c0_i32_0 : i32, i32
  }
  func.func @transform_5(%arg0: i32, %arg1: i32) -> (i32, i32, i32) {
    %c0_i32 = arith.constant 0 : i32
    %c0_i32_0 = arith.constant 0 : i32
    %c0_i32_1 = arith.constant 0 : i32
    %c0_i32_2 = arith.constant 0 : i32
    return %c0_i32, %c0_i32_0, %c0_i32_1 : i32, i32, i32
  }
  func.func @transform_6(%arg0: i32, %arg1: i32) -> (i32, i32) {
    %c0_i32 = arith.constant 0 : i32
    %c0_i32_0 = arith.constant 0 : i32
    %c0_i32_1 = arith.constant 0 : i32
    return %c0_i32, %c0_i32_0 : i32, i32
  }
  func.func @transform_7(%arg0: i32, %arg1: i32) -> (i32, i32, i32) {
    %c0_i32 = arith.constant 0 : i32
    %c0_i32_0 = arith.constant 0 : i32
    return %arg0, %arg1, %c0_i32 : i32, i32, i32
  }
}

</mosaic_0001>

<bundles_post_ra>
// kernel: tpu_custom_call.1
= control target key start
LH: loop header
LB: loop body
LE: loop exit
PB: predicated region body
PF: predicated region fallthrough
CT: control target
= control target key end

     0   :  { %s2172_s0 = inlined_call_operand.hbm [shape: f32[2,16,128], index: 0, kind: input, shape index: {}]   ;;  %s2173_s1 = inlined_call_operand.hbm [shape: f32[2,16,128], index: 1, kind: input, shape index: {}]   ;;  %s2174_s2 = inlined_call_operand.hbm [shape: f32[2,16,128], index: 2, kind: input, shape index: {}]   ;;  %s2175_s3 = inlined_call_operand.hbm [shape: f32[7,128,128], index: 3, kind: input, shape index: {}]   ;;  %s2176_s4 = inlined_call_operand.vmem [shape: f32[1,128], index: 4, kind: input, shape index: {}]   ;;  %s2177_s5 = inlined_call_operand.hbm [shape: f32[7,128,128], index: 5, kind: input, shape index: {}]   ;;  %s2178_s6 = inlined_call_operand.vmem [shape: f32[1,128], index: 6, kind: input, shape index: {}]   ;;  %s2179_s7 = inlined_call_operand.hbm [shape: f32[2,16,128], index: 7, kind: output, shape index: {}]  }
   0x1   :  { %2191 = sst [smem:[#allocation25_spill]] %s2173_s1 }
   0x2   :  { %2192 = sst [smem:[#allocation26_spill]] %s2175_s3 }
   0x3   :  { %2193 = sst [smem:[#allocation27_spill]] %s2177_s5 }
   0x4   :  { %12 = vsyncpa [#allocation5], 0 }
   0x5   :  { %14 = vsyncpa [#allocation5 + $0x1], 0 }
   0x6   :  { %15 = vsyncpa [#allocation8], 0 }
   0x7   :  { %17 = vsyncpa [#allocation8 + $0x1], 0 }
   0x8   :  { %18 = vsyncpa [#allocation11], 0 }
   0x9   :  { %19 = vsyncpa [#allocation6], 0 }
   0xa   :  { %21 = vsyncpa [#allocation6 + $0x1], 0  ;;  %s1811_s24 = smov 0   ;;  %s1813_s25 = smov 0  }
   0xb   :  { %s1815_s26 = smov 0   ;;  %s1817_s27 = smov 0  }
   0xc   :  { %s1819_s28 = smov 0   ;;  %s1821_s29 = smov 0  }
   0xd LB: > { %2194 = sst [smem:[#allocation18_spill]] %s1742_s24  ;;  %s1842_s30 = sadd.s32 4294967295, %s1762_s29   ;;  %s1762_s29 = sphi %s1821_s29, %s27_s29   ;;  %s1758_s28 = sphi %s1819_s28, %s2218_s28   ;;  %s1754_s27 = sphi %s1817_s27, %s2217_s27   ;;  %s1750_s26 = sphi %s1815_s26, %s2216_s26   ;;  %s1746_s25 = sphi %s1813_s25, %s2220_s25   ;;  %s1742_s24 = sphi %s1811_s24, %s2219_s24  }
   0xe   : > { %2195 = sst [smem:[#allocation19_spill]] %s1750_s26  ;;  %s1358_s8 = sadd.s32 4294967294, %s1762_s29  }
   0xf   : > { %2196 = sst [smem:[#allocation20_spill]] %s1758_s28  ;;  %p67_p0 = scmp.ne.s32.totalorder %s1746_s25, %s1742_s24 }
  0x10   : > { %2197 = sst [smem:[#allocation21_spill]] %s1762_s29  ;;  %p68_p1 = scmp.eq.s32.totalorder %s1842_s30, 0 }
  0x11   : > { %p239_p2 = scmp.eq.s32.totalorder %s1842_s30, 1  ;;  %p245_p3 = scmp.eq.s32.totalorder %s1358_s8, 1 }
  0x12   : > { %p1851_p4 = por %p68_p1, %p67_p0  ;;  %p1359_p5 = scmp.ge.s32.totalorder %s1762_s29, 1 }
  0x13   : > { %p1856_p6 = por %p245_p3, %p67_p0  ;;  %p252_p7 = scmp.lt.s32.totalorder %s1762_s29, 3 }
  0x14   : > { %s2201_s3 = sld [smem:[#allocation26_spill]]  ;;  %s1764_s15 = smov [#allocation10]  }
  0x15   : > { %s2199_s10 = scalar_select %p1856_p6, 1, 0 }
  0x16   : > { %p1864_p8 = pnand %p1359_p5, %p252_p7  ;;  %s265_s16 = sshll.u32 %s1764_s15, 4  ;;  %s266_s16 = int_to_ptr.vmem [resolvable:$true] %s265_s16 }
  0x17   : > { %2200 = sst [smem:[#allocation22_spill]] %s2199_s10  ;;  %p1362_p11 = scmp.ge.s32.totalorder %s1762_s29, 2 }
  0x18   : > { %p1436_p9 = pneg %p1864_p8  ;;  %s2180_s18 = smov 128  }
  0x19   : > { %s2182_s19 = smov 8   ;;  %s39_s20 = sadd.s32 1, %s1758_s28 }
  0x1a   : > { %s263_s13 = sshll.u32 %s2201_s3, 4  ;;  %p1872_p10 = pnand %p1436_p9, %p68_p1  ;;  %s264_s13 = int_to_ptr.hbm [resolvable:$true] %s263_s13 }
  0x1b   : > { %p41_p12 = scmp.ge.s32.totalorder %s39_s20, 2  ;;  %s54_s21 = sadd.s32 1, %s1750_s26 }
  0x1c   : > { %1439 = dma.hbm_to_vmem [thread:$0]  (!%p1872_p10), %s264_s13, 14336, %s266_s16, [#allocation11], %s2180_s18, %s2180_s18, %s2182_s19  }
  0x1d   : > { %p61_p13 = scmp.ne.s32.totalorder %s1750_s26, %s1746_s25  ;;  %p62_p0 = scmp.eq.s32.totalorder %s1762_s29, 0 }
  0x1e   : > { %s2222_s20 = smov (%p41_p12, %s39_s20), 0  ;;  %p1459_p7 = scmp.lt.s32.totalorder %s1762_s29, 2 }
  0x1f   : > { %2204 = sst [smem:[#allocation23_spill]] %s2222_s20  ;;  %p63_p3 = por %p62_p0, %p61_p13 }
  0x20   : > { %p1891_p5 = por %p239_p2, %p61_p13  ;;  %s49_s23 = ssub.s32 %s1758_s28, %s2222_s20 }
  0x21   : > { %p52_p9 = scmp.eq.s32.totalorder %s49_s23, 0  ;;  %s299_s8 = sand.u32 1, %s1750_s26  }
  0x22   : > { %s1899_s11 = sshll.u32 %s299_s8, 4  ;;  %s1902_s12 = sshll.u32 %s1758_s28, 4 }
  0x23   : > { %s1905_s13 = scalar_select %p52_p9, %s1750_s26, %s54_s21  }
  0x24   : > { %p1907_p12 = pnand %p1459_p7, %p63_p3  ;;  %s326_s16 = sand.u32 1, %s1762_s29  }
  0x25   : > { %2206 = sst [smem:[#allocation24_spill]] %s1905_s13  ;;  %s330_s20 = scalar_lea.vmem [#allocation7], %s1899_s11 }
  0x26   : > { %s2208_s1 = sld [smem:[#allocation25_spill]]  ;;  %s340_s28 = sshll.u32 %s330_s20, 4  ;;  %s341_s28 = int_to_ptr.vmem [resolvable:$true] %s340_s28 }
  0x27   : > { %s327_s21 = scalar_lea.sflag [#allocation8], %s326_s16  ;;  %s2209_s13 = smov 8  }
  0x28   : > { %s2210_s26 = smov 128   ;;  %s2211_s5 = sld [smem:[#allocation27_spill]] }
  0x29   : > { %s1767_s18 = smov [#allocation12]   ;;  %s300_s29 = scalar_lea.sflag [#allocation5], %s299_s8 }
  0x2a   : > { %s282_s19 = sshll.u32 %s1767_s18, 4  ;;  %s364_s18 = scalar_lea.hbm %s2174_s2, %s1902_s12  ;;  %s283_s19 = int_to_ptr.vmem [resolvable:$true] %s282_s19 }
  0x2c   : > { %s337_s23 = scalar_lea.hbm %s2208_s1, %s1902_s12 }
  0x2d   : > { %s338_s3 = sshll.u32 %s337_s23, 4  ;;  %s313_s23 = scalar_lea.hbm %s2172_s0, %s1902_s12  ;;  %s339_s3 = int_to_ptr.hbm [resolvable:$true] %s338_s3 }
  0x2e   : > { %1449 = dma.hbm_to_vmem [thread:$0]  (!%p1907_p12), %s339_s3, 256, %s341_s28, %s327_s21, %s2210_s26, %s2210_s26, %s2209_s13  }
  0x2f   : > { %s280_s24 = sshll.u32 %s2211_s5, 4  ;;  %s314_s3 = sshll.u32 %s313_s23, 4  ;;  %s281_s24 = int_to_ptr.hbm [resolvable:$true] %s280_s24  ;;  %s315_s3 = int_to_ptr.hbm [resolvable:$true] %s314_s3 }
  0x30   : > { %1442 = dma.hbm_to_vmem [thread:$0]  (!%p1872_p10), %s281_s24, 14336, %s283_s19, [#allocation11], %s2210_s26, %s2210_s26, %s2209_s13  }
  0x31   : > { %s303_s28 = scalar_lea.vmem [#allocation4], %s1899_s11  ;;  %s365_s24 = sshll.u32 %s364_s18, 4  ;;  %s366_s24 = int_to_ptr.hbm [resolvable:$true] %s365_s24 }
  0x32   : > { %s316_s1 = sshll.u32 %s303_s28, 4  ;;  %s354_s19 = scalar_lea.vmem [#allocation9], %s1899_s11  ;;  %s317_s1 = int_to_ptr.vmem [resolvable:$true] %s316_s1 }
  0x33   : > { %1446 = dma.hbm_to_vmem [thread:$0]  (!%p1907_p12), %s315_s3, 256, %s317_s1, %s300_s29, %s2210_s26, %s2210_s26, %s2209_s13  }
  0x34   : > { %s367_s5 = sshll.u32 %s354_s19, 4  ;;  %379 = sbr.rel (%p1864_p8) target bundleno = 469 (0x1d5), region = 48  ;;  %s368_s5 = int_to_ptr.vmem [resolvable:$true] %s367_s5 }
  0x35   : > { %1452 = dma.hbm_to_vmem [thread:$0]  (!%p1907_p12), %s366_s24, 256, %s368_s5, %s327_s21, %s2210_s26, %s2210_s26, %s2209_s13  }
  0x36   : > { %s1953_s1 = sand.u32 (!%p1864_p8), 1, %s1746_s25  }
  0x37   : > { %s1956_s8 = sshll.u32 (!%p1864_p8), %s1953_s1, 4  ;;  %s382_s11 = scalar_lea.sflag (!%p1864_p8), [#allocation5], %s1953_s1 }
  0x38   : > { %s385_s12 = scalar_lea.vmem (!%p1864_p8), [#allocation4], %s1956_s8 }
  0x39   : > { %1725 = dma.done.wait (%p1851_p4), %s382_s11, 256  }
  0x3a   : > { %1727 = vsyncadd (%p1851_p4), %s382_s11, 4294967040  ;;  %s391_s5 = sand.u32 1, %s1842_s30   ;;  %s395_s14 = scalar_lea.vmem [#allocation7], %s1956_s8 }
  0x3b   : > { %s392_s26 = scalar_lea.sflag [#allocation8], %s391_s5 }
  0x3c   : > { %1729 = dma.done.wait (%p1851_p4), %s392_s26, 512  }
  0x3d   : > { %1731 = vsyncadd (%p1851_p4), %s392_s26, 4294966784  ;;  %s405_s13 = scalar_lea.vmem [#allocation9], %s1956_s8 }
  0x3e   : > { %1733 = dma.done.wait (%p68_p1), [#allocation11], 28672  }
  0x3f   : > { %1735 = vsyncadd (%p68_p1), [#allocation11], 4294938624  ;;  %v519_v0 = vld [vmem:[#allocation10 + $0xf8] sm:$0xff]  ;;  %v518_v2 = vld [vmem:[#allocation10 + $0xf0] sm:$0xff]  ;;  %v1768_v59 = vmov 0.0   ;;  %s456_s20 = scalar_lea.vmem [#allocation13], %s1956_s8 }
  0x40   : > { %v591_v1 = vld [vmem:[#allocation10 + $0x178] sm:$0xff]  ;;  %520 = vmatpush.msra.mxu0 %v519_v0  ;;  %v590_v4 = vld [vmem:[#allocation10 + $0x170] sm:$0xff]  ;;  %v517_v5 = vld [vmem:[#allocation10 + $0xe8] sm:$0xff]  ;;  %s1387_s16 = sshll.u32 %s1754_s27, 4  ;;  %s1199_s29 = sshll.u32 %s456_s20, 4  ;;  %s1200_s29 = int_to_ptr.vmem [resolvable:$true] %s1199_s29 }
  0x41   : > { %592 = vmatpush.msra.mxu2 %v591_v1  ;;  %v499_v3 = vld [vmem:[#allocation10 + $0x78] sm:$0xff]  ;;  %v498_v6 = vld [vmem:[#allocation10 + $0x70] sm:$0xff]  ;;  %v589_v7 = vld [vmem:[#allocation10 + $0x168] sm:$0xff]  ;;  %s1198_s28 = scalar_lea.hbm %s2179_s7, %s1387_s16  ;;  %s1185_s17 = scalar_lea.sflag [#allocation6], %s1953_s1 }
  0x42   : > { %546 = vmatpush.msra.mxu1 %v499_v3  ;;  %521 = vmatpush.msra.mxu0 %v518_v2  ;;  %v497_v8 = vld [vmem:[#allocation10 + $0x68] sm:$0xff]  ;;  %v640_v9 = vld [vmem:[#allocation10 + $0x1f8] sm:$0xff]  ;;  %v516_v10 = vld [vmem:[#allocation10 + $0xe0] sm:$0xff]  ;;  %s1201_s10 = sshll.u32 %s1198_s28, 4  ;;  %s1692_s8 = scalar_lea.hbm %s2179_s7, 32  ;;  %s1202_s10 = int_to_ptr.hbm [resolvable:$true] %s1201_s10 }
  0x43   : > { %593 = vmatpush.msra.mxu2 %v590_v4  ;;  %v588_v11 = vld [vmem:[#allocation10 + $0x160] sm:$0xff]  ;;  %641 = vmatpush.msra.mxu3 %v640_v9  ;;  %v639_v13 = vld [vmem:[#allocation10 + $0x1f0] sm:$0xff]  ;;  %v515_v14 = vld [vmem:[#allocation10 + $0xd8] sm:$0xff]  ;;  %s1686_s27 = sshra.s32 %s1202_s10, 4  ;;  %s1687_s27 = int_to_ptr.hbm [resolvable:$true] %s1686_s27 }
  0x44   : > { %547 = vmatpush.msra.mxu1 %v498_v6  ;;  %522 = vmatpush.msra.mxu0 %v517_v5  ;;  %v496_v12 = vld [vmem:[#allocation10 + $0x60] sm:$0xff]  ;;  %v587_v15 = vld [vmem:[#allocation10 + $0x158] sm:$0xff]  ;;  %v638_v16 = vld [vmem:[#allocation10 + $0x1e8] sm:$0xff]  ;;  %s1688_s18 = scalar_lea.hbm %s1687_s27, 16  ;;  %p1693_p8 = scmp.lt.s32.totalorder %s1687_s27, %s2179_s7 }
  0x45   : > { %594 = vmatpush.msra.mxu2 %v589_v7  ;;  %642 = vmatpush.msra.mxu3 %v639_v13  ;;  %v495_v17 = vld [vmem:[#allocation10 + $0x58] sm:$0xff]  ;;  %v637_v18 = vld [vmem:[#allocation10 + $0x1e0] sm:$0xff]  ;;  %v514_v19 = vld [vmem:[#allocation10 + $0xd0] sm:$0xff]  ;;  %p1689_p1 = scmp.ne.s32.totalorder %s1687_s27, %s1688_s18  ;;  %p1694_p10 = scmp.lt.s32.totalorder %s1692_s8, %s1688_s18 }
  0x46   : > { %548 = vmatpush.msra.mxu1 %v497_v8  ;;  %523 = vmatpush.msra.mxu0 %v516_v10  ;;  %v586_v20 = vld [vmem:[#allocation10 + $0x150] sm:$0xff]  ;;  %v636_v22 = vld [vmem:[#allocation10 + $0x1d8] sm:$0xff]  ;;  %v513_v23 = vld [vmem:[#allocation10 + $0xc8] sm:$0xff] }
  0x47   : > { %595 = vmatpush.msra.mxu2 %v588_v11  ;;  %643 = vmatpush.msra.mxu3 %v638_v16  ;;  %v494_v21 = vld [vmem:[#allocation10 + $0x50] sm:$0xff]  ;;  %v585_v24 = vld [vmem:[#allocation10 + $0x148] sm:$0xff]  ;;  %v512_v27 = vld [vmem:[#allocation10 + $0xc0] sm:$0xff]  ;;  %p1690_p2 = pnand %p1689_p1, %p1891_p5  ;;  %p1695_p13 = por %p1694_p10, %p1693_p8 }
  0x48   : > { %549 = vmatpush.msra.mxu1 %v496_v12  ;;  %524 = vmatpush.msra.mxu0 %v515_v14  ;;  %v493_v25 = vld [vmem:[#allocation10 + $0x48] sm:$0xff]  ;;  %v635_v26 = vld [vmem:[#allocation10 + $0x1d0] sm:$0xff]  ;;  %v584_v28 = vld [vmem:[#allocation10 + $0x140] sm:$0xff] }
  0x49   : > { %596 = vmatpush.msra.mxu2 %v587_v15  ;;  %644 = vmatpush.msra.mxu3 %v637_v18  ;;  %v492_v29 = vld [vmem:[#allocation10 + $0x40] sm:$0xff]  ;;  %v634_v30 = vld [vmem:[#allocation10 + $0x1c8] sm:$0xff]  ;;  %v511_v31 = vld [vmem:[#allocation10 + $0xb8] sm:$0xff]  ;;  %p1691_p4 = pneg %p1690_p2 }
  0x4a   : > { %550 = vmatpush.msra.mxu1 %v495_v17  ;;  %525 = vmatpush.msra.mxu0 %v514_v19  ;;  %v583_v32 = vld [vmem:[#allocation10 + $0x138] sm:$0xff]  ;;  %v633_v34 = vld [vmem:[#allocation10 + $0x1c0] sm:$0xff]  ;;  %v510_v35 = vld [vmem:[#allocation10 + $0xb0] sm:$0xff] }
  0x4b   : > { %597 = vmatpush.msra.mxu2 %v586_v20  ;;  %645 = vmatpush.msra.mxu3 %v636_v22  ;;  %v491_v33 = vld [vmem:[#allocation10 + $0x38] sm:$0xff]  ;;  %v582_v36 = vld [vmem:[#allocation10 + $0x130] sm:$0xff]  ;;  %v509_v39 = vld [vmem:[#allocation10 + $0xa8] sm:$0xff]  ;;  %p1696_p0 = pnand %p1695_p13, %p1691_p4 }
  0x4c   : > { %551 = vmatpush.msra.mxu1 %v494_v21  ;;  %526 = vmatpush.msra.mxu0 %v513_v23  ;;  %v490_v37 = vld [vmem:[#allocation10 + $0x30] sm:$0xff]  ;;  %v632_v38 = vld [vmem:[#allocation10 + $0x1b8] sm:$0xff]  ;;  %v581_v40 = vld [vmem:[#allocation10 + $0x128] sm:$0xff] }
  0x4d   : > { %598 = vmatpush.msra.mxu2 %v585_v24  ;;  %646 = vmatpush.msra.mxu3 %v635_v26  ;;  %v489_v41 = vld [vmem:[#allocation10 + $0x28] sm:$0xff]  ;;  %v631_v42 = vld [vmem:[#allocation10 + $0x1b0] sm:$0xff]  ;;  %v508_v43 = vld [vmem:[#allocation10 + $0xa0] sm:$0xff] }
  0x4e   : > { %552 = vmatpush.msra.mxu1 %v493_v25  ;;  %527 = vmatpush.msra.mxu0 %v512_v27  ;;  %v580_v44 = vld [vmem:[#allocation10 + $0x120] sm:$0xff]  ;;  %v630_v46 = vld [vmem:[#allocation10 + $0x1a8] sm:$0xff]  ;;  %v507_v47 = vld [vmem:[#allocation10 + $0x98] sm:$0xff] }
  0x4f   : > { %599 = vmatpush.msra.mxu2 %v584_v28  ;;  %647 = vmatpush.msra.mxu3 %v634_v30  ;;  %v488_v45 = vld [vmem:[#allocation10 + $0x20] sm:$0xff]  ;;  %v579_v48 = vld [vmem:[#allocation10 + $0x118] sm:$0xff]  ;;  %v506_v52 = vld [vmem:[#allocation10 + $0x90] sm:$0xff] }
  0x50   : > { %553 = vmatpush.msra.mxu1 %v492_v29  ;;  %528 = vmatpush.msra.mxu0 %v511_v31  ;;  %v487_v49 = vld [vmem:[#allocation10 + $0x18] sm:$0xff]  ;;  %v629_v50 = vld [vmem:[#allocation10 + $0x1a0] sm:$0xff]  ;;  %v578_v53 = vld [vmem:[#allocation10 + $0x110] sm:$0xff] }
  0x51   : > { %600 = vmatpush.msra.mxu2 %v583_v32  ;;  %648 = vmatpush.msra.mxu3 %v633_v34  ;;  %v467_v51 = vld [vmem:[%s385_s12 + $0xa] sm:$0x3f]  ;;  %v1979_v54 = vld [vmem:[%s395_s14] sm:$0xff] }
  0x52   : > { %554 = vmatpush.msra.mxu1 %v491_v33  ;;  %529 = vmatpush.msra.mxu0 %v510_v35  ;;  %468 = vst [vmem:[#allocation2 + $0xa] sm:$0x3f] %v467_v51  ;;  %v486_v55 = vld [vmem:[#allocation10 + $0x10] sm:$0xff]  ;;  %v628_v56 = vld [vmem:[#allocation10 + $0x198] sm:$0xff]  ;;  %v505_v57 = vld [vmem:[#allocation10 + $0x88] sm:$0xff] }
  0x53   : > { %601 = vmatpush.msra.mxu2 %v582_v36  ;;  %649 = vmatpush.msra.mxu3 %v632_v38  ;;  %471 = vst [vmem:[#allocation2 + $0x10] sm:$0xff] %v1979_v54  ;;  %v577_v58 = vld [vmem:[#allocation10 + $0x108] sm:$0xff]  ;;  %v627_v61 = vld [vmem:[#allocation10 + $0x190] sm:$0xff]  ;;  %v504_v62 = vld [vmem:[#allocation10 + $0x80] sm:$0xff] }
  0x54   : > { %555 = vmatpush.msra.mxu1 %v490_v37  ;;  %530 = vmatpush.msra.mxu0 %v509_v39  ;;  %479 = vst [vmem:[#allocation2 + $0xa] sm:$0x3f] %v1768_v59  ;;  %v485_v60 = vld [vmem:[#allocation10 + $0x8] sm:$0xff]  ;;  %v576_v63 = vld [vmem:[#allocation10 + $0x100] sm:$0xff]  ;;  %v689_v1 = vld [vmem:[#allocation10 + $0x278] sm:$0xff] }
  0x55   : > { %602 = vmatpush.msra.mxu2 %v581_v40  ;;  %650 = vmatpush.msra.mxu3 %v631_v42  ;;  %v1985_v0 = vld [vmem:[%s395_s14 + $0x8] sm:$0xff]  ;;  %v484_v3 = vld [vmem:[#allocation10] sm:$0xff]  ;;  %v688_v5 = vld [vmem:[#allocation10 + $0x270] sm:$0xff] }
  0x56   : > { %556 = vmatpush.msra.mxu1 %v489_v41  ;;  %531 = vmatpush.msra.mxu0 %v508_v43  ;;  %v787_v2 = vld [vmem:[#allocation10 + $0x378] sm:$0xff]  ;;  %472 = vst [vmem:[#allocation2 + $0x18] sm:$0xff] %v1985_v0  ;;  %v626_v4 = vld [vmem:[#allocation10 + $0x188] sm:$0xff]  ;;  %v786_v7 = vld [vmem:[#allocation10 + $0x370] sm:$0xff] }
  0x57   : > { %603 = vmatpush.msra.mxu2 %v580_v44  ;;  %651 = vmatpush.msra.mxu3 %v630_v46  ;;  %v738_v6 = vld [vmem:[#allocation10 + $0x2f8] sm:$0xff]  ;;  %v625_v8 = vld [vmem:[#allocation10 + $0x180] sm:$0xff]  ;;  %v687_v9 = vld [vmem:[#allocation10 + $0x268] sm:$0xff] }
  0x58   : > { %557 = vmatpush.msra.mxu1 %v488_v45  ;;  %532 = vmatpush.msra.mxu0 %v507_v47  ;;  %v737_v10 = vld [vmem:[#allocation10 + $0x2f0] sm:$0xff]  ;;  %v785_v11 = vld [vmem:[#allocation10 + $0x368] sm:$0xff]  ;;  %v686_v15 = vld [vmem:[#allocation10 + $0x260] sm:$0xff] }
  0x59   : > { %604 = vmatpush.msra.mxu2 %v579_v48  ;;  %652 = vmatpush.msra.mxu3 %v629_v50  ;;  %v473_v13 = vld [vmem:[%s405_s13] sm:$0x3f]  ;;  %v736_v16 = vld [vmem:[#allocation10 + $0x2e8] sm:$0xff]  ;;  %v685_v19 = vld [vmem:[#allocation10 + $0x258] sm:$0xff] }
  0x5a   : > { %558 = vmatpush.msra.mxu1 %v487_v49  ;;  %533 = vmatpush.msra.mxu0 %v506_v52  ;;  %474 = vst [vmem:[#allocation2 + $0x20] sm:$0x3f] %v473_v13  ;;  %v784_v17 = vld [vmem:[#allocation10 + $0x360] sm:$0xff]  ;;  %v783_v21 = vld [vmem:[#allocation10 + $0x358] sm:$0xff]  ;;  %v684_v23 = vld [vmem:[#allocation10 + $0x250] sm:$0xff] }
  0x5b   : > { %605 = vmatpush.msra.mxu2 %v578_v53  ;;  %653 = vmatpush.msra.mxu3 %v628_v56  ;;  %v500_v12 = vld [vmem:[#allocation2 + $0xb] sm:$0xff]  ;;  %480 = vst [vmem:[#allocation2 + $0x20] sm:$0x3f] %v1768_v59  ;;  %v734_v24 = vld [vmem:[#allocation10 + $0x2d8] sm:$0xff]  ;;  %v782_v25 = vld [vmem:[#allocation10 + $0x350] sm:$0xff] }
  0x5c   : > { %559 = vmatpush.msra.mxu1 %v486_v55  ;;  %534 = vmatpush.msra.mxu0 %v505_v57  ;;  %v572_v14 = vld [vmem:[#allocation2 + $0xc] sm:$0xff]  ;;  %v733_v27 = vld [vmem:[#allocation10 + $0x2d0] sm:$0xff]  ;;  %v681_v35 = vld [vmem:[#allocation10 + $0x238] sm:$0xff] }
  0x5d   : > { %606 = vmatpush.msra.mxu2 %v577_v58  ;;  %654 = vmatpush.msra.mxu3 %v627_v61  ;;  %v621_v18 = vld [vmem:[#allocation2 + $0xd] sm:$0xff]  ;;  %v622_v34 = vld [vmem:[#allocation2 + $0x15] sm:$0xff]  ;;  %v779_v37 = vld [vmem:[#allocation10 + $0x338] sm:$0xff] }
  0x5e   : > { %560 = vmatpush.msra.mxu1 %v485_v60  ;;  %535 = vmatpush.msra.mxu0 %v504_v62  ;;  %v735_v20 = vld [vmem:[#allocation10 + $0x2e0] sm:$0xff]  ;;  %v683_v26 = vld [vmem:[#allocation10 + $0x248] sm:$0xff]  ;;  %v680_v39 = vld [vmem:[#allocation10 + $0x230] sm:$0xff] }
  0x5f   : > { %607 = vmatpush.msra.mxu2 %v576_v63  ;;  %655 = vmatpush.msra.mxu3 %v626_v4  ;;  %v481_v22 = vld [vmem:[#allocation2 + $0xa] sm:$0xff]  ;;  %v573_v29 = vld [vmem:[#allocation2 + $0x14] sm:$0xff]  ;;  %v730_v40 = vld [vmem:[#allocation10 + $0x2b8] sm:$0xff] }
  0x60   : > { %690 = vmatpush.msrb.mxu0 %v689_v1  ;;  %561 = vmatpush.msra.mxu1 %v484_v3  ;;  %v781_v28 = vld [vmem:[#allocation10 + $0x348] sm:$0xff]  ;;  %v682_v30 = vld [vmem:[#allocation10 + $0x240] sm:$0xff]  ;;  %v778_v41 = vld [vmem:[#allocation10 + $0x330] sm:$0xff] }
  0x61   : > { %788 = vmatpush.msrb.mxu2 %v787_v2  ;;  %656 = vmatpush.msra.mxu3 %v625_v8  ;;  %v732_v31 = vld [vmem:[#allocation10 + $0x2c8] sm:$0xff]  ;;  %v780_v32 = vld [vmem:[#allocation10 + $0x340] sm:$0xff]  ;;  %v729_v43 = vld [vmem:[#allocation10 + $0x2b0] sm:$0xff] }
  0x62   : > { %691 = vmatpush.msrb.mxu0 %v688_v5  ;;  %739 = vmatpush.msrb.mxu1 %v738_v6  ;;  %v501_v33 = vld [vmem:[#allocation2 + $0x13] sm:$0xff]  ;;  %v731_v36 = vld [vmem:[#allocation10 + $0x2c0] sm:$0xff]  ;;  %v574_v45 = vld [vmem:[#allocation2 + $0x1c] sm:$0x3f] }
  0x63   : > { %789 = vmatpush.msrb.mxu2 %v786_v7  ;;  %536 = vmatmul.f32.vlgmr.msra.gmra.mxu0 %v500_v12  ;;  %v482_v38 = vld [vmem:[#allocation2 + $0x12] sm:$0xff]  ;;  %v678_v46 = vld [vmem:[#allocation10 + $0x220] sm:$0xff]  ;;  %v502_v49 = vld [vmem:[#allocation2 + $0x1b] sm:$0x3f] }
  0x64   : > { %692 = vmatpush.msrb.mxu0 %v687_v9  ;;  %740 = vmatpush.msrb.mxu1 %v737_v10  ;;  %v679_v42 = vld [vmem:[#allocation10 + $0x228] sm:$0xff]  ;;  %v776_v48 = vld [vmem:[#allocation10 + $0x320] sm:$0xff]  ;;  %v623_v50 = vld [vmem:[#allocation2 + $0x1d] sm:$0x3f] }
  0x65   : > { %790 = vmatpush.msrb.mxu2 %v785_v11  ;;  %657 = vmatmul.f32.vlgmr.msra.gmra.mxu3 %v621_v18  ;;  %v777_v44 = vld [vmem:[#allocation10 + $0x328] sm:$0xff]  ;;  %v677_v51 = vld [vmem:[#allocation10 + $0x218] sm:$0xff]  ;;  %v727_v52 = vld [vmem:[#allocation10 + $0x2a0] sm:$0xff] }
  0x66   : > { %608 = vmatmul.f32.vlgmr.msra.gmra.mxu2 %v572_v14  ;;  %693 = vmatpush.msrb.mxu0 %v686_v15  ;;  %v728_v47 = vld [vmem:[#allocation10 + $0x2a8] sm:$0xff]  ;;  %v775_v53 = vld [vmem:[#allocation10 + $0x318] sm:$0xff]  ;;  %v483_v55 = vld [vmem:[#allocation2 + $0x1a] sm:$0x3f] }
  0x67   : > { %741 = vmatpush.msrb.mxu1 %v736_v16  ;;  %791 = vmatpush.msrb.mxu2 %v784_v17  ;;  %v676_v56 = vld [vmem:[#allocation10 + $0x210] sm:$0xff]  ;;  %v726_v57 = vld [vmem:[#allocation10 + $0x298] sm:$0xff]  ;;  %v675_v60 = vld [vmem:[#allocation10 + $0x208] sm:$0xff] }
  0x68   : > { %694 = vmatpush.msrb.mxu0 %v685_v19  ;;  %562 = vmatmul.f32.vlgmr.msra.gmra.mxu1 %v481_v22  ;;  %v774_v58 = vld [vmem:[#allocation10 + $0x310] sm:$0xff]  ;;  %v773_v62 = vld [vmem:[#allocation10 + $0x308] sm:$0xff]  ;;  %v674_v63 = vld [vmem:[#allocation10 + $0x200] sm:$0xff] }
  0x69   : > { %742 = vmatpush.msrb.mxu1 %v735_v20  ;;  %792 = vmatpush.msrb.mxu2 %v783_v21  ;;  %v725_v61 = vld [vmem:[#allocation10 + $0x290] sm:$0xff]  ;;  %v724_v1 = vld [vmem:[#allocation10 + $0x288] sm:$0xff]  ;;  %v772_v2 = vld [vmem:[#allocation10 + $0x300] sm:$0xff] }
  0x6a   : > { %695 = vmatpush.msrb.mxu0 %v684_v23  ;;  %v670_v3 = vld [vmem:[#allocation2 + $0xe] sm:$0xff]  ;;  %v671_v6 = vld [vmem:[#allocation2 + $0x16] sm:$0xff]  ;;  %v672_v8 = vld [vmem:[#allocation2 + $0x1e] sm:$0x3f] }
  0x6b   : > { %743 = vmatpush.msrb.mxu1 %v734_v24  ;;  %793 = vmatpush.msrb.mxu2 %v782_v25  ;;  %v723_v4 = vld [vmem:[#allocation10 + $0x280] sm:$0xff]  ;;  %v720_v7 = vld [vmem:[#allocation2 + $0x17] sm:$0xff]  ;;  %v770_v9 = vld [vmem:[#allocation2 + $0x20] sm:$0x3f] }
  0x6c   : > { %696 = vmatpush.msrb.mxu0 %v683_v26  ;;  %v719_v5 = vld [vmem:[#allocation2 + $0xf] sm:$0xff]  ;;  %v721_v10 = vld [vmem:[#allocation2 + $0x1f] sm:$0x3f] }
  0x6d   : > { %744 = vmatpush.msrb.mxu1 %v733_v27  ;;  %794 = vmatpush.msrb.mxu2 %v781_v28  ;;  %v903_v11 = vld [vmem:[#allocation12 + $0xf8] sm:$0xff]  ;;  %v902_v13 = vld [vmem:[#allocation12 + $0xf0] sm:$0xff]  ;;  %v901_v14 = vld [vmem:[#allocation12 + $0xe8] sm:$0xff] }
  0x6e   : > { %611 = vmatmul.f32.gmra.mxu2 %v573_v29  ;;  %697 = vmatpush.msrb.mxu0 %v682_v30  ;;  %v884_v12 = vld [vmem:[#allocation12 + $0x78] sm:$0xff]  ;;  %v882_v15 = vld [vmem:[#allocation12 + $0x68] sm:$0xff]  ;;  %v881_v16 = vld [vmem:[#allocation12 + $0x60] sm:$0xff] }
  0x6f   : > { %745 = vmatpush.msrb.mxu1 %v732_v31  ;;  %795 = vmatpush.msrb.mxu2 %v780_v32  ;;  %v899_v17 = vld [vmem:[#allocation12 + $0xd8] sm:$0xff]  ;;  %v898_v19 = vld [vmem:[#allocation12 + $0xd0] sm:$0xff]  ;;  %v897_v21 = vld [vmem:[#allocation12 + $0xc8] sm:$0xff] }
  0x70   : > { %539 = vmatmul.f32.gmra.mxu0 %v501_v33  ;;  %660 = vmatmul.f32.gmra.mxu3 %v622_v34  ;;  %v880_v18 = vld [vmem:[#allocation12 + $0x58] sm:$0xff]  ;;  %v879_v20 = vld [vmem:[#allocation12 + $0x50] sm:$0xff]  ;;  %v878_v22 = vld [vmem:[#allocation12 + $0x48] sm:$0xff] }
  0x71   : > { %698 = vmatpush.msrb.mxu0 %v681_v35  ;;  %746 = vmatpush.msrb.mxu1 %v731_v36  ;;  %v896_v23 = vld [vmem:[#allocation12 + $0xc0] sm:$0xff]  ;;  %v968_v25 = vld [vmem:[#allocation12 + $0x178] sm:$0xff]  ;;  %v967_v29 = vld [vmem:[#allocation12 + $0x170] sm:$0xff] }
  0x72   : > { %796 = vmatpush.msrb.mxu2 %v779_v37  ;;  %565 = vmatmul.f32.gmra.mxu1 %v482_v38  ;;  %v877_v24 = vld [vmem:[#allocation12 + $0x40] sm:$0xff]  ;;  %v1012_v26 = vld [vmem:[#allocation12 + $0x1f8] sm:$0xff]  ;;  %v1011_v30 = vld [vmem:[#allocation12 + $0x1f0] sm:$0xff] }
  0x73   : > { %699 = vmatpush.msrb.mxu0 %v680_v39  ;;  %747 = vmatpush.msrb.mxu1 %v730_v40  ;;  %v895_v27 = vld [vmem:[#allocation12 + $0xb8] sm:$0xff]  ;;  %v875_v31 = vld [vmem:[#allocation12 + $0x30] sm:$0xff]  ;;  %v966_v33 = vld [vmem:[#allocation12 + $0x168] sm:$0xff] }
  0x74   : > { %797 = vmatpush.msrb.mxu2 %v778_v41  ;;  %904 = vmatpush.msrb.mxu3 %v903_v11  ;;  %v876_v28 = vld [vmem:[#allocation12 + $0x38] sm:$0xff]  ;;  %v894_v32 = vld [vmem:[#allocation12 + $0xb0] sm:$0xff]  ;;  %v1010_v34 = vld [vmem:[#allocation12 + $0x1e8] sm:$0xff] }
  0x75   : > { %700 = vmatpush.msrb.mxu0 %v679_v42  ;;  %748 = vmatpush.msrb.mxu1 %v729_v43  ;;  %v874_v35 = vld [vmem:[#allocation12 + $0x28] sm:$0xff]  ;;  %v965_v37 = vld [vmem:[#allocation12 + $0x160] sm:$0xff]  ;;  %v964_v41 = vld [vmem:[#allocation12 + $0x158] sm:$0xff] }
  0x76   : > { %798 = vmatpush.msrb.mxu2 %v777_v44  ;;  %905 = vmatpush.msrb.mxu3 %v902_v13  ;;  %v893_v36 = vld [vmem:[#allocation12 + $0xa8] sm:$0xff]  ;;  %v1009_v38 = vld [vmem:[#allocation12 + $0x1e0] sm:$0xff]  ;;  %v1008_v42 = vld [vmem:[#allocation12 + $0x1d8] sm:$0xff] }
  0x77   : > { %614 = vmatmul.f32.gmra.mxu2 %v574_v45  ;;  %701 = vmatpush.msrb.mxu0 %v678_v46  ;;  %v873_v39 = vld [vmem:[#allocation12 + $0x20] sm:$0xff]  ;;  %v872_v43 = vld [vmem:[#allocation12 + $0x18] sm:$0xff]  ;;  %v963_v45 = vld [vmem:[#allocation12 + $0x150] sm:$0xff] }
  0x78   : > { %749 = vmatpush.msrb.mxu1 %v728_v47  ;;  %799 = vmatpush.msrb.mxu2 %v776_v48  ;;  %v892_v40 = vld [vmem:[#allocation12 + $0xa0] sm:$0xff]  ;;  %v891_v44 = vld [vmem:[#allocation12 + $0x98] sm:$0xff]  ;;  %v1007_v46 = vld [vmem:[#allocation12 + $0x1d0] sm:$0xff] }
  0x79   : > { %542 = vmatmul.f32.gmra.mxu0 %v502_v49  ;;  %663 = vmatmul.f32.gmra.mxu3 %v623_v50  ;;  %v871_v47 = vld [vmem:[#allocation12 + $0x10] sm:$0xff]  ;;  %v962_v49 = vld [vmem:[#allocation12 + $0x148] sm:$0xff]  ;;  %v2007_v11 = vld [vmem:[#allocation12 + $0x2e0] sm:$0xff] }
  0x7a   : > { %702 = vmatpush.msrb.mxu0 %v677_v51  ;;  %750 = vmatpush.msrb.mxu1 %v727_v52  ;;  %v890_v48 = vld [vmem:[#allocation12 + $0x90] sm:$0xff]  ;;  %v1006_v50 = vld [vmem:[#allocation12 + $0x1c8] sm:$0xff]  ;;  %v1001_v13 = vld [vmem:[#allocation12 + $0x1a0] sm:$0xff] }
  0x7b   : > { %800 = vmatpush.msrb.mxu2 %v775_v53  ;;  %568 = vmatmul.f32.gmra.mxu1 %v483_v55  ;;  %v889_v51 = vld [vmem:[#allocation12 + $0x88] sm:$0xff]  ;;  %v961_v55 = vld [vmem:[#allocation12 + $0x140] sm:$0xff] }
  0x7c   : > { %703 = vmatpush.msrb.mxu0 %v676_v56  ;;  %751 = vmatpush.msrb.mxu1 %v726_v57  ;;  %v870_v52 = vld [vmem:[#allocation12 + $0x8] sm:$0xff]  ;;  %v1005_v56 = vld [vmem:[#allocation12 + $0x1c0] sm:$0xff] }
  0x7d   : > { %801 = vmatpush.msrb.mxu2 %v774_v58  ;;  %906 = vmatpush.msrb.mxu3 %v901_v14  ;;  %v869_v57 = vld [vmem:[#allocation12] sm:$0xff] }
  0x7e   : > { %704 = vmatpush.msrb.mxu0 %v675_v60  ;;  %752 = vmatpush.msrb.mxu1 %v725_v61  ;;  %v888_v58 = vld [vmem:[#allocation12 + $0x80] sm:$0xff]  ;;  %v1995_v60 = vld [vmem:[#allocation12 + $0x2f8] sm:$0xff] }
  0x7f   : > { %802 = vmatpush.msrb.mxu2 %v773_v62  ;;  %v960_v61 = vld [vmem:[#allocation12 + $0x138] sm:$0xff] }
  0x80   : > { %705 = vmatpush.msrb.mxu0 %v674_v63  ;;  %753 = vmatpush.msrb.mxu1 %v724_v1  ;;  %v1004_v62 = vld [vmem:[#allocation12 + $0x1b8] sm:$0xff] }
  0x81   : > { %803 = vmatpush.msrb.mxu2 %v772_v2  ;;  %706 = vmatmul.f32.vlgmr.msrb.gmra.mxu0 %v670_v3  ;;  %v1056_v1 = vld [vmem:[#allocation12 + $0x278] sm:$0xff]  ;;  %v1999_v2 = vld [vmem:[#allocation12 + $0x2f0] sm:$0xff] }
  0x82   : > { %804 = vmatmul.f32.vlgmr.msrb.gmra.mxu2 %v1979_v54  ;;  %754 = vmatpush.msrb.mxu1 %v723_v4  ;;  %v883_v54 = vld [vmem:[#allocation12 + $0x70] sm:$0xff] }
  0x83   : > { %755 = vmatmul.f32.vlgmr.msrb.gmra.mxu1 %v719_v5  ;;  %927 = vmatpush.msra.mxu0 %v884_v12  ;;  %v959_v3 = vld [vmem:[#allocation12 + $0x130] sm:$0xff]  ;;  %v957_v12 = vld [vmem:[#allocation12 + $0x120] sm:$0xff] }
  0x84   : > { %969 = vmatpush.msra.mxu1 %v968_v25  ;;  %1013 = vmatpush.msra.mxu2 %v1012_v26  ;;  %v1003_v4 = vld [vmem:[#allocation12 + $0x1b0] sm:$0xff]  ;;  %v998_v25 = vld [vmem:[#allocation12 + $0x188] sm:$0xff] }
  0x85   : > { %928 = vmatpush.msra.mxu0 %v883_v54  ;;  %v1055_v5 = vld [vmem:[#allocation12 + $0x270] sm:$0xff]  ;;  %v1053_v54 = vld [vmem:[#allocation12 + $0x260] sm:$0xff]  ;;  %v1050_v26 = vld [vmem:[#allocation12 + $0x248] sm:$0xff] }
  0x86   : > { %970 = vmatpush.msra.mxu1 %v967_v29  ;;  %1014 = vmatpush.msra.mxu2 %v1011_v30  ;;  %v953_v29 = vld [vmem:[#allocation12 + $0x100] sm:$0xff] }
  0x87   : > { %929 = vmatpush.msra.mxu0 %v882_v15  ;;  %v2012_v15 = vld [vmem:[#allocation12 + $0x2d8] sm:$0xff]  ;;  %v997_v30 = vld [vmem:[#allocation12 + $0x180] sm:$0xff] }
  0x88   : > { %971 = vmatpush.msra.mxu1 %v966_v33  ;;  %1015 = vmatpush.msra.mxu2 %v1010_v34 }
  0x89   : > { %709 = vmatmul.f32.gmra.mxu0 %v671_v6 }
  0x8a   : > { %807 = vmatmul.f32.gmra.mxu2 %v1985_v0  ;;  %v900_v0 = vld [vmem:[#allocation12 + $0xe0] sm:$0xff]  ;;  %930 = vmatpush.msra.mxu0 %v881_v16  ;;  %v1000_v16 = vld [vmem:[#allocation12 + $0x198] sm:$0xff] }
  0x8b   : > { %758 = vmatmul.f32.gmra.mxu1 %v720_v7  ;;  %907 = vmatpush.msrb.mxu3 %v900_v0  ;;  %v2004_v7 = vld [vmem:[#allocation12 + $0x2e8] sm:$0xff]  ;;  %v956_v0 = vld [vmem:[#allocation12 + $0x118] sm:$0xff] }
  0x8c   : > { %931 = vmatpush.msra.mxu0 %v880_v18  ;;  %972 = vmatpush.msra.mxu1 %v965_v37 }
  0x8d   : > { %908 = vmatpush.msrb.mxu3 %v899_v17  ;;  %1016 = vmatpush.msra.mxu2 %v1009_v38  ;;  %v1052_v17 = vld [vmem:[#allocation12 + $0x258] sm:$0xff]  ;;  %v2038_v38 = vld [vmem:[#allocation12 + $0x370] sm:$0xff] }
  0x8e   : > { %932 = vmatpush.msra.mxu0 %v879_v20  ;;  %973 = vmatpush.msra.mxu1 %v964_v41  ;;  %v955_v20 = vld [vmem:[#allocation12 + $0x110] sm:$0xff] }
  0x8f   : > { %909 = vmatpush.msrb.mxu3 %v898_v19  ;;  %1017 = vmatpush.msra.mxu2 %v1008_v42  ;;  %v2017_v19 = vld [vmem:[#allocation12 + $0x2d0] sm:$0xff]  ;;  %v2047_v42 = vld [vmem:[#allocation12 + $0x368] sm:$0xff] }
  0x90   : > { %933 = vmatpush.msra.mxu0 %v878_v22  ;;  %974 = vmatpush.msra.mxu1 %v963_v45  ;;  %v1051_v22 = vld [vmem:[#allocation12 + $0x250] sm:$0xff]  ;;  %v2052_v45 = vld [vmem:[#allocation12 + $0x2a8] sm:$0xff] }
  0x91   : > { %712 = vmatmul.f32.gmra.mxu0 %v672_v8  ;;  %910 = vmatpush.msrb.mxu3 %v897_v21  ;;  %v958_v8 = vld [vmem:[#allocation12 + $0x128] sm:$0xff]  ;;  %v999_v21 = vld [vmem:[#allocation12 + $0x190] sm:$0xff] }
  0x92   : > { %810 = vmatmul.f32.gmra.mxu2 %v770_v9  ;;  %934 = vmatpush.msra.mxu0 %v877_v24  ;;  %v1002_v9 = vld [vmem:[#allocation12 + $0x1a8] sm:$0xff]  ;;  %v2044_v41 = vld [vmem:[#allocation12 + $0x2b0] sm:$0xff] }
  0x93   : > { %761 = vmatmul.f32.gmra.mxu1 %v721_v10  ;;  %911 = vmatpush.msrb.mxu3 %v896_v23  ;;  %v1054_v10 = vld [vmem:[#allocation12 + $0x268] sm:$0xff] }
  0x94   : > { %935 = vmatpush.msra.mxu0 %v876_v28  ;;  %1018 = vmatpush.msra.mxu2 %v1007_v46  ;;  %v2020_v23 = vld [vmem:[#allocation12 + $0x2c8] sm:$0xff]  ;;  %v2025_v28 = vld [vmem:[#allocation12 + $0x2c0] sm:$0xff] }
  0x95   : > { %912 = vmatpush.msrb.mxu3 %v895_v27  ;;  %975 = vmatpush.msra.mxu1 %v962_v49  ;;  %v954_v24 = vld [vmem:[#allocation12 + $0x108] sm:$0xff]  ;;  %v2055_v46 = vld [vmem:[#allocation12 + $0x360] sm:$0xff] }
  0x96   : > { %936 = vmatpush.msra.mxu0 %v875_v31  ;;  %1019 = vmatpush.msra.mxu2 %v1006_v50  ;;  %v1049_v31 = vld [vmem:[#allocation12 + $0x240] sm:$0xff]  ;;  %v2062_v50 = vld [vmem:[#allocation12 + $0x358] sm:$0xff] }
  0x97   : > { %913 = vmatpush.msrb.mxu3 %v894_v32  ;;  %976 = vmatpush.msra.mxu1 %v961_v55  ;;  %v2028_v32 = vld [vmem:[#allocation12 + $0x378] sm:$0xff] }
  0x98   : > { %937 = vmatpush.msra.mxu0 %v874_v35  ;;  %1020 = vmatpush.msra.mxu2 %v1005_v56  ;;  %v1048_v35 = vld [vmem:[#allocation12 + $0x238] sm:$0xff] }
  0x99   : > { %914 = vmatpush.msrb.mxu3 %v893_v36  ;;  %977 = vmatpush.msra.mxu1 %v960_v61  ;;  %v2035_v36 = vld [vmem:[#allocation12 + $0x2b8] sm:$0xff]  ;;  %v1043_v61 = vld [vmem:[#allocation12 + $0x210] sm:$0xff] }
  0x9a   : > { %938 = vmatpush.msra.mxu0 %v873_v39  ;;  %1021 = vmatpush.msra.mxu2 %v1004_v62  ;;  %v1044_v55 = vld [vmem:[#allocation12 + $0x218] sm:$0xff]  ;;  %v1087_v62 = vld [vmem:[#allocation12 + $0x290] sm:$0xff] }
  0x9b   : > { %915 = vmatpush.msrb.mxu3 %v892_v40  ;;  %978 = vmatpush.msra.mxu1 %v959_v3  ;;  %v1047_v40 = vld [vmem:[#allocation12 + $0x230] sm:$0xff]  ;;  %v1088_v56 = vld [vmem:[#allocation12 + $0x298] sm:$0xff]  ;;  %v1042_v3 = vld [vmem:[#allocation12 + $0x208] sm:$0xff] }
  0x9c   : > { %939 = vmatpush.msra.mxu0 %v872_v43  ;;  %1022 = vmatpush.msra.mxu2 %v1003_v4  ;;  %v1086_v4 = vld [vmem:[#allocation12 + $0x288] sm:$0xff] }
  0x9d   : > { %916 = vmatpush.msrb.mxu3 %v891_v44  ;;  %979 = vmatpush.msra.mxu1 %v958_v8  ;;  %v1046_v44 = vld [vmem:[#allocation12 + $0x228] sm:$0xff]  ;;  %v1085_v8 = vld [vmem:[#allocation12 + $0x280] sm:$0xff] }
  0x9e   : > { %940 = vmatpush.msra.mxu0 %v871_v47  ;;  %1023 = vmatpush.msra.mxu2 %v1002_v9  ;;  %v1045_v47 = vld [vmem:[#allocation12 + $0x220] sm:$0xff] }
  0x9f   : > { %917 = vmatpush.msrb.mxu3 %v890_v48  ;;  %980 = vmatpush.msra.mxu1 %v957_v12  ;;  %v2059_v48 = vld [vmem:[#allocation12 + $0x2a0] sm:$0xff] }
  0xa0   : > { %941 = vmatpush.msra.mxu0 %v870_v52  ;;  %1024 = vmatpush.msra.mxu2 %v1001_v13 }
  0xa1   : > { %918 = vmatpush.msrb.mxu3 %v889_v51  ;;  %981 = vmatpush.msra.mxu1 %v956_v0 }
  0xa2   : > { %942 = vmatpush.msra.mxu0 %v869_v57  ;;  %1025 = vmatpush.msra.mxu2 %v1000_v16  ;;  %v2069_v57 = vld [vmem:[#allocation12 + $0x350] sm:$0xff] }
  0xa3   : > { %919 = vmatpush.msrb.mxu3 %v888_v58  ;;  %982 = vmatpush.msra.mxu1 %v955_v20 }
  0xa4   : > { %1101 = vmatpush.msrb.mxu0 %v1995_v60  ;;  %1026 = vmatpush.msra.mxu2 %v999_v21  ;;  %v2102_v21 = vld [vmem:[#allocation12 + $0x320] sm:$0xff] }
  0xa5   : > { %1057 = vmatpush.msra.mxu3 %v1056_v1  ;;  %983 = vmatpush.msra.mxu1 %v954_v24  ;;  %v2074_v1 = vld [vmem:[#allocation12 + $0x348] sm:$0xff] }
  0xa6   : > { %1102 = vmatpush.msrb.mxu0 %v1999_v2  ;;  %1027 = vmatpush.msra.mxu2 %v998_v25 }
  0xa7   : > { %1058 = vmatpush.msra.mxu3 %v1055_v5  ;;  %984 = vmatpush.msra.mxu1 %v953_v29  ;;  %v2110_v29 = vld [vmem:[#allocation12 + $0x310] sm:$0xff] }
  0xa8   : > { %1103 = vmatpush.msrb.mxu0 %v2004_v7  ;;  %1028 = vmatpush.msra.mxu2 %v997_v30 }
  0xa9   : > { %1059 = vmatpush.msra.mxu3 %v1054_v10  ;;  %1145 = vmatpush.msrb.mxu1 %v2028_v32  ;;  %v1041_v10 = vld [vmem:[#allocation12 + $0x200] sm:$0xff] }
  0xaa   : > { %1104 = vmatpush.msrb.mxu0 %v2007_v11  ;;  %1388 = vmatpush.msrb.mxu2 %v1995_v60 }
  0xab   : > { %1060 = vmatpush.msra.mxu3 %v1053_v54  ;;  %1146 = vmatpush.msrb.mxu1 %v2038_v38 }
  0xac   : > { %1105 = vmatpush.msrb.mxu0 %v2012_v15  ;;  %1389 = vmatpush.msrb.mxu2 %v1999_v2 }
  0xad   : > { %1061 = vmatpush.msra.mxu3 %v1052_v17  ;;  %1147 = vmatpush.msrb.mxu1 %v2047_v42 }
  0xae   : > { %1106 = vmatpush.msrb.mxu0 %v2017_v19  ;;  %1390 = vmatpush.msrb.mxu2 %v2004_v7  ;;  %v2085_v7 = vld [vmem:[#allocation12 + $0x340] sm:$0xff] }
  0xaf   : > { %1062 = vmatpush.msra.mxu3 %v1051_v22  ;;  %1148 = vmatpush.msrb.mxu1 %v2055_v46 }
  0xb0   : > { %1107 = vmatpush.msrb.mxu0 %v2020_v23  ;;  %1391 = vmatpush.msrb.mxu2 %v2007_v11  ;;  %v2088_v11 = vld [vmem:[#allocation12 + $0x338] sm:$0xff] }
  0xb1   : > { %1063 = vmatpush.msra.mxu3 %v1050_v26  ;;  %1149 = vmatpush.msrb.mxu1 %v2062_v50 }
  0xb2   : > { %1108 = vmatpush.msrb.mxu0 %v2025_v28  ;;  %1392 = vmatpush.msrb.mxu2 %v2012_v15  ;;  %v2093_v15 = vld [vmem:[#allocation12 + $0x330] sm:$0xff] }
  0xb3   : > { %1064 = vmatpush.msra.mxu3 %v1049_v31  ;;  %1150 = vmatpush.msrb.mxu1 %v2069_v57 }
  0xb4   : > { %1109 = vmatpush.msrb.mxu0 %v2035_v36  ;;  %1393 = vmatpush.msrb.mxu2 %v2017_v19 }
  0xb5   : > { %1065 = vmatpush.msra.mxu3 %v1048_v35  ;;  %1151 = vmatpush.msrb.mxu1 %v2074_v1 }
  0xb6   : > { %1110 = vmatpush.msrb.mxu0 %v2044_v41  ;;  %1394 = vmatpush.msrb.mxu2 %v2020_v23 }
  0xb7   : > { %1066 = vmatpush.msra.mxu3 %v1047_v40  ;;  %1152 = vmatpush.msrb.mxu1 %v2085_v7 }
  0xb8   : > { %1111 = vmatpush.msrb.mxu0 %v2052_v45  ;;  %1395 = vmatpush.msrb.mxu2 %v2025_v28  ;;  %v2108_v28 = vld [vmem:[#allocation12 + $0x318] sm:$0xff] }
  0xb9   : > { %1067 = vmatpush.msra.mxu3 %v1046_v44  ;;  %1153 = vmatpush.msrb.mxu1 %v2088_v11 }
  0xba   : > { %1112 = vmatpush.msrb.mxu0 %v2059_v48  ;;  %1396 = vmatpush.msrb.mxu2 %v2035_v36  ;;  %v1129_v36 = vld [vmem:[#allocation12 + $0x300] sm:$0xff] }
  0xbb   : > { %1068 = vmatpush.msra.mxu3 %v1045_v47  ;;  %1154 = vmatpush.msrb.mxu1 %v2093_v15 }
  0xbc   : > { %1113 = vmatpush.msrb.mxu0 %v1088_v56  ;;  %1397 = vmatpush.msrb.mxu2 %v2044_v41 }
  0xbd   : > { %1069 = vmatpush.msra.mxu3 %v1044_v55 }
  0xbe   : > { %1114 = vmatpush.msrb.mxu0 %v1087_v62  ;;  %1398 = vmatpush.msrb.mxu2 %v2052_v45 }
  0xbf   : > { %1070 = vmatpush.msra.mxu3 %v1043_v61 }
  0xc0   : > { %1115 = vmatpush.msrb.mxu0 %v1086_v4  ;;  %1399 = vmatpush.msrb.mxu2 %v2059_v48 }
  0xc1   : > { %1071 = vmatpush.msra.mxu3 %v1042_v3 }
  0xc2   : > { %1116 = vmatpush.msrb.mxu0 %v1085_v8  ;;  %1400 = vmatpush.msrb.mxu2 %v1088_v56 }
  0xc3   : > { %1072 = vmatpush.msra.mxu3 %v1041_v10 }
  0xc4   : > { %1401 = vmatpush.msrb.mxu2 %v1087_v62 }
  0xc6   : > { %1402 = vmatpush.msrb.mxu2 %v1086_v4 }
  0xc8   : > { %1403 = vmatpush.msrb.mxu2 %v1085_v8 }
  0xe0   : > { %v1993_v53 = vpop.f32.mrf.mxu0 }
  0xe5   : > { %v1997_v63 = vpop.f32.mrf.mxu1 }
  0xe6   : > { %v564_v33 = vadd.f32 %v1997_v63, %v1993_v53 }
  0xe8   : > { %v658_v37 = vpop.f32.mrf.mxu3 }
  0xe9   : > { %v2002_v6 = vpop.f32.mrf.mxu2 }
  0xea   : > { %v618_v43 = vadd.f32 %v2002_v6, %v564_v33  ;;  %v2082_v6 = vld [vmem:[%s2176_s4] ss:$0 sm:$0xff]  ;;  %v1130_v33 = vld [vmem:[#allocation12 + $0x308] sm:$0xff] }
  0xec   : > { %v667_v51 = vadd.f32 %v658_v37, %v618_v43 }
  0xed   : > { %v2010_v14 = vpop.f32.mrf.mxu0 }
  0xef   : > { %v2015_v18 = vpop.f32.mrf.mxu1 }
  0xf0   : > { %v567_v52 = vadd.f32 %v2015_v18, %v2010_v14  ;;  %v2098_v18 = vld [vmem:[#allocation12 + $0x328] sm:$0xff] }
  0xf1   : > { %v2023_v27 = vpop.f32.mrf.mxu2  ;;  %1155 = vmatpush.msrb.mxu1 %v2098_v18 }
  0xf2   : > { %v619_v2 = vadd.f32 %v2023_v27, %v567_v52 }
  0xf3   : > { %v661_v63 = vpop.f32.mrf.mxu3  ;;  %1156 = vmatpush.msrb.mxu1 %v2102_v21 }
  0xf4   : > { %v668_v12 = vadd.f32 %v661_v63, %v619_v2 }
  0xf5   : > { %1157 = vmatpush.msrb.mxu1 %v2108_v28 }
  0xf6   : > { %v2032_v34 = vpop.f32.mrf.mxu0 }
  0xf7   : > { %1158 = vmatpush.msrb.mxu1 %v2110_v29 }
  0xf8   : > { %v2041_v39 = vpop.f32.mrf.mxu1 }
  0xf9   : > { %v570_v13 = vadd.f32 %v2041_v39, %v2032_v34  ;;  %1159 = vmatpush.msrb.mxu1 %v1130_v33 }
  0xfa   : > { %v615_v49 = vpop.f32.mrf.mxu2 }
  0xfb   : > { %v620_v19 = vadd.f32 %v615_v49, %v570_v13  ;;  %1160 = vmatpush.msrb.mxu1 %v1129_v36  ;;  %v1519_v13 = vld [vmem:[%s2178_s6] ss:$0 sm:$0xff] }
  0xfc   : > { %v664_v22 = vpop.f32.mrf.mxu3 }
  0xfd   : > { %v669_v25 = vadd.f32 %v664_v22, %v620_v19  ;;  %v1520_v19 = vld [vmem:[#allocation2 + $0x10] sm:$0xff] }
  0xfe   : > { %v707_v53 = vpop.f32.mrf.mxu0 }
  0xff   : > { %v716_v58 = vadd.f32 %v707_v53, %v667_v51 }
 0x100   : > { %v756_v60 = vpop.f32.mrf.mxu1 }
 0x101   : > { %v765_v5 = vadd.f32 %v756_v60, %v716_v58 }
 0x105   : > { %v805_v9 = vpop.f32.mrf.mxu2 }
 0x106   : > { %v814_v54 = vadd.f32 %v805_v9, %v765_v5  ;;  %v710_v14 = vpop.f32.mrf.mxu0 }
 0x107   : > { %v717_v16 = vadd.f32 %v710_v14, %v668_v12 }
 0x108   : > { %v821_v0 = vadd.f32 %v2082_v6, %v814_v54  ;;  %v759_v17 = vpop.f32.mrf.mxu1 }
 0x109   : > { %v766_v23 = vadd.f32 %v759_v17, %v717_v16 }
 0x10a   : > { %v824_v20 = vmax.f32 %v821_v0, 0.0 }
 0x10c   : > { %827 = vst [vmem:[#allocation3] sm:$0xff] %v824_v20 }
 0x10d   : > { %833 = vst [vmem:[#allocation3] sm:$0x7] %v1768_v59  ;;  %v808_v24 = vpop.f32.mrf.mxu2  ;;  %v841_v59 = vlaneseq }
 0x10e   : > { %v815_v26 = vadd.f32 %v808_v24, %v766_v23  ;;  %v713_v27 = vpop.f32.mrf.mxu0 }
 0x10f   : > { %v718_v31 = vadd.f32 %v713_v27, %v669_v25  ;;  %v842_v41 = vshrl.u32 %v841_v59, 7 }
 0x110   : > { %v822_v30 = vadd.f32 %v2082_v6, %v815_v26  ;;  %v762_v34 = vpop.f32.mrf.mxu1 }
 0x111   : > { %v767_v39 = vadd.f32 %v762_v34, %v718_v31  ;;  %v844_v45 = vadd.s32 16, %v842_v41 }
 0x112   : > { %v825_v35 = vmax.f32 %v822_v30, 0.0 }
 0x113   : > { %v848_v52 = vadd.s32 4294967293, %v844_v45 }
 0x114   : > { %v852_v37 = vld [vmem:[#allocation3] sm:$0xff]  ;;  %865 = vst [vmem:[#allocation3 + $0x8] sm:$0xff] %v825_v35 }
 0x115   : > { %v811_v40 = vpop.f32.mrf.mxu2  ;;  %943 = vmatmul.f32.vlgmr.msra.gmra.mxu0 %v852_v37  ;;  %vm851_vm0 = vcmp.lt.s32.totalorder %v848_v52, 16 }
 0x116   : > { %v816_v43 = vadd.f32 %v811_v40, %v767_v39 }
 0x118   : > { %v823_v44 = vadd.f32 %v2082_v6, %v816_v43 }
 0x11a   : > { %v826_v47 = vmax.f32 %v823_v44, 0.0 }
 0x11b   : > { %v885_v48 = vld [vmem:[#allocation3 + $0x1] sm:$0xff] }
 0x11c   : > { %v950_v49 = vld [vmem:[#allocation3 + $0x2] sm:$0xff]  ;;  %829 = vst [vmem:[#allocation3 + $0x10] sm:$0x3f] %v826_v47  ;;  %920 = vmatmul.f32.vlgmr.msrb.gmra.mxu3 %v885_v48 }
 0x11d   : > { %v994_v51 = vld [vmem:[#allocation3 + $0x3] sm:$0xff]  ;;  %985 = vmatmul.f32.vlgmr.msra.gmra.mxu1 %v950_v49  ;;  %946 = vmatmul.f32.gmra.mxu0 %v825_v35 }
 0x11e   : > { %1029 = vmatmul.f32.vlgmr.msra.gmra.mxu2 %v994_v51  ;;  %1404 = vmatpush.msrb.mxu3 %v2028_v32  ;;  %v1082_v56 = vld [vmem:[#allocation3 + $0x5] sm:$0xff] }
 0x120   : > { %1405 = vmatpush.msrb.mxu3 %v2038_v38  ;;  %v1038_v38 = vld [vmem:[#allocation3 + $0x4] sm:$0xff] }
 0x122   : > { %1406 = vmatpush.msrb.mxu3 %v2047_v42  ;;  %v1126_v42 = vld [vmem:[#allocation3 + $0x6] sm:$0xff] }
 0x123   : > { %v854_v53 = vld [vmem:[#allocation3 + $0x10] sm:$0x3f] }
 0x124   : > { %v863_v55 = vsel %vm851_vm0, %v854_v53, 0.0  ;;  %1407 = vmatpush.msrb.mxu3 %v2055_v46 }
 0x125   : > { %866 = vst [vmem:[#allocation3 + $0x10] sm:$0x3f] %v863_v55  ;;  %1117 = vmatmul.f32.vlgmr.msrb.gmra.mxu0 %v1082_v56 }
 0x126   : > { %1408 = vmatpush.msrb.mxu3 %v2062_v50 }
 0x128   : > { %1409 = vmatpush.msrb.mxu3 %v2069_v57 }
 0x12a   : > { %1410 = vmatpush.msrb.mxu3 %v2074_v1 }
 0x12c   : > { %v886_v58 = vld [vmem:[#allocation3 + $0x9] sm:$0xff]  ;;  %1411 = vmatpush.msrb.mxu3 %v2085_v7 }
 0x12d   : > { %v951_v32 = vld [vmem:[#allocation3 + $0xa] sm:$0xff]  ;;  %923 = vmatmul.f32.gmra.mxu3 %v886_v58 }
 0x12e   : > { %v995_v60 = vld [vmem:[#allocation3 + $0xb] sm:$0xff]  ;;  %988 = vmatmul.f32.gmra.mxu1 %v951_v32  ;;  %1412 = vmatpush.msrb.mxu3 %v2088_v11 }
 0x12f   : > { %1032 = vmatmul.f32.gmra.mxu2 %v995_v60  ;;  %v1083_v46 = vld [vmem:[#allocation3 + $0xd] sm:$0xff] }
 0x130   : > { %1413 = vmatpush.msrb.mxu3 %v2093_v15  ;;  %v1039_v50 = vld [vmem:[#allocation3 + $0xc] sm:$0xff] }
 0x131   : > { %v1127_v57 = vld [vmem:[#allocation3 + $0xe] sm:$0xff] }
 0x132   : > { %1414 = vmatpush.msrb.mxu3 %v2098_v18 }
 0x134   : > { %1415 = vmatpush.msrb.mxu3 %v2102_v21 }
 0x135   : > { %1073 = vmatmul.f32.vlgmr.msra.gmra.mxu3 %v1038_v38 }
 0x136   : > { %1161 = vmatmul.f32.vlgmr.msrb.gmra.mxu1 %v1126_v42  ;;  %1416 = vmatpush.msrb.mxu3 %v2108_v28  ;;  %v1521_v28 = vld [vmem:[#allocation2 + $0x18] sm:$0xff] }
 0x137   : > { %1120 = vmatmul.f32.vlgmr.msrb.gmra.mxu2 %v1083_v46 }
 0x138   : > { %1417 = vmatpush.msrb.mxu3 %v2110_v29 }
 0x13a   : > { %1418 = vmatpush.msrb.mxu3 %v1130_v33 }
 0x13c   : > { %1419 = vmatpush.msrb.mxu3 %v1129_v36 }
 0x13d   : > { %1076 = vmatmul.f32.gmra.mxu3 %v1039_v50 }
 0x145   : > { %1164 = vmatmul.f32.vlgmr.msrb.gmra.mxu3 %v1127_v57 }
 0x192   : > { %v944_v61 = vpop.f32.mrf.mxu0 }
 0x19a   : > { %v986_v63 = vpop.f32.mrf.mxu1  ;;  %v947_v2 = vpop.f32.mrf.mxu0 }
 0x19f   : > { %v921_v62 = vpop.f32.mrf.mxu3 }
 0x1a0   : > { %v945_v1 = vadd.f32 %v944_v61, %v921_v62 }
 0x1a1   : > { %v1030_v6 = vpop.f32.mrf.mxu2 }
 0x1a2   : > { %v992_v5 = vadd.f32 %v986_v63, %v945_v1  ;;  %v1118_v11 = vpop.f32.mrf.mxu0 }
 0x1a4   : > { %v1036_v7 = vadd.f32 %v1030_v6, %v992_v5 }
 0x1ab   : > { %v989_v4 = vpop.f32.mrf.mxu1 }
 0x1b0   : > { %v924_v3 = vpop.f32.mrf.mxu3 }
 0x1b1   : > { %v948_v9 = vadd.f32 %v947_v2, %v924_v3 }
 0x1b2   : > { %v1033_v54 = vpop.f32.mrf.mxu2 }
 0x1b3   : > { %v1162_v14 = vpop.f32.mrf.mxu1  ;;  %v993_v15 = vadd.f32 %v989_v4, %v948_v9 }
 0x1b5   : > { %v1037_v18 = vadd.f32 %v1033_v54, %v993_v15 }
 0x1b8   : > { %v1074_v8 = vpop.f32.mrf.mxu3 }
 0x1b9   : > { %v1080_v10 = vadd.f32 %v1074_v8, %v1036_v7 }
 0x1ba   : > { %v1121_v23 = vpop.f32.mrf.mxu2 }
 0x1bb   : > { %v1124_v12 = vadd.f32 %v1118_v11, %v1080_v10 }
 0x1bd   : > { %v1168_v0 = vadd.f32 %v1162_v14, %v1124_v12 }
 0x1bf   : > { %v1174_v16 = vadd.f32 %v1519_v13, %v1168_v0 }
 0x1c0   : > { %v1077_v17 = vpop.f32.mrf.mxu3 }
 0x1c1   : > { %v1178_v20 = vadd.f32 %v1520_v19, %v1174_v16  ;;  %v1081_v21 = vadd.f32 %v1077_v17, %v1037_v18 }
 0x1c3   : > { %v1180_v22 = vmax.f32 %v1178_v20, 0.0  ;;  %v1125_v24 = vadd.f32 %v1121_v23, %v1081_v21 }
 0x1c5   : > { %1182 = vst [vmem:[%s456_s20] sm:$0xff] %v1180_v22 }
 0x1c8   : > { %v1165_v25 = vpop.f32.mrf.mxu3 }
 0x1c9   : > { %v1169_v26 = vadd.f32 %v1165_v25, %v1125_v24 }
 0x1cb   : > { %v1175_v27 = vadd.f32 %v1519_v13, %v1169_v26 }
 0x1cd   : > { %v1179_v29 = vadd.f32 %v1521_v28, %v1175_v27 }
 0x1cf   : > { %v1181_v30 = vmax.f32 %v1179_v29, 0.0 }
 0x1d1   : > { %1183 = vst [vmem:[%s456_s20 + $0x8] sm:$0xff] %v1181_v30 }
 0x1d2   : > { %1699 = shalt.err (!%p1696_p0)
}
 0x1d3   : > { %s1769_s1 = smov 128   ;;  %s1770_s5 = smov 8  }
 0x1d4   : > { %1434 = dma.vmem_to_hbm [thread:$0]  (%p1891_p5), %s1200_s29, 256, %s1202_s10, %s1185_s17, %s1769_s1, %s1769_s1, %s1770_s5  }
 0x1d5 PF: > { %s2212_s26 = sld [smem:[#allocation18_spill]]  ;;  %p1454_p3 = pnand %p1362_p11, %p1856_p6 }
 0x1d6   : > { %s2214_s13 = sld [smem:[#allocation21_spill]] }
 0x1d7   : > { %p1455_p7 = pneg %p1454_p3 }
 0x1db   : > { %s1216_s30 = sand.u32 1, %s2212_s26  }
 0x1dc   : > { %s1217_s9 = scalar_lea.sflag [#allocation6], %s1216_s30 }
 0x1dd   : > { %1737 = dma.done.wait (%p1455_p7), %s1217_s9, 256  }
 0x1de   : > { %1739 = vsyncadd (%p1455_p7), %s1217_s9, 4294967040  ;;  %s27_s29 = sadd.s32 1, %s2214_s13   ;;  %s2215_s15 = sld [smem:[#allocation19_spill]] }
 0x1df   : > { %p24_p9 = scmp.ge.s32.totalorder %s27_s29, 4   ;;  %s2216_s26 = sld [smem:[#allocation24_spill]] }
 0x1e0   : > { %s2217_s27 = sld [smem:[#allocation20_spill]]  ;;  %s2219_s24 = smov %s1746_s25 }
 0x1e1   : > { %s2218_s28 = sld [smem:[#allocation23_spill]]  ;;  %26 = sbr.rel (!%p24_p9) target bundleno = 13 (0xd), region = 149 }
 0x1e4   : > { %s2220_s25 = smov %s2215_s15 }
 0x1e6   :  { %1223 = vsyncpa [#allocation5], 1 }
 0x1e7   :  { %1225 = vsyncpa [#allocation5 + $0x1], 1 }
 0x1e8   :  { %1226 = vsyncpa [#allocation8], 1 }
 0x1e9   :  { %1228 = vsyncpa [#allocation8 + $0x1], 1 }
 0x1ea   :  { %1229 = vsyncpa [#allocation11], 1 }
 0x1eb   :  { %1230 = vsyncpa [#allocation6], 1 }
 0x1ec   :  { %1232 = vsyncpa [#allocation6 + $0x1], 1 }

// kernel: tpu_custom_call.1
= control target key start
LH: loop header
LB: loop body
LE: loop exit
PB: predicated region body
PF: predicated region fallthrough
CT: control target
= control target key end

     0   :  { %s2172_s0 = inlined_call_operand.hbm [shape: f32[2,16,128], index: 0, kind: input, shape index: {}]   ;;  %s2173_s1 = inlined_call_operand.hbm [shape: f32[2,16,128], index: 1, kind: input, shape index: {}]   ;;  %s2174_s2 = inlined_call_operand.hbm [shape: f32[2,16,128], index: 2, kind: input, shape index: {}]   ;;  %s2175_s3 = inlined_call_operand.hbm [shape: f32[7,128,128], index: 3, kind: input, shape index: {}]   ;;  %s2176_s4 = inlined_call_operand.vmem [shape: f32[1,128], index: 4, kind: input, shape index: {}]   ;;  %s2177_s5 = inlined_call_operand.hbm [shape: f32[7,128,128], index: 5, kind: input, shape index: {}]   ;;  %s2178_s6 = inlined_call_operand.vmem [shape: f32[1,128], index: 6, kind: input, shape index: {}]   ;;  %s2179_s7 = inlined_call_operand.hbm [shape: f32[2,16,128], index: 7, kind: output, shape index: {}]  }
   0x1   :  { %2191 = sst [smem:[#allocation25_spill]] %s2173_s1 }
   0x2   :  { %2192 = sst [smem:[#allocation26_spill]] %s2175_s3 }
   0x3   :  { %2193 = sst [smem:[#allocation27_spill]] %s2177_s5 }
   0x4   :  { %12 = vsyncpa [#allocation5], 0 }
   0x5   :  { %14 = vsyncpa [#allocation5 + $0x1], 0 }
   0x6   :  { %15 = vsyncpa [#allocation8], 0 }
   0x7   :  { %17 = vsyncpa [#allocation8 + $0x1], 0 }
   0x8   :  { %18 = vsyncpa [#allocation11], 0 }
   0x9   :  { %19 = vsyncpa [#allocation6], 0 }
   0xa   :  { %21 = vsyncpa [#allocation6 + $0x1], 0  ;;  %s1811_s24 = smov 0   ;;  %s1813_s25 = smov 0  }
   0xb   :  { %s1815_s26 = smov 0   ;;  %s1817_s27 = smov 0  }
   0xc   :  { %s1819_s28 = smov 0   ;;  %s1821_s29 = smov 0  }
   0xd LB: > { %2194 = sst [smem:[#allocation18_spill]] %s1742_s24  ;;  %s1842_s30 = sadd.s32 4294967295, %s1762_s29   ;;  %s1762_s29 = sphi %s1821_s29, %s27_s29   ;;  %s1758_s28 = sphi %s1819_s28, %s2218_s28   ;;  %s1754_s27 = sphi %s1817_s27, %s2217_s27   ;;  %s1750_s26 = sphi %s1815_s26, %s2216_s26   ;;  %s1746_s25 = sphi %s1813_s25, %s2220_s25   ;;  %s1742_s24 = sphi %s1811_s24, %s2219_s24  }
   0xe   : > { %2195 = sst [smem:[#allocation19_spill]] %s1750_s26  ;;  %s1358_s8 = sadd.s32 4294967294, %s1762_s29  }
   0xf   : > { %2196 = sst [smem:[#allocation20_spill]] %s1758_s28  ;;  %p67_p0 = scmp.ne.s32.totalorder %s1746_s25, %s1742_s24 }
  0x10   : > { %2197 = sst [smem:[#allocation21_spill]] %s1762_s29  ;;  %p68_p1 = scmp.eq.s32.totalorder %s1842_s30, 0 }
  0x11   : > { %p239_p2 = scmp.eq.s32.totalorder %s1842_s30, 1  ;;  %p245_p3 = scmp.eq.s32.totalorder %s1358_s8, 1 }
  0x12   : > { %p1851_p4 = por %p68_p1, %p67_p0  ;;  %p1359_p5 = scmp.ge.s32.totalorder %s1762_s29, 1 }
  0x13   : > { %p1856_p6 = por %p245_p3, %p67_p0  ;;  %p252_p7 = scmp.lt.s32.totalorder %s1762_s29, 3 }
  0x14   : > { %s2201_s3 = sld [smem:[#allocation26_spill]]  ;;  %s1764_s15 = smov [#allocation10]  }
  0x15   : > { %s2199_s10 = scalar_select %p1856_p6, 1, 0 }
  0x16   : > { %p1864_p8 = pnand %p1359_p5, %p252_p7  ;;  %s265_s16 = sshll.u32 %s1764_s15, 4  ;;  %s266_s16 = int_to_ptr.vmem [resolvable:$true] %s265_s16 }
  0x17   : > { %2200 = sst [smem:[#allocation22_spill]] %s2199_s10  ;;  %p1362_p11 = scmp.ge.s32.totalorder %s1762_s29, 2 }
  0x18   : > { %p1436_p9 = pneg %p1864_p8  ;;  %s2180_s18 = smov 128  }
  0x19   : > { %s2182_s19 = smov 8   ;;  %s39_s20 = sadd.s32 1, %s1758_s28 }
  0x1a   : > { %s263_s13 = sshll.u32 %s2201_s3, 4  ;;  %p1872_p10 = pnand %p1436_p9, %p68_p1  ;;  %s264_s13 = int_to_ptr.hbm [resolvable:$true] %s263_s13 }
  0x1b   : > { %p41_p12 = scmp.ge.s32.totalorder %s39_s20, 2  ;;  %s54_s21 = sadd.s32 1, %s1750_s26 }
  0x1c   : > { %1439 = dma.hbm_to_vmem [thread:$0]  (!%p1872_p10), %s264_s13, 14336, %s266_s16, [#allocation11], %s2180_s18, %s2180_s18, %s2182_s19  }
  0x1d   : > { %p61_p13 = scmp.ne.s32.totalorder %s1750_s26, %s1746_s25  ;;  %p62_p0 = scmp.eq.s32.totalorder %s1762_s29, 0 }
  0x1e   : > { %s2222_s20 = smov (%p41_p12, %s39_s20), 0  ;;  %p1459_p7 = scmp.lt.s32.totalorder %s1762_s29, 2 }
  0x1f   : > { %2204 = sst [smem:[#allocation23_spill]] %s2222_s20  ;;  %p63_p3 = por %p62_p0, %p61_p13 }
  0x20   : > { %p1891_p5 = por %p239_p2, %p61_p13  ;;  %s49_s23 = ssub.s32 %s1758_s28, %s2222_s20 }
  0x21   : > { %p52_p9 = scmp.eq.s32.totalorder %s49_s23, 0  ;;  %s299_s8 = sand.u32 1, %s1750_s26  }
  0x22   : > { %s1899_s11 = sshll.u32 %s299_s8, 4  ;;  %s1902_s12 = sshll.u32 %s1758_s28, 4 }
  0x23   : > { %s1905_s13 = scalar_select %p52_p9, %s1750_s26, %s54_s21  }
  0x24   : > { %p1907_p12 = pnand %p1459_p7, %p63_p3  ;;  %s326_s16 = sand.u32 1, %s1762_s29  }
  0x25   : > { %2206 = sst [smem:[#allocation24_spill]] %s1905_s13  ;;  %s330_s20 = scalar_lea.vmem [#allocation7], %s1899_s11 }
  0x26   : > { %s2208_s1 = sld [smem:[#allocation25_spill]]  ;;  %s340_s28 = sshll.u32 %s330_s20, 4  ;;  %s341_s28 = int_to_ptr.vmem [resolvable:$true] %s340_s28 }
  0x27   : > { %s327_s21 = scalar_lea.sflag [#allocation8], %s326_s16  ;;  %s2209_s13 = smov 8  }
  0x28   : > { %s2210_s26 = smov 128   ;;  %s2211_s5 = sld [smem:[#allocation27_spill]] }
  0x29   : > { %s1767_s18 = smov [#allocation12]   ;;  %s300_s29 = scalar_lea.sflag [#allocation5], %s299_s8 }
  0x2a   : > { %s282_s19 = sshll.u32 %s1767_s18, 4  ;;  %s364_s18 = scalar_lea.hbm %s2174_s2, %s1902_s12  ;;  %s283_s19 = int_to_ptr.vmem [resolvable:$true] %s282_s19 }
  0x2c   : > { %s337_s23 = scalar_lea.hbm %s2208_s1, %s1902_s12 }
  0x2d   : > { %s338_s3 = sshll.u32 %s337_s23, 4  ;;  %s313_s23 = scalar_lea.hbm %s2172_s0, %s1902_s12  ;;  %s339_s3 = int_to_ptr.hbm [resolvable:$true] %s338_s3 }
  0x2e   : > { %1449 = dma.hbm_to_vmem [thread:$0]  (!%p1907_p12), %s339_s3, 256, %s341_s28, %s327_s21, %s2210_s26, %s2210_s26, %s2209_s13  }
  0x2f   : > { %s280_s24 = sshll.u32 %s2211_s5, 4  ;;  %s314_s3 = sshll.u32 %s313_s23, 4  ;;  %s281_s24 = int_to_ptr.hbm [resolvable:$true] %s280_s24  ;;  %s315_s3 = int_to_ptr.hbm [resolvable:$true] %s314_s3 }
  0x30   : > { %1442 = dma.hbm_to_vmem [thread:$0]  (!%p1872_p10), %s281_s24, 14336, %s283_s19, [#allocation11], %s2210_s26, %s2210_s26, %s2209_s13  }
  0x31   : > { %s303_s28 = scalar_lea.vmem [#allocation4], %s1899_s11  ;;  %s365_s24 = sshll.u32 %s364_s18, 4  ;;  %s366_s24 = int_to_ptr.hbm [resolvable:$true] %s365_s24 }
  0x32   : > { %s316_s1 = sshll.u32 %s303_s28, 4  ;;  %s354_s19 = scalar_lea.vmem [#allocation9], %s1899_s11  ;;  %s317_s1 = int_to_ptr.vmem [resolvable:$true] %s316_s1 }
  0x33   : > { %1446 = dma.hbm_to_vmem [thread:$0]  (!%p1907_p12), %s315_s3, 256, %s317_s1, %s300_s29, %s2210_s26, %s2210_s26, %s2209_s13  }
  0x34   : > { %s367_s5 = sshll.u32 %s354_s19, 4  ;;  %379 = sbr.rel (%p1864_p8) target bundleno = 469 (0x1d5), region = 48  ;;  %s368_s5 = int_to_ptr.vmem [resolvable:$true] %s367_s5 }
  0x35   : > { %1452 = dma.hbm_to_vmem [thread:$0]  (!%p1907_p12), %s366_s24, 256, %s368_s5, %s327_s21, %s2210_s26, %s2210_s26, %s2209_s13  }
  0x36   : > { %s1953_s1 = sand.u32 (!%p1864_p8), 1, %s1746_s25  }
  0x37   : > { %s1956_s8 = sshll.u32 (!%p1864_p8), %s1953_s1, 4  ;;  %s382_s11 = scalar_lea.sflag (!%p1864_p8), [#allocation5], %s1953_s1 }
  0x38   : > { %s385_s12 = scalar_lea.vmem (!%p1864_p8), [#allocation4], %s1956_s8 }
  0x39   : > { %1725 = dma.done.wait (%p1851_p4), %s382_s11, 256  }
  0x3a   : > { %1727 = vsyncadd (%p1851_p4), %s382_s11, 4294967040  ;;  %s391_s5 = sand.u32 1, %s1842_s30   ;;  %s395_s14 = scalar_lea.vmem [#allocation7], %s1956_s8 }
  0x3b   : > { %s392_s26 = scalar_lea.sflag [#allocation8], %s391_s5 }
  0x3c   : > { %1729 = dma.done.wait (%p1851_p4), %s392_s26, 512  }
  0x3d   : > { %1731 = vsyncadd (%p1851_p4), %s392_s26, 4294966784  ;;  %s405_s13 = scalar_lea.vmem [#allocation9], %s1956_s8 }
  0x3e   : > { %1733 = dma.done.wait (%p68_p1), [#allocation11], 28672  }
  0x3f   : > { %1735 = vsyncadd (%p68_p1), [#allocation11], 4294938624  ;;  %v519_v0 = vld [vmem:[#allocation10 + $0xf8] sm:$0xff]  ;;  %v518_v2 = vld [vmem:[#allocation10 + $0xf0] sm:$0xff]  ;;  %v1768_v59 = vmov 0.0   ;;  %s456_s20 = scalar_lea.vmem [#allocation13], %s1956_s8 }
  0x40   : > { %v591_v1 = vld [vmem:[#allocation10 + $0x178] sm:$0xff]  ;;  %520 = vmatpush.msra.mxu0 %v519_v0  ;;  %v590_v4 = vld [vmem:[#allocation10 + $0x170] sm:$0xff]  ;;  %v517_v5 = vld [vmem:[#allocation10 + $0xe8] sm:$0xff]  ;;  %s1387_s16 = sshll.u32 %s1754_s27, 4  ;;  %s1199_s29 = sshll.u32 %s456_s20, 4  ;;  %s1200_s29 = int_to_ptr.vmem [resolvable:$true] %s1199_s29 }
  0x41   : > { %592 = vmatpush.msra.mxu2 %v591_v1  ;;  %v499_v3 = vld [vmem:[#allocation10 + $0x78] sm:$0xff]  ;;  %v498_v6 = vld [vmem:[#allocation10 + $0x70] sm:$0xff]  ;;  %v589_v7 = vld [vmem:[#allocation10 + $0x168] sm:$0xff]  ;;  %s1198_s28 = scalar_lea.hbm %s2179_s7, %s1387_s16  ;;  %s1185_s17 = scalar_lea.sflag [#allocation6], %s1953_s1 }
  0x42   : > { %546 = vmatpush.msra.mxu1 %v499_v3  ;;  %521 = vmatpush.msra.mxu0 %v518_v2  ;;  %v497_v8 = vld [vmem:[#allocation10 + $0x68] sm:$0xff]  ;;  %v640_v9 = vld [vmem:[#allocation10 + $0x1f8] sm:$0xff]  ;;  %v516_v10 = vld [vmem:[#allocation10 + $0xe0] sm:$0xff]  ;;  %s1201_s10 = sshll.u32 %s1198_s28, 4  ;;  %s1692_s8 = scalar_lea.hbm %s2179_s7, 32  ;;  %s1202_s10 = int_to_ptr.hbm [resolvable:$true] %s1201_s10 }
  0x43   : > { %593 = vmatpush.msra.mxu2 %v590_v4  ;;  %v588_v11 = vld [vmem:[#allocation10 + $0x160] sm:$0xff]  ;;  %641 = vmatpush.msra.mxu3 %v640_v9  ;;  %v639_v13 = vld [vmem:[#allocation10 + $0x1f0] sm:$0xff]  ;;  %v515_v14 = vld [vmem:[#allocation10 + $0xd8] sm:$0xff]  ;;  %s1686_s27 = sshra.s32 %s1202_s10, 4  ;;  %s1687_s27 = int_to_ptr.hbm [resolvable:$true] %s1686_s27 }
  0x44   : > { %547 = vmatpush.msra.mxu1 %v498_v6  ;;  %522 = vmatpush.msra.mxu0 %v517_v5  ;;  %v496_v12 = vld [vmem:[#allocation10 + $0x60] sm:$0xff]  ;;  %v587_v15 = vld [vmem:[#allocation10 + $0x158] sm:$0xff]  ;;  %v638_v16 = vld [vmem:[#allocation10 + $0x1e8] sm:$0xff]  ;;  %s1688_s18 = scalar_lea.hbm %s1687_s27, 16  ;;  %p1693_p8 = scmp.lt.s32.totalorder %s1687_s27, %s2179_s7 }
  0x45   : > { %594 = vmatpush.msra.mxu2 %v589_v7  ;;  %642 = vmatpush.msra.mxu3 %v639_v13  ;;  %v495_v17 = vld [vmem:[#allocation10 + $0x58] sm:$0xff]  ;;  %v637_v18 = vld [vmem:[#allocation10 + $0x1e0] sm:$0xff]  ;;  %v514_v19 = vld [vmem:[#allocation10 + $0xd0] sm:$0xff]  ;;  %p1689_p1 = scmp.ne.s32.totalorder %s1687_s27, %s1688_s18  ;;  %p1694_p10 = scmp.lt.s32.totalorder %s1692_s8, %s1688_s18 }
  0x46   : > { %548 = vmatpush.msra.mxu1 %v497_v8  ;;  %523 = vmatpush.msra.mxu0 %v516_v10  ;;  %v586_v20 = vld [vmem:[#allocation10 + $0x150] sm:$0xff]  ;;  %v636_v22 = vld [vmem:[#allocation10 + $0x1d8] sm:$0xff]  ;;  %v513_v23 = vld [vmem:[#allocation10 + $0xc8] sm:$0xff] }
  0x47   : > { %595 = vmatpush.msra.mxu2 %v588_v11  ;;  %643 = vmatpush.msra.mxu3 %v638_v16  ;;  %v494_v21 = vld [vmem:[#allocation10 + $0x50] sm:$0xff]  ;;  %v585_v24 = vld [vmem:[#allocation10 + $0x148] sm:$0xff]  ;;  %v512_v27 = vld [vmem:[#allocation10 + $0xc0] sm:$0xff]  ;;  %p1690_p2 = pnand %p1689_p1, %p1891_p5  ;;  %p1695_p13 = por %p1694_p10, %p1693_p8 }
  0x48   : > { %549 = vmatpush.msra.mxu1 %v496_v12  ;;  %524 = vmatpush.msra.mxu0 %v515_v14  ;;  %v493_v25 = vld [vmem:[#allocation10 + $0x48] sm:$0xff]  ;;  %v635_v26 = vld [vmem:[#allocation10 + $0x1d0] sm:$0xff]  ;;  %v584_v28 = vld [vmem:[#allocation10 + $0x140] sm:$0xff] }
  0x49   : > { %596 = vmatpush.msra.mxu2 %v587_v15  ;;  %644 = vmatpush.msra.mxu3 %v637_v18  ;;  %v492_v29 = vld [vmem:[#allocation10 + $0x40] sm:$0xff]  ;;  %v634_v30 = vld [vmem:[#allocation10 + $0x1c8] sm:$0xff]  ;;  %v511_v31 = vld [vmem:[#allocation10 + $0xb8] sm:$0xff]  ;;  %p1691_p4 = pneg %p1690_p2 }
  0x4a   : > { %550 = vmatpush.msra.mxu1 %v495_v17  ;;  %525 = vmatpush.msra.mxu0 %v514_v19  ;;  %v583_v32 = vld [vmem:[#allocation10 + $0x138] sm:$0xff]  ;;  %v633_v34 = vld [vmem:[#allocation10 + $0x1c0] sm:$0xff]  ;;  %v510_v35 = vld [vmem:[#allocation10 + $0xb0] sm:$0xff] }
  0x4b   : > { %597 = vmatpush.msra.mxu2 %v586_v20  ;;  %645 = vmatpush.msra.mxu3 %v636_v22  ;;  %v491_v33 = vld [vmem:[#allocation10 + $0x38] sm:$0xff]  ;;  %v582_v36 = vld [vmem:[#allocation10 + $0x130] sm:$0xff]  ;;  %v509_v39 = vld [vmem:[#allocation10 + $0xa8] sm:$0xff]  ;;  %p1696_p0 = pnand %p1695_p13, %p1691_p4 }
  0x4c   : > { %551 = vmatpush.msra.mxu1 %v494_v21  ;;  %526 = vmatpush.msra.mxu0 %v513_v23  ;;  %v490_v37 = vld [vmem:[#allocation10 + $0x30] sm:$0xff]  ;;  %v632_v38 = vld [vmem:[#allocation10 + $0x1b8] sm:$0xff]  ;;  %v581_v40 = vld [vmem:[#allocation10 + $0x128] sm:$0xff] }
  0x4d   : > { %598 = vmatpush.msra.mxu2 %v585_v24  ;;  %646 = vmatpush.msra.mxu3 %v635_v26  ;;  %v489_v41 = vld [vmem:[#allocation10 + $0x28] sm:$0xff]  ;;  %v631_v42 = vld [vmem:[#allocation10 + $0x1b0] sm:$0xff]  ;;  %v508_v43 = vld [vmem:[#allocation10 + $0xa0] sm:$0xff] }
  0x4e   : > { %552 = vmatpush.msra.mxu1 %v493_v25  ;;  %527 = vmatpush.msra.mxu0 %v512_v27  ;;  %v580_v44 = vld [vmem:[#allocation10 + $0x120] sm:$0xff]  ;;  %v630_v46 = vld [vmem:[#allocation10 + $0x1a8] sm:$0xff]  ;;  %v507_v47 = vld [vmem:[#allocation10 + $0x98] sm:$0xff] }
  0x4f   : > { %599 = vmatpush.msra.mxu2 %v584_v28  ;;  %647 = vmatpush.msra.mxu3 %v634_v30  ;;  %v488_v45 = vld [vmem:[#allocation10 + $0x20] sm:$0xff]  ;;  %v579_v48 = vld [vmem:[#allocation10 + $0x118] sm:$0xff]  ;;  %v506_v52 = vld [vmem:[#allocation10 + $0x90] sm:$0xff] }
  0x50   : > { %553 = vmatpush.msra.mxu1 %v492_v29  ;;  %528 = vmatpush.msra.mxu0 %v511_v31  ;;  %v487_v49 = vld [vmem:[#allocation10 + $0x18] sm:$0xff]  ;;  %v629_v50 = vld [vmem:[#allocation10 + $0x1a0] sm:$0xff]  ;;  %v578_v53 = vld [vmem:[#allocation10 + $0x110] sm:$0xff] }
  0x51   : > { %600 = vmatpush.msra.mxu2 %v583_v32  ;;  %648 = vmatpush.msra.mxu3 %v633_v34  ;;  %v467_v51 = vld [vmem:[%s385_s12 + $0xa] sm:$0x3f]  ;;  %v1979_v54 = vld [vmem:[%s395_s14] sm:$0xff] }
  0x52   : > { %554 = vmatpush.msra.mxu1 %v491_v33  ;;  %529 = vmatpush.msra.mxu0 %v510_v35  ;;  %468 = vst [vmem:[#allocation2 + $0xa] sm:$0x3f] %v467_v51  ;;  %v486_v55 = vld [vmem:[#allocation10 + $0x10] sm:$0xff]  ;;  %v628_v56 = vld [vmem:[#allocation10 + $0x198] sm:$0xff]  ;;  %v505_v57 = vld [vmem:[#allocation10 + $0x88] sm:$0xff] }
  0x53   : > { %601 = vmatpush.msra.mxu2 %v582_v36  ;;  %649 = vmatpush.msra.mxu3 %v632_v38  ;;  %471 = vst [vmem:[#allocation2 + $0x10] sm:$0xff] %v1979_v54  ;;  %v577_v58 = vld [vmem:[#allocation10 + $0x108] sm:$0xff]  ;;  %v627_v61 = vld [vmem:[#allocation10 + $0x190] sm:$0xff]  ;;  %v504_v62 = vld [vmem:[#allocation10 + $0x80] sm:$0xff] }
  0x54   : > { %555 = vmatpush.msra.mxu1 %v490_v37  ;;  %530 = vmatpush.msra.mxu0 %v509_v39  ;;  %479 = vst [vmem:[#allocation2 + $0xa] sm:$0x3f] %v1768_v59  ;;  %v485_v60 = vld [vmem:[#allocation10 + $0x8] sm:$0xff]  ;;  %v576_v63 = vld [vmem:[#allocation10 + $0x100] sm:$0xff]  ;;  %v689_v1 = vld [vmem:[#allocation10 + $0x278] sm:$0xff] }
  0x55   : > { %602 = vmatpush.msra.mxu2 %v581_v40  ;;  %650 = vmatpush.msra.mxu3 %v631_v42  ;;  %v1985_v0 = vld [vmem:[%s395_s14 + $0x8] sm:$0xff]  ;;  %v484_v3 = vld [vmem:[#allocation10] sm:$0xff]  ;;  %v688_v5 = vld [vmem:[#allocation10 + $0x270] sm:$0xff] }
  0x56   : > { %556 = vmatpush.msra.mxu1 %v489_v41  ;;  %531 = vmatpush.msra.mxu0 %v508_v43  ;;  %v787_v2 = vld [vmem:[#allocation10 + $0x378] sm:$0xff]  ;;  %472 = vst [vmem:[#allocation2 + $0x18] sm:$0xff] %v1985_v0  ;;  %v626_v4 = vld [vmem:[#allocation10 + $0x188] sm:$0xff]  ;;  %v786_v7 = vld [vmem:[#allocation10 + $0x370] sm:$0xff] }
  0x57   : > { %603 = vmatpush.msra.mxu2 %v580_v44  ;;  %651 = vmatpush.msra.mxu3 %v630_v46  ;;  %v738_v6 = vld [vmem:[#allocation10 + $0x2f8] sm:$0xff]  ;;  %v625_v8 = vld [vmem:[#allocation10 + $0x180] sm:$0xff]  ;;  %v687_v9 = vld [vmem:[#allocation10 + $0x268] sm:$0xff] }
  0x58   : > { %557 = vmatpush.msra.mxu1 %v488_v45  ;;  %532 = vmatpush.msra.mxu0 %v507_v47  ;;  %v737_v10 = vld [vmem:[#allocation10 + $0x2f0] sm:$0xff]  ;;  %v785_v11 = vld [vmem:[#allocation10 + $0x368] sm:$0xff]  ;;  %v686_v15 = vld [vmem:[#allocation10 + $0x260] sm:$0xff] }
  0x59   : > { %604 = vmatpush.msra.mxu2 %v579_v48  ;;  %652 = vmatpush.msra.mxu3 %v629_v50  ;;  %v473_v13 = vld [vmem:[%s405_s13] sm:$0x3f]  ;;  %v736_v16 = vld [vmem:[#allocation10 + $0x2e8] sm:$0xff]  ;;  %v685_v19 = vld [vmem:[#allocation10 + $0x258] sm:$0xff] }
  0x5a   : > { %558 = vmatpush.msra.mxu1 %v487_v49  ;;  %533 = vmatpush.msra.mxu0 %v506_v52  ;;  %474 = vst [vmem:[#allocation2 + $0x20] sm:$0x3f] %v473_v13  ;;  %v784_v17 = vld [vmem:[#allocation10 + $0x360] sm:$0xff]  ;;  %v783_v21 = vld [vmem:[#allocation10 + $0x358] sm:$0xff]  ;;  %v684_v23 = vld [vmem:[#allocation10 + $0x250] sm:$0xff] }
  0x5b   : > { %605 = vmatpush.msra.mxu2 %v578_v53  ;;  %653 = vmatpush.msra.mxu3 %v628_v56  ;;  %v500_v12 = vld [vmem:[#allocation2 + $0xb] sm:$0xff]  ;;  %480 = vst [vmem:[#allocation2 + $0x20] sm:$0x3f] %v1768_v59  ;;  %v734_v24 = vld [vmem:[#allocation10 + $0x2d8] sm:$0xff]  ;;  %v782_v25 = vld [vmem:[#allocation10 + $0x350] sm:$0xff] }
  0x5c   : > { %559 = vmatpush.msra.mxu1 %v486_v55  ;;  %534 = vmatpush.msra.mxu0 %v505_v57  ;;  %v572_v14 = vld [vmem:[#allocation2 + $0xc] sm:$0xff]  ;;  %v733_v27 = vld [vmem:[#allocation10 + $0x2d0] sm:$0xff]  ;;  %v681_v35 = vld [vmem:[#allocation10 + $0x238] sm:$0xff] }
  0x5d   : > { %606 = vmatpush.msra.mxu2 %v577_v58  ;;  %654 = vmatpush.msra.mxu3 %v627_v61  ;;  %v621_v18 = vld [vmem:[#allocation2 + $0xd] sm:$0xff]  ;;  %v622_v34 = vld [vmem:[#allocation2 + $0x15] sm:$0xff]  ;;  %v779_v37 = vld [vmem:[#allocation10 + $0x338] sm:$0xff] }
  0x5e   : > { %560 = vmatpush.msra.mxu1 %v485_v60  ;;  %535 = vmatpush.msra.mxu0 %v504_v62  ;;  %v735_v20 = vld [vmem:[#allocation10 + $0x2e0] sm:$0xff]  ;;  %v683_v26 = vld [vmem:[#allocation10 + $0x248] sm:$0xff]  ;;  %v680_v39 = vld [vmem:[#allocation10 + $0x230] sm:$0xff] }
  0x5f   : > { %607 = vmatpush.msra.mxu2 %v576_v63  ;;  %655 = vmatpush.msra.mxu3 %v626_v4  ;;  %v481_v22 = vld [vmem:[#allocation2 + $0xa] sm:$0xff]  ;;  %v573_v29 = vld [vmem:[#allocation2 + $0x14] sm:$0xff]  ;;  %v730_v40 = vld [vmem:[#allocation10 + $0x2b8] sm:$0xff] }
  0x60   : > { %690 = vmatpush.msrb.mxu0 %v689_v1  ;;  %561 = vmatpush.msra.mxu1 %v484_v3  ;;  %v781_v28 = vld [vmem:[#allocation10 + $0x348] sm:$0xff]  ;;  %v682_v30 = vld [vmem:[#allocation10 + $0x240] sm:$0xff]  ;;  %v778_v41 = vld [vmem:[#allocation10 + $0x330] sm:$0xff] }
  0x61   : > { %788 = vmatpush.msrb.mxu2 %v787_v2  ;;  %656 = vmatpush.msra.mxu3 %v625_v8  ;;  %v732_v31 = vld [vmem:[#allocation10 + $0x2c8] sm:$0xff]  ;;  %v780_v32 = vld [vmem:[#allocation10 + $0x340] sm:$0xff]  ;;  %v729_v43 = vld [vmem:[#allocation10 + $0x2b0] sm:$0xff] }
  0x62   : > { %691 = vmatpush.msrb.mxu0 %v688_v5  ;;  %739 = vmatpush.msrb.mxu1 %v738_v6  ;;  %v501_v33 = vld [vmem:[#allocation2 + $0x13] sm:$0xff]  ;;  %v731_v36 = vld [vmem:[#allocation10 + $0x2c0] sm:$0xff]  ;;  %v574_v45 = vld [vmem:[#allocation2 + $0x1c] sm:$0x3f] }
  0x63   : > { %789 = vmatpush.msrb.mxu2 %v786_v7  ;;  %536 = vmatmul.f32.vlgmr.msra.gmra.mxu0 %v500_v12  ;;  %v482_v38 = vld [vmem:[#allocation2 + $0x12] sm:$0xff]  ;;  %v678_v46 = vld [vmem:[#allocation10 + $0x220] sm:$0xff]  ;;  %v502_v49 = vld [vmem:[#allocation2 + $0x1b] sm:$0x3f] }
  0x64   : > { %692 = vmatpush.msrb.mxu0 %v687_v9  ;;  %740 = vmatpush.msrb.mxu1 %v737_v10  ;;  %v679_v42 = vld [vmem:[#allocation10 + $0x228] sm:$0xff]  ;;  %v776_v48 = vld [vmem:[#allocation10 + $0x320] sm:$0xff]  ;;  %v623_v50 = vld [vmem:[#allocation2 + $0x1d] sm:$0x3f] }
  0x65   : > { %790 = vmatpush.msrb.mxu2 %v785_v11  ;;  %657 = vmatmul.f32.vlgmr.msra.gmra.mxu3 %v621_v18  ;;  %v777_v44 = vld [vmem:[#allocation10 + $0x328] sm:$0xff]  ;;  %v677_v51 = vld [vmem:[#allocation10 + $0x218] sm:$0xff]  ;;  %v727_v52 = vld [vmem:[#allocation10 + $0x2a0] sm:$0xff] }
  0x66   : > { %608 = vmatmul.f32.vlgmr.msra.gmra.mxu2 %v572_v14  ;;  %693 = vmatpush.msrb.mxu0 %v686_v15  ;;  %v728_v47 = vld [vmem:[#allocation10 + $0x2a8] sm:$0xff]  ;;  %v775_v53 = vld [vmem:[#allocation10 + $0x318] sm:$0xff]  ;;  %v483_v55 = vld [vmem:[#allocation2 + $0x1a] sm:$0x3f] }
  0x67   : > { %741 = vmatpush.msrb.mxu1 %v736_v16  ;;  %791 = vmatpush.msrb.mxu2 %v784_v17  ;;  %v676_v56 = vld [vmem:[#allocation10 + $0x210] sm:$0xff]  ;;  %v726_v57 = vld [vmem:[#allocation10 + $0x298] sm:$0xff]  ;;  %v675_v60 = vld [vmem:[#allocation10 + $0x208] sm:$0xff] }
  0x68   : > { %694 = vmatpush.msrb.mxu0 %v685_v19  ;;  %562 = vmatmul.f32.vlgmr.msra.gmra.mxu1 %v481_v22  ;;  %v774_v58 = vld [vmem:[#allocation10 + $0x310] sm:$0xff]  ;;  %v773_v62 = vld [vmem:[#allocation10 + $0x308] sm:$0xff]  ;;  %v674_v63 = vld [vmem:[#allocation10 + $0x200] sm:$0xff] }
  0x69   : > { %742 = vmatpush.msrb.mxu1 %v735_v20  ;;  %792 = vmatpush.msrb.mxu2 %v783_v21  ;;  %v725_v61 = vld [vmem:[#allocation10 + $0x290] sm:$0xff]  ;;  %v724_v1 = vld [vmem:[#allocation10 + $0x288] sm:$0xff]  ;;  %v772_v2 = vld [vmem:[#allocation10 + $0x300] sm:$0xff] }
  0x6a   : > { %695 = vmatpush.msrb.mxu0 %v684_v23  ;;  %v670_v3 = vld [vmem:[#allocation2 + $0xe] sm:$0xff]  ;;  %v671_v6 = vld [vmem:[#allocation2 + $0x16] sm:$0xff]  ;;  %v672_v8 = vld [vmem:[#allocation2 + $0x1e] sm:$0x3f] }
  0x6b   : > { %743 = vmatpush.msrb.mxu1 %v734_v24  ;;  %793 = vmatpush.msrb.mxu2 %v782_v25  ;;  %v723_v4 = vld [vmem:[#allocation10 + $0x280] sm:$0xff]  ;;  %v720_v7 = vld [vmem:[#allocation2 + $0x17] sm:$0xff]  ;;  %v770_v9 = vld [vmem:[#allocation2 + $0x20] sm:$0x3f] }
  0x6c   : > { %696 = vmatpush.msrb.mxu0 %v683_v26  ;;  %v719_v5 = vld [vmem:[#allocation2 + $0xf] sm:$0xff]  ;;  %v721_v10 = vld [vmem:[#allocation2 + $0x1f] sm:$0x3f] }
  0x6d   : > { %744 = vmatpush.msrb.mxu1 %v733_v27  ;;  %794 = vmatpush.msrb.mxu2 %v781_v28  ;;  %v903_v11 = vld [vmem:[#allocation12 + $0xf8] sm:$0xff]  ;;  %v902_v13 = vld [vmem:[#allocation12 + $0xf0] sm:$0xff]  ;;  %v901_v14 = vld [vmem:[#allocation12 + $0xe8] sm:$0xff] }
  0x6e   : > { %611 = vmatmul.f32.gmra.mxu2 %v573_v29  ;;  %697 = vmatpush.msrb.mxu0 %v682_v30  ;;  %v884_v12 = vld [vmem:[#allocation12 + $0x78] sm:$0xff]  ;;  %v882_v15 = vld [vmem:[#allocation12 + $0x68] sm:$0xff]  ;;  %v881_v16 = vld [vmem:[#allocation12 + $0x60] sm:$0xff] }
  0x6f   : > { %745 = vmatpush.msrb.mxu1 %v732_v31  ;;  %795 = vmatpush.msrb.mxu2 %v780_v32  ;;  %v899_v17 = vld [vmem:[#allocation12 + $0xd8] sm:$0xff]  ;;  %v898_v19 = vld [vmem:[#allocation12 + $0xd0] sm:$0xff]  ;;  %v897_v21 = vld [vmem:[#allocation12 + $0xc8] sm:$0xff] }
  0x70   : > { %539 = vmatmul.f32.gmra.mxu0 %v501_v33  ;;  %660 = vmatmul.f32.gmra.mxu3 %v622_v34  ;;  %v880_v18 = vld [vmem:[#allocation12 + $0x58] sm:$0xff]  ;;  %v879_v20 = vld [vmem:[#allocation12 + $0x50] sm:$0xff]  ;;  %v878_v22 = vld [vmem:[#allocation12 + $0x48] sm:$0xff] }
  0x71   : > { %698 = vmatpush.msrb.mxu0 %v681_v35  ;;  %746 = vmatpush.msrb.mxu1 %v731_v36  ;;  %v896_v23 = vld [vmem:[#allocation12 + $0xc0] sm:$0xff]  ;;  %v968_v25 = vld [vmem:[#allocation12 + $0x178] sm:$0xff]  ;;  %v967_v29 = vld [vmem:[#allocation12 + $0x170] sm:$0xff] }
  0x72   : > { %796 = vmatpush.msrb.mxu2 %v779_v37  ;;  %565 = vmatmul.f32.gmra.mxu1 %v482_v38  ;;  %v877_v24 = vld [vmem:[#allocation12 + $0x40] sm:$0xff]  ;;  %v1012_v26 = vld [vmem:[#allocation12 + $0x1f8] sm:$0xff]  ;;  %v1011_v30 = vld [vmem:[#allocation12 + $0x1f0] sm:$0xff] }
  0x73   : > { %699 = vmatpush.msrb.mxu0 %v680_v39  ;;  %747 = vmatpush.msrb.mxu1 %v730_v40  ;;  %v895_v27 = vld [vmem:[#allocation12 + $0xb8] sm:$0xff]  ;;  %v875_v31 = vld [vmem:[#allocation12 + $0x30] sm:$0xff]  ;;  %v966_v33 = vld [vmem:[#allocation12 + $0x168] sm:$0xff] }
  0x74   : > { %797 = vmatpush.msrb.mxu2 %v778_v41  ;;  %904 = vmatpush.msrb.mxu3 %v903_v11  ;;  %v876_v28 = vld [vmem:[#allocation12 + $0x38] sm:$0xff]  ;;  %v894_v32 = vld [vmem:[#allocation12 + $0xb0] sm:$0xff]  ;;  %v1010_v34 = vld [vmem:[#allocation12 + $0x1e8] sm:$0xff] }
  0x75   : > { %700 = vmatpush.msrb.mxu0 %v679_v42  ;;  %748 = vmatpush.msrb.mxu1 %v729_v43  ;;  %v874_v35 = vld [vmem:[#allocation12 + $0x28] sm:$0xff]  ;;  %v965_v37 = vld [vmem:[#allocation12 + $0x160] sm:$0xff]  ;;  %v964_v41 = vld [vmem:[#allocation12 + $0x158] sm:$0xff] }
  0x76   : > { %798 = vmatpush.msrb.mxu2 %v777_v44  ;;  %905 = vmatpush.msrb.mxu3 %v902_v13  ;;  %v893_v36 = vld [vmem:[#allocation12 + $0xa8] sm:$0xff]  ;;  %v1009_v38 = vld [vmem:[#allocation12 + $0x1e0] sm:$0xff]  ;;  %v1008_v42 = vld [vmem:[#allocation12 + $0x1d8] sm:$0xff] }
  0x77   : > { %614 = vmatmul.f32.gmra.mxu2 %v574_v45  ;;  %701 = vmatpush.msrb.mxu0 %v678_v46  ;;  %v873_v39 = vld [vmem:[#allocation12 + $0x20] sm:$0xff]  ;;  %v872_v43 = vld [vmem:[#allocation12 + $0x18] sm:$0xff]  ;;  %v963_v45 = vld [vmem:[#allocation12 + $0x150] sm:$0xff] }
  0x78   : > { %749 = vmatpush.msrb.mxu1 %v728_v47  ;;  %799 = vmatpush.msrb.mxu2 %v776_v48  ;;  %v892_v40 = vld [vmem:[#allocation12 + $0xa0] sm:$0xff]  ;;  %v891_v44 = vld [vmem:[#allocation12 + $0x98] sm:$0xff]  ;;  %v1007_v46 = vld [vmem:[#allocation12 + $0x1d0] sm:$0xff] }
  0x79   : > { %542 = vmatmul.f32.gmra.mxu0 %v502_v49  ;;  %663 = vmatmul.f32.gmra.mxu3 %v623_v50  ;;  %v871_v47 = vld [vmem:[#allocation12 + $0x10] sm:$0xff]  ;;  %v962_v49 = vld [vmem:[#allocation12 + $0x148] sm:$0xff]  ;;  %v2007_v11 = vld [vmem:[#allocation12 + $0x2e0] sm:$0xff] }
  0x7a   : > { %702 = vmatpush.msrb.mxu0 %v677_v51  ;;  %750 = vmatpush.msrb.mxu1 %v727_v52  ;;  %v890_v48 = vld [vmem:[#allocation12 + $0x90] sm:$0xff]  ;;  %v1006_v50 = vld [vmem:[#allocation12 + $0x1c8] sm:$0xff]  ;;  %v1001_v13 = vld [vmem:[#allocation12 + $0x1a0] sm:$0xff] }
  0x7b   : > { %800 = vmatpush.msrb.mxu2 %v775_v53  ;;  %568 = vmatmul.f32.gmra.mxu1 %v483_v55  ;;  %v889_v51 = vld [vmem:[#allocation12 + $0x88] sm:$0xff]  ;;  %v961_v55 = vld [vmem:[#allocation12 + $0x140] sm:$0xff] }
  0x7c   : > { %703 = vmatpush.msrb.mxu0 %v676_v56  ;;  %751 = vmatpush.msrb.mxu1 %v726_v57  ;;  %v870_v52 = vld [vmem:[#allocation12 + $0x8] sm:$0xff]  ;;  %v1005_v56 = vld [vmem:[#allocation12 + $0x1c0] sm:$0xff] }
  0x7d   : > { %801 = vmatpush.msrb.mxu2 %v774_v58  ;;  %906 = vmatpush.msrb.mxu3 %v901_v14  ;;  %v869_v57 = vld [vmem:[#allocation12] sm:$0xff] }
  0x7e   : > { %704 = vmatpush.msrb.mxu0 %v675_v60  ;;  %752 = vmatpush.msrb.mxu1 %v725_v61  ;;  %v888_v58 = vld [vmem:[#allocation12 + $0x80] sm:$0xff]  ;;  %v1995_v60 = vld [vmem:[#allocation12 + $0x2f8] sm:$0xff] }
  0x7f   : > { %802 = vmatpush.msrb.mxu2 %v773_v62  ;;  %v960_v61 = vld [vmem:[#allocation12 + $0x138] sm:$0xff] }
  0x80   : > { %705 = vmatpush.msrb.mxu0 %v674_v63  ;;  %753 = vmatpush.msrb.mxu1 %v724_v1  ;;  %v1004_v62 = vld [vmem:[#allocation12 + $0x1b8] sm:$0xff] }
  0x81   : > { %803 = vmatpush.msrb.mxu2 %v772_v2  ;;  %706 = vmatmul.f32.vlgmr.msrb.gmra.mxu0 %v670_v3  ;;  %v1056_v1 = vld [vmem:[#allocation12 + $0x278] sm:$0xff]  ;;  %v1999_v2 = vld [vmem:[#allocation12 + $0x2f0] sm:$0xff] }
  0x82   : > { %804 = vmatmul.f32.vlgmr.msrb.gmra.mxu2 %v1979_v54  ;;  %754 = vmatpush.msrb.mxu1 %v723_v4  ;;  %v883_v54 = vld [vmem:[#allocation12 + $0x70] sm:$0xff] }
  0x83   : > { %755 = vmatmul.f32.vlgmr.msrb.gmra.mxu1 %v719_v5  ;;  %927 = vmatpush.msra.mxu0 %v884_v12  ;;  %v959_v3 = vld [vmem:[#allocation12 + $0x130] sm:$0xff]  ;;  %v957_v12 = vld [vmem:[#allocation12 + $0x120] sm:$0xff] }
  0x84   : > { %969 = vmatpush.msra.mxu1 %v968_v25  ;;  %1013 = vmatpush.msra.mxu2 %v1012_v26  ;;  %v1003_v4 = vld [vmem:[#allocation12 + $0x1b0] sm:$0xff]  ;;  %v998_v25 = vld [vmem:[#allocation12 + $0x188] sm:$0xff] }
  0x85   : > { %928 = vmatpush.msra.mxu0 %v883_v54  ;;  %v1055_v5 = vld [vmem:[#allocation12 + $0x270] sm:$0xff]  ;;  %v1053_v54 = vld [vmem:[#allocation12 + $0x260] sm:$0xff]  ;;  %v1050_v26 = vld [vmem:[#allocation12 + $0x248] sm:$0xff] }
  0x86   : > { %970 = vmatpush.msra.mxu1 %v967_v29  ;;  %1014 = vmatpush.msra.mxu2 %v1011_v30  ;;  %v953_v29 = vld [vmem:[#allocation12 + $0x100] sm:$0xff] }
  0x87   : > { %929 = vmatpush.msra.mxu0 %v882_v15  ;;  %v2012_v15 = vld [vmem:[#allocation12 + $0x2d8] sm:$0xff]  ;;  %v997_v30 = vld [vmem:[#allocation12 + $0x180] sm:$0xff] }
  0x88   : > { %971 = vmatpush.msra.mxu1 %v966_v33  ;;  %1015 = vmatpush.msra.mxu2 %v1010_v34 }
  0x89   : > { %709 = vmatmul.f32.gmra.mxu0 %v671_v6 }
  0x8a   : > { %807 = vmatmul.f32.gmra.mxu2 %v1985_v0  ;;  %v900_v0 = vld [vmem:[#allocation12 + $0xe0] sm:$0xff]  ;;  %930 = vmatpush.msra.mxu0 %v881_v16  ;;  %v1000_v16 = vld [vmem:[#allocation12 + $0x198] sm:$0xff] }
  0x8b   : > { %758 = vmatmul.f32.gmra.mxu1 %v720_v7  ;;  %907 = vmatpush.msrb.mxu3 %v900_v0  ;;  %v2004_v7 = vld [vmem:[#allocation12 + $0x2e8] sm:$0xff]  ;;  %v956_v0 = vld [vmem:[#allocation12 + $0x118] sm:$0xff] }
  0x8c   : > { %931 = vmatpush.msra.mxu0 %v880_v18  ;;  %972 = vmatpush.msra.mxu1 %v965_v37 }
  0x8d   : > { %908 = vmatpush.msrb.mxu3 %v899_v17  ;;  %1016 = vmatpush.msra.mxu2 %v1009_v38  ;;  %v1052_v17 = vld [vmem:[#allocation12 + $0x258] sm:$0xff]  ;;  %v2038_v38 = vld [vmem:[#allocation12 + $0x370] sm:$0xff] }
  0x8e   : > { %932 = vmatpush.msra.mxu0 %v879_v20  ;;  %973 = vmatpush.msra.mxu1 %v964_v41  ;;  %v955_v20 = vld [vmem:[#allocation12 + $0x110] sm:$0xff] }
  0x8f   : > { %909 = vmatpush.msrb.mxu3 %v898_v19  ;;  %1017 = vmatpush.msra.mxu2 %v1008_v42  ;;  %v2017_v19 = vld [vmem:[#allocation12 + $0x2d0] sm:$0xff]  ;;  %v2047_v42 = vld [vmem:[#allocation12 + $0x368] sm:$0xff] }
  0x90   : > { %933 = vmatpush.msra.mxu0 %v878_v22  ;;  %974 = vmatpush.msra.mxu1 %v963_v45  ;;  %v1051_v22 = vld [vmem:[#allocation12 + $0x250] sm:$0xff]  ;;  %v2052_v45 = vld [vmem:[#allocation12 + $0x2a8] sm:$0xff] }
  0x91   : > { %712 = vmatmul.f32.gmra.mxu0 %v672_v8  ;;  %910 = vmatpush.msrb.mxu3 %v897_v21  ;;  %v958_v8 = vld [vmem:[#allocation12 + $0x128] sm:$0xff]  ;;  %v999_v21 = vld [vmem:[#allocation12 + $0x190] sm:$0xff] }
  0x92   : > { %810 = vmatmul.f32.gmra.mxu2 %v770_v9  ;;  %934 = vmatpush.msra.mxu0 %v877_v24  ;;  %v1002_v9 = vld [vmem:[#allocation12 + $0x1a8] sm:$0xff]  ;;  %v2044_v41 = vld [vmem:[#allocation12 + $0x2b0] sm:$0xff] }
  0x93   : > { %761 = vmatmul.f32.gmra.mxu1 %v721_v10  ;;  %911 = vmatpush.msrb.mxu3 %v896_v23  ;;  %v1054_v10 = vld [vmem:[#allocation12 + $0x268] sm:$0xff] }
  0x94   : > { %935 = vmatpush.msra.mxu0 %v876_v28  ;;  %1018 = vmatpush.msra.mxu2 %v1007_v46  ;;  %v2020_v23 = vld [vmem:[#allocation12 + $0x2c8] sm:$0xff]  ;;  %v2025_v28 = vld [vmem:[#allocation12 + $0x2c0] sm:$0xff] }
  0x95   : > { %912 = vmatpush.msrb.mxu3 %v895_v27  ;;  %975 = vmatpush.msra.mxu1 %v962_v49  ;;  %v954_v24 = vld [vmem:[#allocation12 + $0x108] sm:$0xff]  ;;  %v2055_v46 = vld [vmem:[#allocation12 + $0x360] sm:$0xff] }
  0x96   : > { %936 = vmatpush.msra.mxu0 %v875_v31  ;;  %1019 = vmatpush.msra.mxu2 %v1006_v50  ;;  %v1049_v31 = vld [vmem:[#allocation12 + $0x240] sm:$0xff]  ;;  %v2062_v50 = vld [vmem:[#allocation12 + $0x358] sm:$0xff] }
  0x97   : > { %913 = vmatpush.msrb.mxu3 %v894_v32  ;;  %976 = vmatpush.msra.mxu1 %v961_v55  ;;  %v2028_v32 = vld [vmem:[#allocation12 + $0x378] sm:$0xff] }
  0x98   : > { %937 = vmatpush.msra.mxu0 %v874_v35  ;;  %1020 = vmatpush.msra.mxu2 %v1005_v56  ;;  %v1048_v35 = vld [vmem:[#allocation12 + $0x238] sm:$0xff] }
  0x99   : > { %914 = vmatpush.msrb.mxu3 %v893_v36  ;;  %977 = vmatpush.msra.mxu1 %v960_v61  ;;  %v2035_v36 = vld [vmem:[#allocation12 + $0x2b8] sm:$0xff]  ;;  %v1043_v61 = vld [vmem:[#allocation12 + $0x210] sm:$0xff] }
  0x9a   : > { %938 = vmatpush.msra.mxu0 %v873_v39  ;;  %1021 = vmatpush.msra.mxu2 %v1004_v62  ;;  %v1044_v55 = vld [vmem:[#allocation12 + $0x218] sm:$0xff]  ;;  %v1087_v62 = vld [vmem:[#allocation12 + $0x290] sm:$0xff] }
  0x9b   : > { %915 = vmatpush.msrb.mxu3 %v892_v40  ;;  %978 = vmatpush.msra.mxu1 %v959_v3  ;;  %v1047_v40 = vld [vmem:[#allocation12 + $0x230] sm:$0xff]  ;;  %v1088_v56 = vld [vmem:[#allocation12 + $0x298] sm:$0xff]  ;;  %v1042_v3 = vld [vmem:[#allocation12 + $0x208] sm:$0xff] }
  0x9c   : > { %939 = vmatpush.msra.mxu0 %v872_v43  ;;  %1022 = vmatpush.msra.mxu2 %v1003_v4  ;;  %v1086_v4 = vld [vmem:[#allocation12 + $0x288] sm:$0xff] }
  0x9d   : > { %916 = vmatpush.msrb.mxu3 %v891_v44  ;;  %979 = vmatpush.msra.mxu1 %v958_v8  ;;  %v1046_v44 = vld [vmem:[#allocation12 + $0x228] sm:$0xff]  ;;  %v1085_v8 = vld [vmem:[#allocation12 + $0x280] sm:$0xff] }
  0x9e   : > { %940 = vmatpush.msra.mxu0 %v871_v47  ;;  %1023 = vmatpush.msra.mxu2 %v1002_v9  ;;  %v1045_v47 = vld [vmem:[#allocation12 + $0x220] sm:$0xff] }
  0x9f   : > { %917 = vmatpush.msrb.mxu3 %v890_v48  ;;  %980 = vmatpush.msra.mxu1 %v957_v12  ;;  %v2059_v48 = vld [vmem:[#allocation12 + $0x2a0] sm:$0xff] }
  0xa0   : > { %941 = vmatpush.msra.mxu0 %v870_v52  ;;  %1024 = vmatpush.msra.mxu2 %v1001_v13 }
  0xa1   : > { %918 = vmatpush.msrb.mxu3 %v889_v51  ;;  %981 = vmatpush.msra.mxu1 %v956_v0 }
  0xa2   : > { %942 = vmatpush.msra.mxu0 %v869_v57  ;;  %1025 = vmatpush.msra.mxu2 %v1000_v16  ;;  %v2069_v57 = vld [vmem:[#allocation12 + $0x350] sm:$0xff] }
  0xa3   : > { %919 = vmatpush.msrb.mxu3 %v888_v58  ;;  %982 = vmatpush.msra.mxu1 %v955_v20 }
  0xa4   : > { %1101 = vmatpush.msrb.mxu0 %v1995_v60  ;;  %1026 = vmatpush.msra.mxu2 %v999_v21  ;;  %v2102_v21 = vld [vmem:[#allocation12 + $0x320] sm:$0xff] }
  0xa5   : > { %1057 = vmatpush.msra.mxu3 %v1056_v1  ;;  %983 = vmatpush.msra.mxu1 %v954_v24  ;;  %v2074_v1 = vld [vmem:[#allocation12 + $0x348] sm:$0xff] }
  0xa6   : > { %1102 = vmatpush.msrb.mxu0 %v1999_v2  ;;  %1027 = vmatpush.msra.mxu2 %v998_v25 }
  0xa7   : > { %1058 = vmatpush.msra.mxu3 %v1055_v5  ;;  %984 = vmatpush.msra.mxu1 %v953_v29  ;;  %v2110_v29 = vld [vmem:[#allocation12 + $0x310] sm:$0xff] }
  0xa8   : > { %1103 = vmatpush.msrb.mxu0 %v2004_v7  ;;  %1028 = vmatpush.msra.mxu2 %v997_v30 }
  0xa9   : > { %1059 = vmatpush.msra.mxu3 %v1054_v10  ;;  %1145 = vmatpush.msrb.mxu1 %v2028_v32  ;;  %v1041_v10 = vld [vmem:[#allocation12 + $0x200] sm:$0xff] }
  0xaa   : > { %1104 = vmatpush.msrb.mxu0 %v2007_v11  ;;  %1388 = vmatpush.msrb.mxu2 %v1995_v60 }
  0xab   : > { %1060 = vmatpush.msra.mxu3 %v1053_v54  ;;  %1146 = vmatpush.msrb.mxu1 %v2038_v38 }
  0xac   : > { %1105 = vmatpush.msrb.mxu0 %v2012_v15  ;;  %1389 = vmatpush.msrb.mxu2 %v1999_v2 }
  0xad   : > { %1061 = vmatpush.msra.mxu3 %v1052_v17  ;;  %1147 = vmatpush.msrb.mxu1 %v2047_v42 }
  0xae   : > { %1106 = vmatpush.msrb.mxu0 %v2017_v19  ;;  %1390 = vmatpush.msrb.mxu2 %v2004_v7  ;;  %v2085_v7 = vld [vmem:[#allocation12 + $0x340] sm:$0xff] }
  0xaf   : > { %1062 = vmatpush.msra.mxu3 %v1051_v22  ;;  %1148 = vmatpush.msrb.mxu1 %v2055_v46 }
  0xb0   : > { %1107 = vmatpush.msrb.mxu0 %v2020_v23  ;;  %1391 = vmatpush.msrb.mxu2 %v2007_v11  ;;  %v2088_v11 = vld [vmem:[#allocation12 + $0x338] sm:$0xff] }
  0xb1   : > { %1063 = vmatpush.msra.mxu3 %v1050_v26  ;;  %1149 = vmatpush.msrb.mxu1 %v2062_v50 }
  0xb2   : > { %1108 = vmatpush.msrb.mxu0 %v2025_v28  ;;  %1392 = vmatpush.msrb.mxu2 %v2012_v15  ;;  %v2093_v15 = vld [vmem:[#allocation12 + $0x330] sm:$0xff] }
  0xb3   : > { %1064 = vmatpush.msra.mxu3 %v1049_v31  ;;  %1150 = vmatpush.msrb.mxu1 %v2069_v57 }
  0xb4   : > { %1109 = vmatpush.msrb.mxu0 %v2035_v36  ;;  %1393 = vmatpush.msrb.mxu2 %v2017_v19 }
  0xb5   : > { %1065 = vmatpush.msra.mxu3 %v1048_v35  ;;  %1151 = vmatpush.msrb.mxu1 %v2074_v1 }
  0xb6   : > { %1110 = vmatpush.msrb.mxu0 %v2044_v41  ;;  %1394 = vmatpush.msrb.mxu2 %v2020_v23 }
  0xb7   : > { %1066 = vmatpush.msra.mxu3 %v1047_v40  ;;  %1152 = vmatpush.msrb.mxu1 %v2085_v7 }
  0xb8   : > { %1111 = vmatpush.msrb.mxu0 %v2052_v45  ;;  %1395 = vmatpush.msrb.mxu2 %v2025_v28  ;;  %v2108_v28 = vld [vmem:[#allocation12 + $0x318] sm:$0xff] }
  0xb9   : > { %1067 = vmatpush.msra.mxu3 %v1046_v44  ;;  %1153 = vmatpush.msrb.mxu1 %v2088_v11 }
  0xba   : > { %1112 = vmatpush.msrb.mxu0 %v2059_v48  ;;  %1396 = vmatpush.msrb.mxu2 %v2035_v36  ;;  %v1129_v36 = vld [vmem:[#allocation12 + $0x300] sm:$0xff] }
  0xbb   : > { %1068 = vmatpush.msra.mxu3 %v1045_v47  ;;  %1154 = vmatpush.msrb.mxu1 %v2093_v15 }
  0xbc   : > { %1113 = vmatpush.msrb.mxu0 %v1088_v56  ;;  %1397 = vmatpush.msrb.mxu2 %v2044_v41 }
  0xbd   : > { %1069 = vmatpush.msra.mxu3 %v1044_v55 }
  0xbe   : > { %1114 = vmatpush.msrb.mxu0 %v1087_v62  ;;  %1398 = vmatpush.msrb.mxu2 %v2052_v45 }
  0xbf   : > { %1070 = vmatpush.msra.mxu3 %v1043_v61 }
  0xc0   : > { %1115 = vmatpush.msrb.mxu0 %v1086_v4  ;;  %1399 = vmatpush.msrb.mxu2 %v2059_v48 }
  0xc1   : > { %1071 = vmatpush.msra.mxu3 %v1042_v3 }
  0xc2   : > { %1116 = vmatpush.msrb.mxu0 %v1085_v8  ;;  %1400 = vmatpush.msrb.mxu2 %v1088_v56 }
  0xc3   : > { %1072 = vmatpush.msra.mxu3 %v1041_v10 }
  0xc4   : > { %1401 = vmatpush.msrb.mxu2 %v1087_v62 }
  0xc6   : > { %1402 = vmatpush.msrb.mxu2 %v1086_v4 }
  0xc8   : > { %1403 = vmatpush.msrb.mxu2 %v1085_v8 }
  0xe0   : > { %v1993_v53 = vpop.f32.mrf.mxu0 }
  0xe5   : > { %v1997_v63 = vpop.f32.mrf.mxu1 }
  0xe6   : > { %v564_v33 = vadd.f32 %v1997_v63, %v1993_v53 }
  0xe8   : > { %v658_v37 = vpop.f32.mrf.mxu3 }
  0xe9   : > { %v2002_v6 = vpop.f32.mrf.mxu2 }
  0xea   : > { %v618_v43 = vadd.f32 %v2002_v6, %v564_v33  ;;  %v2082_v6 = vld [vmem:[%s2176_s4] ss:$0 sm:$0xff]  ;;  %v1130_v33 = vld [vmem:[#allocation12 + $0x308] sm:$0xff] }
  0xec   : > { %v667_v51 = vadd.f32 %v658_v37, %v618_v43 }
  0xed   : > { %v2010_v14 = vpop.f32.mrf.mxu0 }
  0xef   : > { %v2015_v18 = vpop.f32.mrf.mxu1 }
  0xf0   : > { %v567_v52 = vadd.f32 %v2015_v18, %v2010_v14  ;;  %v2098_v18 = vld [vmem:[#allocation12 + $0x328] sm:$0xff] }
  0xf1   : > { %v2023_v27 = vpop.f32.mrf.mxu2  ;;  %1155 = vmatpush.msrb.mxu1 %v2098_v18 }
  0xf2   : > { %v619_v2 = vadd.f32 %v2023_v27, %v567_v52 }
  0xf3   : > { %v661_v63 = vpop.f32.mrf.mxu3  ;;  %1156 = vmatpush.msrb.mxu1 %v2102_v21 }
  0xf4   : > { %v668_v12 = vadd.f32 %v661_v63, %v619_v2 }
  0xf5   : > { %1157 = vmatpush.msrb.mxu1 %v2108_v28 }
  0xf6   : > { %v2032_v34 = vpop.f32.mrf.mxu0 }
  0xf7   : > { %1158 = vmatpush.msrb.mxu1 %v2110_v29 }
  0xf8   : > { %v2041_v39 = vpop.f32.mrf.mxu1 }
  0xf9   : > { %v570_v13 = vadd.f32 %v2041_v39, %v2032_v34  ;;  %1159 = vmatpush.msrb.mxu1 %v1130_v33 }
  0xfa   : > { %v615_v49 = vpop.f32.mrf.mxu2 }
  0xfb   : > { %v620_v19 = vadd.f32 %v615_v49, %v570_v13  ;;  %1160 = vmatpush.msrb.mxu1 %v1129_v36  ;;  %v1519_v13 = vld [vmem:[%s2178_s6] ss:$0 sm:$0xff] }
  0xfc   : > { %v664_v22 = vpop.f32.mrf.mxu3 }
  0xfd   : > { %v669_v25 = vadd.f32 %v664_v22, %v620_v19  ;;  %v1520_v19 = vld [vmem:[#allocation2 + $0x10] sm:$0xff] }
  0xfe   : > { %v707_v53 = vpop.f32.mrf.mxu0 }
  0xff   : > { %v716_v58 = vadd.f32 %v707_v53, %v667_v51 }
 0x100   : > { %v756_v60 = vpop.f32.mrf.mxu1 }
 0x101   : > { %v765_v5 = vadd.f32 %v756_v60, %v716_v58 }
 0x105   : > { %v805_v9 = vpop.f32.mrf.mxu2 }
 0x106   : > { %v814_v54 = vadd.f32 %v805_v9, %v765_v5  ;;  %v710_v14 = vpop.f32.mrf.mxu0 }
 0x107   : > { %v717_v16 = vadd.f32 %v710_v14, %v668_v12 }
 0x108   : > { %v821_v0 = vadd.f32 %v2082_v6, %v814_v54  ;;  %v759_v17 = vpop.f32.mrf.mxu1 }
 0x109   : > { %v766_v23 = vadd.f32 %v759_v17, %v717_v16 }
 0x10a   : > { %v824_v20 = vmax.f32 %v821_v0, 0.0 }
 0x10c   : > { %827 = vst [vmem:[#allocation3] sm:$0xff] %v824_v20 }
 0x10d   : > { %833 = vst [vmem:[#allocation3] sm:$0x7] %v1768_v59  ;;  %v808_v24 = vpop.f32.mrf.mxu2  ;;  %v841_v59 = vlaneseq }
 0x10e   : > { %v815_v26 = vadd.f32 %v808_v24, %v766_v23  ;;  %v713_v27 = vpop.f32.mrf.mxu0 }
 0x10f   : > { %v718_v31 = vadd.f32 %v713_v27, %v669_v25  ;;  %v842_v41 = vshrl.u32 %v841_v59, 7 }
 0x110   : > { %v822_v30 = vadd.f32 %v2082_v6, %v815_v26  ;;  %v762_v34 = vpop.f32.mrf.mxu1 }
 0x111   : > { %v767_v39 = vadd.f32 %v762_v34, %v718_v31  ;;  %v844_v45 = vadd.s32 16, %v842_v41 }
 0x112   : > { %v825_v35 = vmax.f32 %v822_v30, 0.0 }
 0x113   : > { %v848_v52 = vadd.s32 4294967293, %v844_v45 }
 0x114   : > { %v852_v37 = vld [vmem:[#allocation3] sm:$0xff]  ;;  %865 = vst [vmem:[#allocation3 + $0x8] sm:$0xff] %v825_v35 }
 0x115   : > { %v811_v40 = vpop.f32.mrf.mxu2  ;;  %943 = vmatmul.f32.vlgmr.msra.gmra.mxu0 %v852_v37  ;;  %vm851_vm0 = vcmp.lt.s32.totalorder %v848_v52, 16 }
 0x116   : > { %v816_v43 = vadd.f32 %v811_v40, %v767_v39 }
 0x118   : > { %v823_v44 = vadd.f32 %v2082_v6, %v816_v43 }
 0x11a   : > { %v826_v47 = vmax.f32 %v823_v44, 0.0 }
 0x11b   : > { %v885_v48 = vld [vmem:[#allocation3 + $0x1] sm:$0xff] }
 0x11c   : > { %v950_v49 = vld [vmem:[#allocation3 + $0x2] sm:$0xff]  ;;  %829 = vst [vmem:[#allocation3 + $0x10] sm:$0x3f] %v826_v47  ;;  %920 = vmatmul.f32.vlgmr.msrb.gmra.mxu3 %v885_v48 }
 0x11d   : > { %v994_v51 = vld [vmem:[#allocation3 + $0x3] sm:$0xff]  ;;  %985 = vmatmul.f32.vlgmr.msra.gmra.mxu1 %v950_v49  ;;  %946 = vmatmul.f32.gmra.mxu0 %v825_v35 }
 0x11e   : > { %1029 = vmatmul.f32.vlgmr.msra.gmra.mxu2 %v994_v51  ;;  %1404 = vmatpush.msrb.mxu3 %v2028_v32  ;;  %v1082_v56 = vld [vmem:[#allocation3 + $0x5] sm:$0xff] }
 0x120   : > { %1405 = vmatpush.msrb.mxu3 %v2038_v38  ;;  %v1038_v38 = vld [vmem:[#allocation3 + $0x4] sm:$0xff] }
 0x122   : > { %1406 = vmatpush.msrb.mxu3 %v2047_v42  ;;  %v1126_v42 = vld [vmem:[#allocation3 + $0x6] sm:$0xff] }
 0x123   : > { %v854_v53 = vld [vmem:[#allocation3 + $0x10] sm:$0x3f] }
 0x124   : > { %v863_v55 = vsel %vm851_vm0, %v854_v53, 0.0  ;;  %1407 = vmatpush.msrb.mxu3 %v2055_v46 }
 0x125   : > { %866 = vst [vmem:[#allocation3 + $0x10] sm:$0x3f] %v863_v55  ;;  %1117 = vmatmul.f32.vlgmr.msrb.gmra.mxu0 %v1082_v56 }
 0x126   : > { %1408 = vmatpush.msrb.mxu3 %v2062_v50 }
 0x128   : > { %1409 = vmatpush.msrb.mxu3 %v2069_v57 }
 0x12a   : > { %1410 = vmatpush.msrb.mxu3 %v2074_v1 }
 0x12c   : > { %v886_v58 = vld [vmem:[#allocation3 + $0x9] sm:$0xff]  ;;  %1411 = vmatpush.msrb.mxu3 %v2085_v7 }
 0x12d   : > { %v951_v32 = vld [vmem:[#allocation3 + $0xa] sm:$0xff]  ;;  %923 = vmatmul.f32.gmra.mxu3 %v886_v58 }
 0x12e   : > { %v995_v60 = vld [vmem:[#allocation3 + $0xb] sm:$0xff]  ;;  %988 = vmatmul.f32.gmra.mxu1 %v951_v32  ;;  %1412 = vmatpush.msrb.mxu3 %v2088_v11 }
 0x12f   : > { %1032 = vmatmul.f32.gmra.mxu2 %v995_v60  ;;  %v1083_v46 = vld [vmem:[#allocation3 + $0xd] sm:$0xff] }
 0x130   : > { %1413 = vmatpush.msrb.mxu3 %v2093_v15  ;;  %v1039_v50 = vld [vmem:[#allocation3 + $0xc] sm:$0xff] }
 0x131   : > { %v1127_v57 = vld [vmem:[#allocation3 + $0xe] sm:$0xff] }
 0x132   : > { %1414 = vmatpush.msrb.mxu3 %v2098_v18 }
 0x134   : > { %1415 = vmatpush.msrb.mxu3 %v2102_v21 }
 0x135   : > { %1073 = vmatmul.f32.vlgmr.msra.gmra.mxu3 %v1038_v38 }
 0x136   : > { %1161 = vmatmul.f32.vlgmr.msrb.gmra.mxu1 %v1126_v42  ;;  %1416 = vmatpush.msrb.mxu3 %v2108_v28  ;;  %v1521_v28 = vld [vmem:[#allocation2 + $0x18] sm:$0xff] }
 0x137   : > { %1120 = vmatmul.f32.vlgmr.msrb.gmra.mxu2 %v1083_v46 }
 0x138   : > { %1417 = vmatpush.msrb.mxu3 %v2110_v29 }
 0x13a   : > { %1418 = vmatpush.msrb.mxu3 %v1130_v33 }
 0x13c   : > { %1419 = vmatpush.msrb.mxu3 %v1129_v36 }
 0x13d   : > { %1076 = vmatmul.f32.gmra.mxu3 %v1039_v50 }
 0x145   : > { %1164 = vmatmul.f32.vlgmr.msrb.gmra.mxu3 %v1127_v57 }
 0x192   : > { %v944_v61 = vpop.f32.mrf.mxu0 }
 0x19a   : > { %v986_v63 = vpop.f32.mrf.mxu1  ;;  %v947_v2 = vpop.f32.mrf.mxu0 }
 0x19f   : > { %v921_v62 = vpop.f32.mrf.mxu3 }
 0x1a0   : > { %v945_v1 = vadd.f32 %v944_v61, %v921_v62 }
 0x1a1   : > { %v1030_v6 = vpop.f32.mrf.mxu2 }
 0x1a2   : > { %v992_v5 = vadd.f32 %v986_v63, %v945_v1  ;;  %v1118_v11 = vpop.f32.mrf.mxu0 }
 0x1a4   : > { %v1036_v7 = vadd.f32 %v1030_v6, %v992_v5 }
 0x1ab   : > { %v989_v4 = vpop.f32.mrf.mxu1 }
 0x1b0   : > { %v924_v3 = vpop.f32.mrf.mxu3 }
 0x1b1   : > { %v948_v9 = vadd.f32 %v947_v2, %v924_v3 }
 0x1b2   : > { %v1033_v54 = vpop.f32.mrf.mxu2 }
 0x1b3   : > { %v1162_v14 = vpop.f32.mrf.mxu1  ;;  %v993_v15 = vadd.f32 %v989_v4, %v948_v9 }
 0x1b5   : > { %v1037_v18 = vadd.f32 %v1033_v54, %v993_v15 }
 0x1b8   : > { %v1074_v8 = vpop.f32.mrf.mxu3 }
 0x1b9   : > { %v1080_v10 = vadd.f32 %v1074_v8, %v1036_v7 }
 0x1ba   : > { %v1121_v23 = vpop.f32.mrf.mxu2 }
 0x1bb   : > { %v1124_v12 = vadd.f32 %v1118_v11, %v1080_v10 }
 0x1bd   : > { %v1168_v0 = vadd.f32 %v1162_v14, %v1124_v12 }
 0x1bf   : > { %v1174_v16 = vadd.f32 %v1519_v13, %v1168_v0 }
 0x1c0   : > { %v1077_v17 = vpop.f32.mrf.mxu3 }
 0x1c1   : > { %v1178_v20 = vadd.f32 %v1520_v19, %v1174_v16  ;;  %v1081_v21 = vadd.f32 %v1077_v17, %v1037_v18 }
 0x1c3   : > { %v1180_v22 = vmax.f32 %v1178_v20, 0.0  ;;  %v1125_v24 = vadd.f32 %v1121_v23, %v1081_v21 }
 0x1c5   : > { %1182 = vst [vmem:[%s456_s20] sm:$0xff] %v1180_v22 }
 0x1c8   : > { %v1165_v25 = vpop.f32.mrf.mxu3 }
 0x1c9   : > { %v1169_v26 = vadd.f32 %v1165_v25, %v1125_v24 }
 0x1cb   : > { %v1175_v27 = vadd.f32 %v1519_v13, %v1169_v26 }
 0x1cd   : > { %v1179_v29 = vadd.f32 %v1521_v28, %v1175_v27 }
 0x1cf   : > { %v1181_v30 = vmax.f32 %v1179_v29, 0.0 }
 0x1d1   : > { %1183 = vst [vmem:[%s456_s20 + $0x8] sm:$0xff] %v1181_v30 }
 0x1d2   : > { %1699 = shalt.err (!%p1696_p0)
}
 0x1d3   : > { %s1769_s1 = smov 128   ;;  %s1770_s5 = smov 8  }
 0x1d4   : > { %1434 = dma.vmem_to_hbm [thread:$0]  (%p1891_p5), %s1200_s29, 256, %s1202_s10, %s1185_s17, %s1769_s1, %s1769_s1, %s1770_s5  }
 0x1d5 PF: > { %s2212_s26 = sld [smem:[#allocation18_spill]]  ;;  %p1454_p3 = pnand %p1362_p11, %p1856_p6 }
 0x1d6   : > { %s2214_s13 = sld [smem:[#allocation21_spill]] }
 0x1d7   : > { %p1455_p7 = pneg %p1454_p3 }
 0x1db   : > { %s1216_s30 = sand.u32 1, %s2212_s26  }
 0x1dc   : > { %s1217_s9 = scalar_lea.sflag [#allocation6], %s1216_s30 }
 0x1dd   : > { %1737 = dma.done.wait (%p1455_p7), %s1217_s9, 256  }
 0x1de   : > { %1739 = vsyncadd (%p1455_p7), %s1217_s9, 4294967040  ;;  %s27_s29 = sadd.s32 1, %s2214_s13   ;;  %s2215_s15 = sld [smem:[#allocation19_spill]] }
 0x1df   : > { %p24_p9 = scmp.ge.s32.totalorder %s27_s29, 4   ;;  %s2216_s26 = sld [smem:[#allocation24_spill]] }
 0x1e0   : > { %s2217_s27 = sld [smem:[#allocation20_spill]]  ;;  %s2219_s24 = smov %s1746_s25 }
 0x1e1   : > { %s2218_s28 = sld [smem:[#allocation23_spill]]  ;;  %26 = sbr.rel (!%p24_p9) target bundleno = 13 (0xd), region = 149 }
 0x1e4   : > { %s2220_s25 = smov %s2215_s15 }
 0x1e6   :  { %1223 = vsyncpa [#allocation5], 1 }
 0x1e7   :  { %1225 = vsyncpa [#allocation5 + $0x1], 1 }
 0x1e8   :  { %1226 = vsyncpa [#allocation8], 1 }
 0x1e9   :  { %1228 = vsyncpa [#allocation8 + $0x1], 1 }
 0x1ea   :  { %1229 = vsyncpa [#allocation11], 1 }
 0x1eb   :  { %1230 = vsyncpa [#allocation6], 1 }
 0x1ec   :  { %1232 = vsyncpa [#allocation6 + $0x1], 1 }

</bundles_post_ra>
